<compile_context>
chip_gen: v7x
topology: tpu7x:2x2x1
jax: 0.10.0
libtpu: 0.0.40
codegen_flags: <defaults>
</compile_context>

<pallas_src>
import functools
import math

import jax
import jax.numpy as jnp
from jax.experimental import pallas as pl
from jax.experimental.pallas import tpu as pltpu

COMPUTE_DTYPE = jnp.bfloat16            # bf16 storage + MXU path, f32 accumulate
VMEM_LIMIT_BYTES = 48 * 1024 * 1024     # <= v7x 64 MiB physical; > 32 MiB default
CONV_VMEM_BUDGET = 24 * 1024 * 1024     # target footprint for conv row-tile choice
TM_DEFAULT = 512                        # lane tile for the batched matmul kernel


def _round_up(x, m):
    return (x + m - 1) // m * m


# ----------------------------------------------------------------------------
# Generic batched, lane-dense matmul kernel:
#   out (N, R, M) = W (R, K) @ X (N, K, M) + b, optional activation.
# Used for the 1x1 final conv and the 2x2-stride-2 transposed conv.
# ----------------------------------------------------------------------------
def _matmul_kernel(x_ref, w_ref, b_ref, o_ref, *, act):
    acc = jnp.dot(w_ref[...], x_ref[0], preferred_element_type=jnp.float32)
    acc = acc + b_ref[...]
    if act == "relu":
        acc = jnp.maximum(acc, 0.0)
    elif act == "sigmoid":
        acc = jax.nn.sigmoid(acc)
    o_ref[0] = acc.astype(o_ref.dtype)


def _pick_tm(M, cap=TM_DEFAULT):
    """Lane tile: multiple of 128 when tiling, else the full (small) extent."""
    if M <= cap:
        return M
    top = (min(cap, M) // 128) * 128
    for tm in range(top, 127, -128):
        if M % tm == 0:
            return tm
    return cap  # non-divisible: edge block is masked by Pallas


def matmul_batched(x, w, b, act=None, out_dtype=COMPUTE_DTYPE):
    """x: (N, K, M) channels-in-sublanes / pixels-in-lanes; w: (R, K); b: (R,)."""
    N, K, M = x.shape
    R = w.shape[0]
    tm = _pick_tm(M)
    x = x.astype(COMPUTE_DTYPE)
    w = w.astype(COMPUTE_DTYPE)
    b2 = b.reshape(R, 1).astype(jnp.float32)

    flops = 2 * N * R * K * M
    bytes_accessed = int(x.size * 2 + w.size * 2
                         + N * R * M * jnp.dtype(out_dtype).itemsize)
    return pl.pallas_call(
        functools.partial(_matmul_kernel, act=act),
        out_shape=jax.ShapeDtypeStruct((N, R, M), out_dtype),
        grid=(N, pl.cdiv(M, tm)),
        in_specs=[
            pl.BlockSpec((1, K, tm), lambda n, m: (n, 0, m)),
            pl.BlockSpec((R, K), lambda n, m: (0, 0)),
            pl.BlockSpec((R, 1), lambda n, m: (0, 0)),
        ],
        out_specs=pl.BlockSpec((1, R, tm), lambda n, m: (n, 0, m)),
        compiler_params=pltpu.CompilerParams(
            dimension_semantics=("parallel", "parallel"),
            vmem_limit_bytes=VMEM_LIMIT_BYTES,
        ),
        cost_estimate=pl.CostEstimate(
            flops=int(flops),
            transcendentals=int(N * R * M) if act == "sigmoid" else 0,
            bytes_accessed=bytes_accessed,
        ),
    )(x, w, b2)


# ----------------------------------------------------------------------------
# Fused 3x3 conv kernel (pad=1, stride=1), channels-in-sublanes layout.
# Supports multiple input tensors (virtual channel concat for the decoder
# skip connection) -> the concat is never materialized in HBM.
#
# Per grid step (one batch item, one row tile of Ht output rows):
#   input blocks : (1, 1, Cin_i_p, (Ht+3)*Wp)  zero-padded row tile (3-row halo)
#   weight block : (Cout, 9*sum(Cin_i_p))      tap-folded, concat over inputs
#   output block : (1, 1, Cout, Ht*Wp)         padded-width flat (lane-dense)
# The 9 taps are shifted contiguous slices of the flattened padded tile; they
# are staged into a VMEM scratch and contracted with ONE MXU matmul.
# ----------------------------------------------------------------------------
def _conv3x3_kernel(*refs, n_in, cin_ps, Wp, Lt, act):
    x_refs = refs[:n_in]
    w_ref = refs[n_in]
    b_ref = refs[n_in + 1]
    o_ref = refs[n_in + 2]
    xcol_ref = refs[n_in + 3]          # (9*sum(Cin_p), Lt) bf16 staging scratch

    row = 0
    for xi in range(n_in):
        cin = cin_ps[xi]
        for dy in range(3):
            for dx in range(3):
                off = dy * Wp + dx                         # static lane offset
                xcol_ref[row:row + cin, :] = x_refs[xi][0, 0, :, off:off + Lt]
                row += cin

    acc = jnp.dot(w_ref[...], xcol_ref[...], preferred_element_type=jnp.float32)
    acc = acc + b_ref[...]             # (Cout, 1) broadcast over lanes
    if act == "relu":
        acc = jnp.maximum(acc, 0.0)
    elif act == "sigmoid":
        acc = jax.nn.sigmoid(acc)
    o_ref[0, 0] = acc.astype(o_ref.dtype)


def _conv_row_tile(H, Wp, cin_ps, Cout, out_itemsize, n_batch):
    """Largest row tile Ht (divisor of H) whose VMEM footprint fits the budget."""
    K_total = 9 * sum(cin_ps)

    def footprint(ht):
        lt_in = (ht + 3) * Wp
        lt = ht * Wp
        return (2 * sum(cin_ps) * lt_in * 2     # double-buffered bf16 input tiles
                + 2 * Cout * K_total * 2        # folded weight (counted 2x, safe)
                + 2 * Cout * lt * out_itemsize  # double-buffered output tile
                + K_total * lt * 2              # staging scratch
                + Cout * lt * 4)                # f32 matmul result

    divisors = sorted({d for d in range(1, H + 1) if H % d == 0}, reverse=True)
    ht = next((d for d in divisors if footprint(d) <= CONV_VMEM_BUDGET), 1)
    # Give the pipeline / both v7x TensorCores >= 2 grid steps even when N == 1.
    if n_batch * (H // ht) < 2:
        for d in divisors:
            if d < ht and footprint(d) <= CONV_VMEM_BUDGET:
                ht = d
                break
    return ht


def conv3x3_fused(xs_list, ws_list, b, act="relu", out_dtype=COMPUTE_DTYPE):
    """3x3 conv (pad=1, stride=1) over the channel-concat of xs_list.

    xs_list[i]: (N, Cin_i, H, W); ws_list[i]: (Cout, Cin_i, 3, 3); b: (Cout,)
    Returns (N, Cout, H, W).
    """
    N, _, H, W = xs_list[0].shape
    Cout = ws_list[0].shape[0]
    Wp = W + 2
    cins = [x.shape[1] for x in xs_list]
    cin_ps = [_round_up(c, 8) for c in cins]
    K_total = 9 * sum(cin_ps)

    Ht = _conv_row_tile(H, Wp, cin_ps, Cout, jnp.dtype(out_dtype).itemsize, N)
    nrt = H // Ht
    Lt_in = (Ht + 3) * Wp       # +1 extra bottom pad row keeps all 9 shifted
    Lt = Ht * Wp                # flat slices in-bounds (junk cols only)

    # Zero-pad (1 top, 2 bottom, 1 left, 1 right) and split into overlapping
    # row tiles with a 3-row halo (replaces the plain pad copy we had anyway).
    x_tiled = []
    for x, cin, cin_p in zip(xs_list, cins, cin_ps):
        xp = jnp.pad(x.astype(COMPUTE_DTYPE),
                     ((0, 0), (0, cin_p - cin), (1, 2), (1, 1)))
        if nrt == 1:
            xt = xp.reshape(N, 1, cin_p, Lt_in)
        else:
            xt = jnp.stack([xp[:, :, r * Ht:r * Ht + Ht + 3, :]
                            for r in range(nrt)], axis=1)
            xt = xt.reshape(N, nrt, cin_p, Lt_in)
        x_tiled.append(xt)

    # Fold all 9 taps of all inputs into one (Cout, 9*sum(Cin_p)) weight so the
    # kernel issues a single high-K contraction (row order matches staging).
    w_parts = []
    for w, cin, cin_p in zip(ws_list, cins, cin_ps):
        wk = jnp.transpose(w, (0, 2, 3, 1))                   # (Cout, ky, kx, Cin)
        wk = jnp.pad(wk, ((0, 0), (0, 0), (0, 0), (0, cin_p - cin)))
        w_parts.append(wk.reshape(Cout, 9 * cin_p))
    w_fold = jnp.concatenate(w_parts, axis=1).astype(COMPUTE_DTYPE)
    b2 = b.reshape(Cout, 1).astype(jnp.float32)

    in_specs = ([pl.BlockSpec((1, 1, cp, Lt_in), lambda n, r: (n, r, 0, 0))
                 for cp in cin_ps]
                + [pl.BlockSpec((Cout, K_total), lambda n, r: (0, 0)),
                   pl.BlockSpec((Cout, 1), lambda n, r: (0, 0))])

    flops = 2 * N * nrt * Cout * K_total * Lt
    bytes_accessed = int(sum(int(xt.size) * 2 for xt in x_tiled)
                         + int(w_fold.size) * 2
                         + N * nrt * Cout * Lt * jnp.dtype(out_dtype).itemsize)

    out = pl.pallas_call(
        functools.partial(_conv3x3_kernel, n_in=len(xs_list),
                          cin_ps=tuple(cin_ps), Wp=Wp, Lt=Lt, act=act),
        out_shape=jax.ShapeDtypeStruct((N, nrt, Cout, Lt), out_dtype),
        grid=(N, nrt),
        in_specs=in_specs,
        out_specs=pl.BlockSpec((1, 1, Cout, Lt), lambda n, r: (n, r, 0, 0)),
        scratch_shapes=[pltpu.VMEM((K_total, Lt), COMPUTE_DTYPE)],
        compiler_params=pltpu.CompilerParams(
            dimension_semantics=("parallel", "parallel"),
            vmem_limit_bytes=VMEM_LIMIT_BYTES,
        ),
        cost_estimate=pl.CostEstimate(flops=int(flops), transcendentals=0,
                                      bytes_accessed=bytes_accessed),
    )(*x_tiled, w_fold, b2)

    # Reassemble (N, Cout, H, Wp) and drop the 2 junk padded-width columns.
    # The transpose is a no-op for nrt == 1 and fuses into the consumer's pad
    # copy otherwise.
    out = out.reshape(N, nrt, Cout, Ht, Wp)
    out = jnp.transpose(out, (0, 2, 1, 3, 4)).reshape(N, Cout, H, Wp)
    return out[:, :, :, :W]


# ----------------------------------------------------------------------------
# MaxPool 2x2 (plain JAX: XLA fuses the reshape+max).
# ----------------------------------------------------------------------------
def maxpool2x2(x):
    N, C, H, W = x.shape
    assert H % 2 == 0 and W % 2 == 0, "maxpool2x2 requires even H and W"
    return x.reshape(N, C, H // 2, 2, W // 2, 2).max(axis=(3, 5))


# ----------------------------------------------------------------------------
# ConvTranspose2d(k=2, s=2): stride == kernel -> 4 independent output phases,
# one lane-dense batched matmul (no input transpose) + de-interleave in glue.
# ----------------------------------------------------------------------------
def upconv2x2_transpose(x, w, b, out_dtype=COMPUTE_DTYPE):
    """x: (N, Cin, H, W); w: (Cin, Cout, 2, 2) torch layout; -> (N, Cout, 2H, 2W)."""
    N, Cin, H, W = x.shape
    Cout = w.shape[1]
    # (Cin, Cout, ky, kx) -> rows ordered (ky, kx, co); tiny weight reshuffle.
    wk = jnp.transpose(w, (2, 3, 1, 0)).reshape(4 * Cout, Cin)
    bk = jnp.tile(b, 4)
    xm = x.reshape(N, Cin, H * W)                       # free reshape
    out = matmul_batched(xm, wk, bk, act=None, out_dtype=out_dtype)  # (N,4Cout,HW)
    # 4-phase de-interleave; fuses into the consumer conv's pad copy.
    out = out.reshape(N, 2, 2, Cout, H, W)
    out = jnp.transpose(out, (0, 3, 4, 1, 5, 2)).reshape(N, Cout, 2 * H, 2 * W)
    return out


def conv1x1(x, w, b, act=None, out_dtype=jnp.float32):
    """x: (N, Cin, H, W); w: (Cout, Cin, 1, 1) torch layout."""
    N, Cin, H, W = x.shape
    Cout = w.shape[0]
    xm = x.reshape(N, Cin, H * W)                       # free reshape
    out = matmul_batched(xm, w.reshape(Cout, Cin), b, act=act,
                         out_dtype=out_dtype)           # (N, Cout, HW)
    return out.reshape(N, Cout, H, W)


# ----------------------------------------------------------------------------
# Parameter init (deterministic, shapes from UNet.__init__)
# ----------------------------------------------------------------------------
def _kaiming_uniform(key, shape, fan_in):
    bound = math.sqrt(6.0 / fan_in)
    return jax.random.uniform(key, shape, jnp.float32, -bound, bound)


def init_unet_params(key, num_classes, in_channels, depth, start_filts):
    params = {"down": [], "up": []}
    outs = in_channels
    for i in range(depth):
        ins = in_channels if i == 0 else outs
        outs = start_filts * 2 ** i
        key, k1, k2 = jax.random.split(key, 3)
        params["down"].append(
            dict(
                conv1_w=_kaiming_uniform(k1, (outs, ins, 3, 3), ins * 9),
                conv1_b=jnp.zeros((outs,), jnp.float32),
                conv2_w=_kaiming_uniform(k2, (outs, outs, 3, 3), outs * 9),
                conv2_b=jnp.zeros((outs,), jnp.float32),
            )
        )
    for _ in range(depth - 1):
        ins = outs
        outs = ins // 2
        key, k1, k2, k3 = jax.random.split(key, 4)
        params["up"].append(
            dict(
                up_w=_kaiming_uniform(k3, (ins, outs, 2, 2), ins * 4),
                up_b=jnp.zeros((outs,), jnp.float32),
                conv1_w=_kaiming_uniform(k1, (outs, 2 * outs, 3, 3), 2 * outs * 9),
                conv1_b=jnp.zeros((outs,), jnp.float32),
                conv2_w=_kaiming_uniform(k2, (outs, outs, 3, 3), outs * 9),
                conv2_b=jnp.zeros((outs,), jnp.float32),
            )
        )
    key, kf = jax.random.split(key)
    params["final_w"] = _kaiming_uniform(kf, (num_classes, outs, 1, 1), outs)
    params["final_b"] = jnp.zeros((num_classes,), jnp.float32)
    # TODO(synk): conv_final_re exists in __init__ but is unused in forward(); omitted.
    return params


# ----------------------------------------------------------------------------
# UNet forward (matches UNet.forward semantics, NCHW in / NCHW out)
# ----------------------------------------------------------------------------
def unet_forward(params, x_nchw):
    depth = len(params["down"])
    x = x_nchw.astype(COMPUTE_DTYPE)

    encoder_outs = []
    for i, p in enumerate(params["down"]):
        x = conv3x3_fused([x], [p["conv1_w"]], p["conv1_b"], act="relu")
        x = conv3x3_fused([x], [p["conv2_w"]], p["conv2_b"], act="relu")
        encoder_outs.append(x)            # before_pool
        if i < depth - 1:                 # pooling
            x = maxpool2x2(x)

    seg = x
    for i, p in enumerate(params["up"]):
        before_pool = encoder_outs[-(i + 2)]
        from_up = upconv2x2_transpose(seg, p["up_w"], p["up_b"])
        # merge_mode='concat': torch.cat((from_up, from_down), dim=1) is done
        # virtually by splitting conv1's weight along Cin (no HBM concat).
        co = p["conv1_w"].shape[0]
        w_up = p["conv1_w"][:, :co, :, :]
        w_down = p["conv1_w"][:, co:, :, :]
        seg = conv3x3_fused([from_up, before_pool], [w_up, w_down],
                            p["conv1_b"], act="relu")
        seg = conv3x3_fused([seg], [p["conv2_w"]], p["conv2_b"], act="relu")

    seg = conv1x1(seg, params["final_w"], params["final_b"],
                  act="sigmoid", out_dtype=jnp.float32)
    return seg  # already NCHW


# ----------------------------------------------------------------------------
if __name__ == "__main__":
    # Small config consistent with the module:
    #   UNet(num_classes=2, in_channels=1, depth=3, start_filts=8)
    num_classes, in_channels, depth, start_filts = 2, 1, 3, 8
    N, H, W = 2, 16, 16  # spatial divisible by 2**(depth-1)

    key = jax.random.PRNGKey(0)
    kx, kp = jax.random.split(key)
    x = jax.random.normal(kx, (N, in_channels, H, W), jnp.float32)
    params = init_unet_params(kp, num_classes, in_channels, depth, start_filts)

    fwd = jax.jit(unet_forward)
    out = jax.block_until_ready(fwd(params, x))

    assert out.shape == (N, num_classes, H, W), out.shape
    assert bool(jnp.all(jnp.isfinite(out)))
    assert bool(jnp.all((out >= 0.0) & (out <= 1.0)))  # sigmoid output
    print("KERNEL_OK")
</pallas_src>

<mosaic_0001>
module attributes {stable_mosaic.version = 11 : i64} {
  func.func @_conv3x3_kernel(%arg0: i32, %arg1: i32, %arg2: memref<1x1x8x342xbf16, #tpu.memory_space<vmem>>, %arg3: memref<8x72xbf16, #tpu.memory_space<vmem>>, %arg4: memref<8x1xf32, #tpu.memory_space<vmem>>, %arg5: memref<1x1x8x288xbf16, #tpu.memory_space<vmem>>, %arg6: memref<72x288xbf16, #tpu.memory_space<vmem>>) attributes {dimension_semantics = [#tpu.dimension_semantics<parallel>, #tpu.dimension_semantics<parallel>], iteration_bounds = array<i64: 2, 1>, scalar_prefetch = 0 : i64, scratch_operands = 1 : i64, tpu.core_type = #tpu.core_type<tc>, window_params = [{transform_indices = @transform_0, window_bounds = array<i64: 1, 1, 8, 342>}, {pipeline_mode = #tpu.pipeline_mode<synchronous>, transform_indices = @transform_1, window_bounds = array<i64: 8, 72>}, {pipeline_mode = #tpu.pipeline_mode<synchronous>, transform_indices = @transform_2, window_bounds = array<i64: 8, 1>}, {transform_indices = @transform_3, window_bounds = array<i64: 1, 1, 8, 288>}]} {
    %c0 = arith.constant 0 : index
    %c0_0 = arith.constant 0 : index
    %c0_1 = arith.constant 0 : index
    %c0_2 = arith.constant 0 : index
    %0 = vector.load %arg2[%c0, %c0_0, %c0_1, %c0_2] : memref<1x1x8x342xbf16, #tpu.memory_space<vmem>>, vector<1x1x8x288xbf16>
    %1 = vector.shape_cast %0 : vector<1x1x8x288xbf16> to vector<8x288xbf16>
    %c0_3 = arith.constant 0 : index
    %c0_4 = arith.constant 0 : index
    %2 = vector.load %arg6[%c0_3, %c0_4] : memref<72x288xbf16, #tpu.memory_space<vmem>>, vector<8x288xbf16>
    tpu.vector_store %arg6[%c0_3, %c0_4], %1 {strides = array<i32>} : memref<72x288xbf16, #tpu.memory_space<vmem>>, vector<8x288xbf16>,
    %c0_5 = arith.constant 0 : index
    %c0_6 = arith.constant 0 : index
    %c0_7 = arith.constant 0 : index
    %c1 = arith.constant 1 : index
    %3 = vector.load %arg2[%c0_5, %c0_6, %c0_7, %c1] : memref<1x1x8x342xbf16, #tpu.memory_space<vmem>>, vector<1x1x8x288xbf16>
    %4 = vector.shape_cast %3 : vector<1x1x8x288xbf16> to vector<8x288xbf16>
    %c8 = arith.constant 8 : index
    %c0_8 = arith.constant 0 : index
    %5 = vector.load %arg6[%c8, %c0_8] : memref<72x288xbf16, #tpu.memory_space<vmem>>, vector<8x288xbf16>
    tpu.vector_store %arg6[%c8, %c0_8], %4 {strides = array<i32>} : memref<72x288xbf16, #tpu.memory_space<vmem>>, vector<8x288xbf16>,
    %c0_9 = arith.constant 0 : index
    %c0_10 = arith.constant 0 : index
    %c0_11 = arith.constant 0 : index
    %c2 = arith.constant 2 : index
    %6 = vector.load %arg2[%c0_9, %c0_10, %c0_11, %c2] : memref<1x1x8x342xbf16, #tpu.memory_space<vmem>>, vector<1x1x8x288xbf16>
    %7 = vector.shape_cast %6 : vector<1x1x8x288xbf16> to vector<8x288xbf16>
    %c16 = arith.constant 16 : index
    %c0_12 = arith.constant 0 : index
    %8 = vector.load %arg6[%c16, %c0_12] : memref<72x288xbf16, #tpu.memory_space<vmem>>, vector<8x288xbf16>
    tpu.vector_store %arg6[%c16, %c0_12], %7 {strides = array<i32>} : memref<72x288xbf16, #tpu.memory_space<vmem>>, vector<8x288xbf16>,
    %c0_13 = arith.constant 0 : index
    %c0_14 = arith.constant 0 : index
    %c0_15 = arith.constant 0 : index
    %c18 = arith.constant 18 : index
    %9 = vector.load %arg2[%c0_13, %c0_14, %c0_15, %c18] : memref<1x1x8x342xbf16, #tpu.memory_space<vmem>>, vector<1x1x8x288xbf16>
    %10 = vector.shape_cast %9 : vector<1x1x8x288xbf16> to vector<8x288xbf16>
    %c24 = arith.constant 24 : index
    %c0_16 = arith.constant 0 : index
    %11 = vector.load %arg6[%c24, %c0_16] : memref<72x288xbf16, #tpu.memory_space<vmem>>, vector<8x288xbf16>
    tpu.vector_store %arg6[%c24, %c0_16], %10 {strides = array<i32>} : memref<72x288xbf16, #tpu.memory_space<vmem>>, vector<8x288xbf16>,
    %c0_17 = arith.constant 0 : index
    %c0_18 = arith.constant 0 : index
    %c0_19 = arith.constant 0 : index
    %c19 = arith.constant 19 : index
    %12 = vector.load %arg2[%c0_17, %c0_18, %c0_19, %c19] : memref<1x1x8x342xbf16, #tpu.memory_space<vmem>>, vector<1x1x8x288xbf16>
    %13 = vector.shape_cast %12 : vector<1x1x8x288xbf16> to vector<8x288xbf16>
    %c32 = arith.constant 32 : index
    %c0_20 = arith.constant 0 : index
    %14 = vector.load %arg6[%c32, %c0_20] : memref<72x288xbf16, #tpu.memory_space<vmem>>, vector<8x288xbf16>
    tpu.vector_store %arg6[%c32, %c0_20], %13 {strides = array<i32>} : memref<72x288xbf16, #tpu.memory_space<vmem>>, vector<8x288xbf16>,
    %c0_21 = arith.constant 0 : index
    %c0_22 = arith.constant 0 : index
    %c0_23 = arith.constant 0 : index
    %c20 = arith.constant 20 : index
    %15 = vector.load %arg2[%c0_21, %c0_22, %c0_23, %c20] : memref<1x1x8x342xbf16, #tpu.memory_space<vmem>>, vector<1x1x8x288xbf16>
    %16 = vector.shape_cast %15 : vector<1x1x8x288xbf16> to vector<8x288xbf16>
    %c40 = arith.constant 40 : index
    %c0_24 = arith.constant 0 : index
    %17 = vector.load %arg6[%c40, %c0_24] : memref<72x288xbf16, #tpu.memory_space<vmem>>, vector<8x288xbf16>
    tpu.vector_store %arg6[%c40, %c0_24], %16 {strides = array<i32>} : memref<72x288xbf16, #tpu.memory_space<vmem>>, vector<8x288xbf16>,
    %c0_25 = arith.constant 0 : index
    %c0_26 = arith.constant 0 : index
    %c0_27 = arith.constant 0 : index
    %c36 = arith.constant 36 : index
    %18 = vector.load %arg2[%c0_25, %c0_26, %c0_27, %c36] : memref<1x1x8x342xbf16, #tpu.memory_space<vmem>>, vector<1x1x8x288xbf16>
    %19 = vector.shape_cast %18 : vector<1x1x8x288xbf16> to vector<8x288xbf16>
    %c48 = arith.constant 48 : index
    %c0_28 = arith.constant 0 : index
    %20 = vector.load %arg6[%c48, %c0_28] : memref<72x288xbf16, #tpu.memory_space<vmem>>, vector<8x288xbf16>
    tpu.vector_store %arg6[%c48, %c0_28], %19 {strides = array<i32>} : memref<72x288xbf16, #tpu.memory_space<vmem>>, vector<8x288xbf16>,
    %c0_29 = arith.constant 0 : index
    %c0_30 = arith.constant 0 : index
    %c0_31 = arith.constant 0 : index
    %c37 = arith.constant 37 : index
    %21 = vector.load %arg2[%c0_29, %c0_30, %c0_31, %c37] : memref<1x1x8x342xbf16, #tpu.memory_space<vmem>>, vector<1x1x8x288xbf16>
    %22 = vector.shape_cast %21 : vector<1x1x8x288xbf16> to vector<8x288xbf16>
    %c56 = arith.constant 56 : index
    %c0_32 = arith.constant 0 : index
    %23 = vector.load %arg6[%c56, %c0_32] : memref<72x288xbf16, #tpu.memory_space<vmem>>, vector<8x288xbf16>
    tpu.vector_store %arg6[%c56, %c0_32], %22 {strides = array<i32>} : memref<72x288xbf16, #tpu.memory_space<vmem>>, vector<8x288xbf16>,
    %c0_33 = arith.constant 0 : index
    %c0_34 = arith.constant 0 : index
    %c0_35 = arith.constant 0 : index
    %c38 = arith.constant 38 : index
    %24 = vector.load %arg2[%c0_33, %c0_34, %c0_35, %c38] : memref<1x1x8x342xbf16, #tpu.memory_space<vmem>>, vector<1x1x8x288xbf16>
    %25 = vector.shape_cast %24 : vector<1x1x8x288xbf16> to vector<8x288xbf16>
    %c64 = arith.constant 64 : index
    %c0_36 = arith.constant 0 : index
    %26 = vector.load %arg6[%c64, %c0_36] : memref<72x288xbf16, #tpu.memory_space<vmem>>, vector<8x288xbf16>
    tpu.vector_store %arg6[%c64, %c0_36], %25 {strides = array<i32>} : memref<72x288xbf16, #tpu.memory_space<vmem>>, vector<8x288xbf16>,
    %c0_37 = arith.constant 0 : index
    %c0_38 = arith.constant 0 : index
    %27 = vector.load %arg3[%c0_37, %c0_38] : memref<8x72xbf16, #tpu.memory_space<vmem>>, vector<8x72xbf16>
    %c0_39 = arith.constant 0 : index
    %c0_40 = arith.constant 0 : index
    %28 = vector.load %arg6[%c0_39, %c0_40] : memref<72x288xbf16, #tpu.memory_space<vmem>>, vector<72x288xbf16>
    %cst = arith.constant dense<0.000000e+00> : vector<8x288xf32>
    %29 = tpu.matmul %27, %28, %cst {dimension_numbers = #tpu.dot_dimension_numbers<[1], [0], [0], [1], [0, 0, 1, 1], [], []>} : vector<8x72xbf16>, vector<72x288xbf16>, vector<8x288xf32> -> vector<8x288xf32>
    %c0_41 = arith.constant 0 : index
    %c0_42 = arith.constant 0 : index
    %30 = vector.load %arg4[%c0_41, %c0_42] : memref<8x1xf32, #tpu.memory_space<vmem>>, vector<8x1xf32>
    %31 = vector.broadcast %30 : vector<8x1xf32> to vector<8x288xf32>
    %32 = arith.addf %29, %31 : vector<8x288xf32>
    %cst_43 = arith.constant 0.000000e+00 : f32
    %33 = vector.broadcast %cst_43 : f32 to vector<8x288xf32>
    %34 = arith.maximumf %32, %33 : vector<8x288xf32>
    %35 = arith.truncf %34 : vector<8x288xf32> to vector<8x288xbf16>
    %c0_44 = arith.constant 0 : index
    %c0_45 = arith.constant 0 : index
    %c0_46 = arith.constant 0 : index
    %c0_47 = arith.constant 0 : index
    %36 = vector.load %arg5[%c0_44, %c0_45, %c0_46, %c0_47] : memref<1x1x8x288xbf16, #tpu.memory_space<vmem>>, vector<1x1x8x288xbf16>
    %37 = vector.shape_cast %36 : vector<1x1x8x288xbf16> to vector<8x288xbf16>
    %38 = vector.shape_cast %35 : vector<8x288xbf16> to vector<1x1x8x288xbf16>
    tpu.vector_store %arg5[%c0_44, %c0_45, %c0_46, %c0_47], %38 {strides = array<i32>} : memref<1x1x8x288xbf16, #tpu.memory_space<vmem>>, vector<1x1x8x288xbf16>,
    return
  }
  func.func @transform_0(%arg0: i32, %arg1: i32) -> (i32, i32, i32, i32) {
    %c0_i32 = arith.constant 0 : i32
    %c0_i32_0 = arith.constant 0 : i32
    %c0_i32_1 = arith.constant 0 : i32
    return %arg0, %arg1, %c0_i32, %c0_i32_0 : i32, i32, i32, i32
  }
  func.func @transform_1(%arg0: i32, %arg1: i32) -> (i32, i32) {
    %c0_i32 = arith.constant 0 : i32
    %c0_i32_0 = arith.constant 0 : i32
    %c0_i32_1 = arith.constant 0 : i32
    return %c0_i32, %c0_i32_0 : i32, i32
  }
  func.func @transform_2(%arg0: i32, %arg1: i32) -> (i32, i32) {
    %c0_i32 = arith.constant 0 : i32
    %c0_i32_0 = arith.constant 0 : i32
    %c0_i32_1 = arith.constant 0 : i32
    return %c0_i32, %c0_i32_0 : i32, i32
  }
  func.func @transform_3(%arg0: i32, %arg1: i32) -> (i32, i32, i32, i32) {
    %c0_i32 = arith.constant 0 : i32
    %c0_i32_0 = arith.constant 0 : i32
    %c0_i32_1 = arith.constant 0 : i32
    return %arg0, %arg1, %c0_i32, %c0_i32_0 : i32, i32, i32, i32
  }
}

module attributes {stable_mosaic.version = 11 : i64} {
  func.func @_conv3x3_kernel(%arg0: i32, %arg1: i32, %arg2: memref<1x1x8x110xbf16, #tpu.memory_space<vmem>>, %arg3: memref<16x72xbf16, #tpu.memory_space<vmem>>, %arg4: memref<16x1xf32, #tpu.memory_space<vmem>>, %arg5: memref<1x1x16x80xbf16, #tpu.memory_space<vmem>>, %arg6: memref<72x80xbf16, #tpu.memory_space<vmem>>) attributes {dimension_semantics = [#tpu.dimension_semantics<parallel>, #tpu.dimension_semantics<parallel>], iteration_bounds = array<i64: 2, 1>, scalar_prefetch = 0 : i64, scratch_operands = 1 : i64, tpu.core_type = #tpu.core_type<tc>, window_params = [{transform_indices = @transform_0, window_bounds = array<i64: 1, 1, 8, 110>}, {pipeline_mode = #tpu.pipeline_mode<synchronous>, transform_indices = @transform_1, window_bounds = array<i64: 16, 72>}, {pipeline_mode = #tpu.pipeline_mode<synchronous>, transform_indices = @transform_2, window_bounds = array<i64: 16, 1>}, {transform_indices = @transform_3, window_bounds = array<i64: 1, 1, 16, 80>}]} {
    %c0 = arith.constant 0 : index
    %c0_0 = arith.constant 0 : index
    %c0_1 = arith.constant 0 : index
    %c0_2 = arith.constant 0 : index
    %0 = vector.load %arg2[%c0, %c0_0, %c0_1, %c0_2] : memref<1x1x8x110xbf16, #tpu.memory_space<vmem>>, vector<1x1x8x80xbf16>
    %1 = vector.shape_cast %0 : vector<1x1x8x80xbf16> to vector<8x80xbf16>
    %c0_3 = arith.constant 0 : index
    %c0_4 = arith.constant 0 : index
    %2 = vector.load %arg6[%c0_3, %c0_4] : memref<72x80xbf16, #tpu.memory_space<vmem>>, vector<8x80xbf16>
    tpu.vector_store %arg6[%c0_3, %c0_4], %1 {strides = array<i32>} : memref<72x80xbf16, #tpu.memory_space<vmem>>, vector<8x80xbf16>,
    %c0_5 = arith.constant 0 : index
    %c0_6 = arith.constant 0 : index
    %c0_7 = arith.constant 0 : index
    %c1 = arith.constant 1 : index
    %3 = vector.load %arg2[%c0_5, %c0_6, %c0_7, %c1] : memref<1x1x8x110xbf16, #tpu.memory_space<vmem>>, vector<1x1x8x80xbf16>
    %4 = vector.shape_cast %3 : vector<1x1x8x80xbf16> to vector<8x80xbf16>
    %c8 = arith.constant 8 : index
    %c0_8 = arith.constant 0 : index
    %5 = vector.load %arg6[%c8, %c0_8] : memref<72x80xbf16, #tpu.memory_space<vmem>>, vector<8x80xbf16>
    tpu.vector_store %arg6[%c8, %c0_8], %4 {strides = array<i32>} : memref<72x80xbf16, #tpu.memory_space<vmem>>, vector<8x80xbf16>,
    %c0_9 = arith.constant 0 : index
    %c0_10 = arith.constant 0 : index
    %c0_11 = arith.constant 0 : index
    %c2 = arith.constant 2 : index
    %6 = vector.load %arg2[%c0_9, %c0_10, %c0_11, %c2] : memref<1x1x8x110xbf16, #tpu.memory_space<vmem>>, vector<1x1x8x80xbf16>
    %7 = vector.shape_cast %6 : vector<1x1x8x80xbf16> to vector<8x80xbf16>
    %c16 = arith.constant 16 : index
    %c0_12 = arith.constant 0 : index
    %8 = vector.load %arg6[%c16, %c0_12] : memref<72x80xbf16, #tpu.memory_space<vmem>>, vector<8x80xbf16>
    tpu.vector_store %arg6[%c16, %c0_12], %7 {strides = array<i32>} : memref<72x80xbf16, #tpu.memory_space<vmem>>, vector<8x80xbf16>,
    %c0_13 = arith.constant 0 : index
    %c0_14 = arith.constant 0 : index
    %c0_15 = arith.constant 0 : index
    %c10 = arith.constant 10 : index
    %9 = vector.load %arg2[%c0_13, %c0_14, %c0_15, %c10] : memref<1x1x8x110xbf16, #tpu.memory_space<vmem>>, vector<1x1x8x80xbf16>
    %10 = vector.shape_cast %9 : vector<1x1x8x80xbf16> to vector<8x80xbf16>
    %c24 = arith.constant 24 : index
    %c0_16 = arith.constant 0 : index
    %11 = vector.load %arg6[%c24, %c0_16] : memref<72x80xbf16, #tpu.memory_space<vmem>>, vector<8x80xbf16>
    tpu.vector_store %arg6[%c24, %c0_16], %10 {strides = array<i32>} : memref<72x80xbf16, #tpu.memory_space<vmem>>, vector<8x80xbf16>,
    %c0_17 = arith.constant 0 : index
    %c0_18 = arith.constant 0 : index
    %c0_19 = arith.constant 0 : index
    %c11 = arith.constant 11 : index
    %12 = vector.load %arg2[%c0_17, %c0_18, %c0_19, %c11] : memref<1x1x8x110xbf16, #tpu.memory_space<vmem>>, vector<1x1x8x80xbf16>
    %13 = vector.shape_cast %12 : vector<1x1x8x80xbf16> to vector<8x80xbf16>
    %c32 = arith.constant 32 : index
    %c0_20 = arith.constant 0 : index
    %14 = vector.load %arg6[%c32, %c0_20] : memref<72x80xbf16, #tpu.memory_space<vmem>>, vector<8x80xbf16>
    tpu.vector_store %arg6[%c32, %c0_20], %13 {strides = array<i32>} : memref<72x80xbf16, #tpu.memory_space<vmem>>, vector<8x80xbf16>,
    %c0_21 = arith.constant 0 : index
    %c0_22 = arith.constant 0 : index
    %c0_23 = arith.constant 0 : index
    %c12 = arith.constant 12 : index
    %15 = vector.load %arg2[%c0_21, %c0_22, %c0_23, %c12] : memref<1x1x8x110xbf16, #tpu.memory_space<vmem>>, vector<1x1x8x80xbf16>
    %16 = vector.shape_cast %15 : vector<1x1x8x80xbf16> to vector<8x80xbf16>
    %c40 = arith.constant 40 : index
    %c0_24 = arith.constant 0 : index
    %17 = vector.load %arg6[%c40, %c0_24] : memref<72x80xbf16, #tpu.memory_space<vmem>>, vector<8x80xbf16>
    tpu.vector_store %arg6[%c40, %c0_24], %16 {strides = array<i32>} : memref<72x80xbf16, #tpu.memory_space<vmem>>, vector<8x80xbf16>,
    %c0_25 = arith.constant 0 : index
    %c0_26 = arith.constant 0 : index
    %c0_27 = arith.constant 0 : index
    %c20 = arith.constant 20 : index
    %18 = vector.load %arg2[%c0_25, %c0_26, %c0_27, %c20] : memref<1x1x8x110xbf16, #tpu.memory_space<vmem>>, vector<1x1x8x80xbf16>
    %19 = vector.shape_cast %18 : vector<1x1x8x80xbf16> to vector<8x80xbf16>
    %c48 = arith.constant 48 : index
    %c0_28 = arith.constant 0 : index
    %20 = vector.load %arg6[%c48, %c0_28] : memref<72x80xbf16, #tpu.memory_space<vmem>>, vector<8x80xbf16>
    tpu.vector_store %arg6[%c48, %c0_28], %19 {strides = array<i32>} : memref<72x80xbf16, #tpu.memory_space<vmem>>, vector<8x80xbf16>,
    %c0_29 = arith.constant 0 : index
    %c0_30 = arith.constant 0 : index
    %c0_31 = arith.constant 0 : index
    %c21 = arith.constant 21 : index
    %21 = vector.load %arg2[%c0_29, %c0_30, %c0_31, %c21] : memref<1x1x8x110xbf16, #tpu.memory_space<vmem>>, vector<1x1x8x80xbf16>
    %22 = vector.shape_cast %21 : vector<1x1x8x80xbf16> to vector<8x80xbf16>
    %c56 = arith.constant 56 : index
    %c0_32 = arith.constant 0 : index
    %23 = vector.load %arg6[%c56, %c0_32] : memref<72x80xbf16, #tpu.memory_space<vmem>>, vector<8x80xbf16>
    tpu.vector_store %arg6[%c56, %c0_32], %22 {strides = array<i32>} : memref<72x80xbf16, #tpu.memory_space<vmem>>, vector<8x80xbf16>,
    %c0_33 = arith.constant 0 : index
    %c0_34 = arith.constant 0 : index
    %c0_35 = arith.constant 0 : index
    %c22 = arith.constant 22 : index
    %24 = vector.load %arg2[%c0_33, %c0_34, %c0_35, %c22] : memref<1x1x8x110xbf16, #tpu.memory_space<vmem>>, vector<1x1x8x80xbf16>
    %25 = vector.shape_cast %24 : vector<1x1x8x80xbf16> to vector<8x80xbf16>
    %c64 = arith.constant 64 : index
    %c0_36 = arith.constant 0 : index
    %26 = vector.load %arg6[%c64, %c0_36] : memref<72x80xbf16, #tpu.memory_space<vmem>>, vector<8x80xbf16>
    tpu.vector_store %arg6[%c64, %c0_36], %25 {strides = array<i32>} : memref<72x80xbf16, #tpu.memory_space<vmem>>, vector<8x80xbf16>,
    %c0_37 = arith.constant 0 : index
    %c0_38 = arith.constant 0 : index
    %27 = vector.load %arg3[%c0_37, %c0_38] : memref<16x72xbf16, #tpu.memory_space<vmem>>, vector<16x72xbf16>
    %c0_39 = arith.constant 0 : index
    %c0_40 = arith.constant 0 : index
    %28 = vector.load %arg6[%c0_39, %c0_40] : memref<72x80xbf16, #tpu.memory_space<vmem>>, vector<72x80xbf16>
    %cst = arith.constant dense<0.000000e+00> : vector<16x80xf32>
    %29 = tpu.matmul %27, %28, %cst {dimension_numbers = #tpu.dot_dimension_numbers<[1], [0], [0], [1], [0, 0, 1, 1], [], []>} : vector<16x72xbf16>, vector<72x80xbf16>, vector<16x80xf32> -> vector<16x80xf32>
    %c0_41 = arith.constant 0 : index
    %c0_42 = arith.constant 0 : index
    %30 = vector.load %arg4[%c0_41, %c0_42] : memref<16x1xf32, #tpu.memory_space<vmem>>, vector<16x1xf32>
    %31 = vector.broadcast %30 : vector<16x1xf32> to vector<16x80xf32>
    %32 = arith.addf %29, %31 : vector<16x80xf32>
    %cst_43 = arith.constant 0.000000e+00 : f32
    %33 = vector.broadcast %cst_43 : f32 to vector<16x80xf32>
    %34 = arith.maximumf %32, %33 : vector<16x80xf32>
    %35 = arith.truncf %34 : vector<16x80xf32> to vector<16x80xbf16>
    %c0_44 = arith.constant 0 : index
    %c0_45 = arith.constant 0 : index
    %c0_46 = arith.constant 0 : index
    %c0_47 = arith.constant 0 : index
    %36 = vector.load %arg5[%c0_44, %c0_45, %c0_46, %c0_47] : memref<1x1x16x80xbf16, #tpu.memory_space<vmem>>, vector<1x1x16x80xbf16>
    %37 = vector.shape_cast %36 : vector<1x1x16x80xbf16> to vector<16x80xbf16>
    %38 = vector.shape_cast %35 : vector<16x80xbf16> to vector<1x1x16x80xbf16>
    tpu.vector_store %arg5[%c0_44, %c0_45, %c0_46, %c0_47], %38 {strides = array<i32>} : memref<1x1x16x80xbf16, #tpu.memory_space<vmem>>, vector<1x1x16x80xbf16>,
    return
  }
  func.func @transform_0(%arg0: i32, %arg1: i32) -> (i32, i32, i32, i32) {
    %c0_i32 = arith.constant 0 : i32
    %c0_i32_0 = arith.constant 0 : i32
    %c0_i32_1 = arith.constant 0 : i32
    return %arg0, %arg1, %c0_i32, %c0_i32_0 : i32, i32, i32, i32
  }
  func.func @transform_1(%arg0: i32, %arg1: i32) -> (i32, i32) {
    %c0_i32 = arith.constant 0 : i32
    %c0_i32_0 = arith.constant 0 : i32
    %c0_i32_1 = arith.constant 0 : i32
    return %c0_i32, %c0_i32_0 : i32, i32
  }
  func.func @transform_2(%arg0: i32, %arg1: i32) -> (i32, i32) {
    %c0_i32 = arith.constant 0 : i32
    %c0_i32_0 = arith.constant 0 : i32
    %c0_i32_1 = arith.constant 0 : i32
    return %c0_i32, %c0_i32_0 : i32, i32
  }
  func.func @transform_3(%arg0: i32, %arg1: i32) -> (i32, i32, i32, i32) {
    %c0_i32 = arith.constant 0 : i32
    %c0_i32_0 = arith.constant 0 : i32
    %c0_i32_1 = arith.constant 0 : i32
    return %arg0, %arg1, %c0_i32, %c0_i32_0 : i32, i32, i32, i32
  }
}

module attributes {stable_mosaic.version = 11 : i64} {
  func.func @_conv3x3_kernel(%arg0: i32, %arg1: i32, %arg2: memref<1x1x16x110xbf16, #tpu.memory_space<vmem>>, %arg3: memref<16x144xbf16, #tpu.memory_space<vmem>>, %arg4: memref<16x1xf32, #tpu.memory_space<vmem>>, %arg5: memref<1x1x16x80xbf16, #tpu.memory_space<vmem>>, %arg6: memref<144x80xbf16, #tpu.memory_space<vmem>>) attributes {dimension_semantics = [#tpu.dimension_semantics<parallel>, #tpu.dimension_semantics<parallel>], iteration_bounds = array<i64: 2, 1>, scalar_prefetch = 0 : i64, scratch_operands = 1 : i64, tpu.core_type = #tpu.core_type<tc>, window_params = [{transform_indices = @transform_0, window_bounds = array<i64: 1, 1, 16, 110>}, {pipeline_mode = #tpu.pipeline_mode<synchronous>, transform_indices = @transform_1, window_bounds = array<i64: 16, 144>}, {pipeline_mode = #tpu.pipeline_mode<synchronous>, transform_indices = @transform_2, window_bounds = array<i64: 16, 1>}, {transform_indices = @transform_3, window_bounds = array<i64: 1, 1, 16, 80>}]} {
    %c0 = arith.constant 0 : index
    %c0_0 = arith.constant 0 : index
    %c0_1 = arith.constant 0 : index
    %c0_2 = arith.constant 0 : index
    %0 = vector.load %arg2[%c0, %c0_0, %c0_1, %c0_2] : memref<1x1x16x110xbf16, #tpu.memory_space<vmem>>, vector<1x1x16x80xbf16>
    %1 = vector.shape_cast %0 : vector<1x1x16x80xbf16> to vector<16x80xbf16>
    %c0_3 = arith.constant 0 : index
    %c0_4 = arith.constant 0 : index
    %2 = vector.load %arg6[%c0_3, %c0_4] : memref<144x80xbf16, #tpu.memory_space<vmem>>, vector<16x80xbf16>
    tpu.vector_store %arg6[%c0_3, %c0_4], %1 {strides = array<i32>} : memref<144x80xbf16, #tpu.memory_space<vmem>>, vector<16x80xbf16>,
    %c0_5 = arith.constant 0 : index
    %c0_6 = arith.constant 0 : index
    %c0_7 = arith.constant 0 : index
    %c1 = arith.constant 1 : index
    %3 = vector.load %arg2[%c0_5, %c0_6, %c0_7, %c1] : memref<1x1x16x110xbf16, #tpu.memory_space<vmem>>, vector<1x1x16x80xbf16>
    %4 = vector.shape_cast %3 : vector<1x1x16x80xbf16> to vector<16x80xbf16>
    %c16 = arith.constant 16 : index
    %c0_8 = arith.constant 0 : index
    %5 = vector.load %arg6[%c16, %c0_8] : memref<144x80xbf16, #tpu.memory_space<vmem>>, vector<16x80xbf16>
    tpu.vector_store %arg6[%c16, %c0_8], %4 {strides = array<i32>} : memref<144x80xbf16, #tpu.memory_space<vmem>>, vector<16x80xbf16>,
    %c0_9 = arith.constant 0 : index
    %c0_10 = arith.constant 0 : index
    %c0_11 = arith.constant 0 : index
    %c2 = arith.constant 2 : index
    %6 = vector.load %arg2[%c0_9, %c0_10, %c0_11, %c2] : memref<1x1x16x110xbf16, #tpu.memory_space<vmem>>, vector<1x1x16x80xbf16>
    %7 = vector.shape_cast %6 : vector<1x1x16x80xbf16> to vector<16x80xbf16>
    %c32 = arith.constant 32 : index
    %c0_12 = arith.constant 0 : index
    %8 = vector.load %arg6[%c32, %c0_12] : memref<144x80xbf16, #tpu.memory_space<vmem>>, vector<16x80xbf16>
    tpu.vector_store %arg6[%c32, %c0_12], %7 {strides = array<i32>} : memref<144x80xbf16, #tpu.memory_space<vmem>>, vector<16x80xbf16>,
    %c0_13 = arith.constant 0 : index
    %c0_14 = arith.constant 0 : index
    %c0_15 = arith.constant 0 : index
    %c10 = arith.constant 10 : index
    %9 = vector.load %arg2[%c0_13, %c0_14, %c0_15, %c10] : memref<1x1x16x110xbf16, #tpu.memory_space<vmem>>, vector<1x1x16x80xbf16>
    %10 = vector.shape_cast %9 : vector<1x1x16x80xbf16> to vector<16x80xbf16>
    %c48 = arith.constant 48 : index
    %c0_16 = arith.constant 0 : index
    %11 = vector.load %arg6[%c48, %c0_16] : memref<144x80xbf16, #tpu.memory_space<vmem>>, vector<16x80xbf16>
    tpu.vector_store %arg6[%c48, %c0_16], %10 {strides = array<i32>} : memref<144x80xbf16, #tpu.memory_space<vmem>>, vector<16x80xbf16>,
    %c0_17 = arith.constant 0 : index
    %c0_18 = arith.constant 0 : index
    %c0_19 = arith.constant 0 : index
    %c11 = arith.constant 11 : index
    %12 = vector.load %arg2[%c0_17, %c0_18, %c0_19, %c11] : memref<1x1x16x110xbf16, #tpu.memory_space<vmem>>, vector<1x1x16x80xbf16>
    %13 = vector.shape_cast %12 : vector<1x1x16x80xbf16> to vector<16x80xbf16>
    %c64 = arith.constant 64 : index
    %c0_20 = arith.constant 0 : index
    %14 = vector.load %arg6[%c64, %c0_20] : memref<144x80xbf16, #tpu.memory_space<vmem>>, vector<16x80xbf16>
    tpu.vector_store %arg6[%c64, %c0_20], %13 {strides = array<i32>} : memref<144x80xbf16, #tpu.memory_space<vmem>>, vector<16x80xbf16>,
    %c0_21 = arith.constant 0 : index
    %c0_22 = arith.constant 0 : index
    %c0_23 = arith.constant 0 : index
    %c12 = arith.constant 12 : index
    %15 = vector.load %arg2[%c0_21, %c0_22, %c0_23, %c12] : memref<1x1x16x110xbf16, #tpu.memory_space<vmem>>, vector<1x1x16x80xbf16>
    %16 = vector.shape_cast %15 : vector<1x1x16x80xbf16> to vector<16x80xbf16>
    %c80 = arith.constant 80 : index
    %c0_24 = arith.constant 0 : index
    %17 = vector.load %arg6[%c80, %c0_24] : memref<144x80xbf16, #tpu.memory_space<vmem>>, vector<16x80xbf16>
    tpu.vector_store %arg6[%c80, %c0_24], %16 {strides = array<i32>} : memref<144x80xbf16, #tpu.memory_space<vmem>>, vector<16x80xbf16>,
    %c0_25 = arith.constant 0 : index
    %c0_26 = arith.constant 0 : index
    %c0_27 = arith.constant 0 : index
    %c20 = arith.constant 20 : index
    %18 = vector.load %arg2[%c0_25, %c0_26, %c0_27, %c20] : memref<1x1x16x110xbf16, #tpu.memory_space<vmem>>, vector<1x1x16x80xbf16>
    %19 = vector.shape_cast %18 : vector<1x1x16x80xbf16> to vector<16x80xbf16>
    %c96 = arith.constant 96 : index
    %c0_28 = arith.constant 0 : index
    %20 = vector.load %arg6[%c96, %c0_28] : memref<144x80xbf16, #tpu.memory_space<vmem>>, vector<16x80xbf16>
    tpu.vector_store %arg6[%c96, %c0_28], %19 {strides = array<i32>} : memref<144x80xbf16, #tpu.memory_space<vmem>>, vector<16x80xbf16>,
    %c0_29 = arith.constant 0 : index
    %c0_30 = arith.constant 0 : index
    %c0_31 = arith.constant 0 : index
    %c21 = arith.constant 21 : index
    %21 = vector.load %arg2[%c0_29, %c0_30, %c0_31, %c21] : memref<1x1x16x110xbf16, #tpu.memory_space<vmem>>, vector<1x1x16x80xbf16>
    %22 = vector.shape_cast %21 : vector<1x1x16x80xbf16> to vector<16x80xbf16>
    %c112 = arith.constant 112 : index
    %c0_32 = arith.constant 0 : index
    %23 = vector.load %arg6[%c112, %c0_32] : memref<144x80xbf16, #tpu.memory_space<vmem>>, vector<16x80xbf16>
    tpu.vector_store %arg6[%c112, %c0_32], %22 {strides = array<i32>} : memref<144x80xbf16, #tpu.memory_space<vmem>>, vector<16x80xbf16>,
    %c0_33 = arith.constant 0 : index
    %c0_34 = arith.constant 0 : index
    %c0_35 = arith.constant 0 : index
    %c22 = arith.constant 22 : index
    %24 = vector.load %arg2[%c0_33, %c0_34, %c0_35, %c22] : memref<1x1x16x110xbf16, #tpu.memory_space<vmem>>, vector<1x1x16x80xbf16>
    %25 = vector.shape_cast %24 : vector<1x1x16x80xbf16> to vector<16x80xbf16>
    %c128 = arith.constant 128 : index
    %c0_36 = arith.constant 0 : index
    %26 = vector.load %arg6[%c128, %c0_36] : memref<144x80xbf16, #tpu.memory_space<vmem>>, vector<16x80xbf16>
    tpu.vector_store %arg6[%c128, %c0_36], %25 {strides = array<i32>} : memref<144x80xbf16, #tpu.memory_space<vmem>>, vector<16x80xbf16>,
    %c0_37 = arith.constant 0 : index
    %c0_38 = arith.constant 0 : index
    %27 = vector.load %arg3[%c0_37, %c0_38] : memref<16x144xbf16, #tpu.memory_space<vmem>>, vector<16x144xbf16>
    %c0_39 = arith.constant 0 : index
    %c0_40 = arith.constant 0 : index
    %28 = vector.load %arg6[%c0_39, %c0_40] : memref<144x80xbf16, #tpu.memory_space<vmem>>, vector<144x80xbf16>
    %cst = arith.constant dense<0.000000e+00> : vector<16x80xf32>
    %29 = tpu.matmul %27, %28, %cst {dimension_numbers = #tpu.dot_dimension_numbers<[1], [0], [0], [1], [0, 0, 1, 1], [], []>} : vector<16x144xbf16>, vector<144x80xbf16>, vector<16x80xf32> -> vector<16x80xf32>
    %c0_41 = arith.constant 0 : index
    %c0_42 = arith.constant 0 : index
    %30 = vector.load %arg4[%c0_41, %c0_42] : memref<16x1xf32, #tpu.memory_space<vmem>>, vector<16x1xf32>
    %31 = vector.broadcast %30 : vector<16x1xf32> to vector<16x80xf32>
    %32 = arith.addf %29, %31 : vector<16x80xf32>
    %cst_43 = arith.constant 0.000000e+00 : f32
    %33 = vector.broadcast %cst_43 : f32 to vector<16x80xf32>
    %34 = arith.maximumf %32, %33 : vector<16x80xf32>
    %35 = arith.truncf %34 : vector<16x80xf32> to vector<16x80xbf16>
    %c0_44 = arith.constant 0 : index
    %c0_45 = arith.constant 0 : index
    %c0_46 = arith.constant 0 : index
    %c0_47 = arith.constant 0 : index
    %36 = vector.load %arg5[%c0_44, %c0_45, %c0_46, %c0_47] : memref<1x1x16x80xbf16, #tpu.memory_space<vmem>>, vector<1x1x16x80xbf16>
    %37 = vector.shape_cast %36 : vector<1x1x16x80xbf16> to vector<16x80xbf16>
    %38 = vector.shape_cast %35 : vector<16x80xbf16> to vector<1x1x16x80xbf16>
    tpu.vector_store %arg5[%c0_44, %c0_45, %c0_46, %c0_47], %38 {strides = array<i32>} : memref<1x1x16x80xbf16, #tpu.memory_space<vmem>>, vector<1x1x16x80xbf16>,
    return
  }
  func.func @transform_0(%arg0: i32, %arg1: i32) -> (i32, i32, i32, i32) {
    %c0_i32 = arith.constant 0 : i32
    %c0_i32_0 = arith.constant 0 : i32
    %c0_i32_1 = arith.constant 0 : i32
    return %arg0, %arg1, %c0_i32, %c0_i32_0 : i32, i32, i32, i32
  }
  func.func @transform_1(%arg0: i32, %arg1: i32) -> (i32, i32) {
    %c0_i32 = arith.constant 0 : i32
    %c0_i32_0 = arith.constant 0 : i32
    %c0_i32_1 = arith.constant 0 : i32
    return %c0_i32, %c0_i32_0 : i32, i32
  }
  func.func @transform_2(%arg0: i32, %arg1: i32) -> (i32, i32) {
    %c0_i32 = arith.constant 0 : i32
    %c0_i32_0 = arith.constant 0 : i32
    %c0_i32_1 = arith.constant 0 : i32
    return %c0_i32, %c0_i32_0 : i32, i32
  }
  func.func @transform_3(%arg0: i32, %arg1: i32) -> (i32, i32, i32, i32) {
    %c0_i32 = arith.constant 0 : i32
    %c0_i32_0 = arith.constant 0 : i32
    %c0_i32_1 = arith.constant 0 : i32
    return %arg0, %arg1, %c0_i32, %c0_i32_0 : i32, i32, i32, i32
  }
}

module attributes {stable_mosaic.version = 11 : i64} {
  func.func @_conv3x3_kernel(%arg0: i32, %arg1: i32, %arg2: memref<1x1x16x42xbf16, #tpu.memory_space<vmem>>, %arg3: memref<32x144xbf16, #tpu.memory_space<vmem>>, %arg4: memref<32x1xf32, #tpu.memory_space<vmem>>, %arg5: memref<1x1x32x24xbf16, #tpu.memory_space<vmem>>, %arg6: memref<144x24xbf16, #tpu.memory_space<vmem>>) attributes {dimension_semantics = [#tpu.dimension_semantics<parallel>, #tpu.dimension_semantics<parallel>], iteration_bounds = array<i64: 2, 1>, scalar_prefetch = 0 : i64, scratch_operands = 1 : i64, tpu.core_type = #tpu.core_type<tc>, window_params = [{transform_indices = @transform_0, window_bounds = array<i64: 1, 1, 16, 42>}, {pipeline_mode = #tpu.pipeline_mode<synchronous>, transform_indices = @transform_1, window_bounds = array<i64: 32, 144>}, {pipeline_mode = #tpu.pipeline_mode<synchronous>, transform_indices = @transform_2, window_bounds = array<i64: 32, 1>}, {transform_indices = @transform_3, window_bounds = array<i64: 1, 1, 32, 24>}]} {
    %c0 = arith.constant 0 : index
    %c0_0 = arith.constant 0 : index
    %c0_1 = arith.constant 0 : index
    %c0_2 = arith.constant 0 : index
    %0 = vector.load %arg2[%c0, %c0_0, %c0_1, %c0_2] : memref<1x1x16x42xbf16, #tpu.memory_space<vmem>>, vector<1x1x16x24xbf16>
    %1 = vector.shape_cast %0 : vector<1x1x16x24xbf16> to vector<16x24xbf16>
    %c0_3 = arith.constant 0 : index
    %c0_4 = arith.constant 0 : index
    %2 = vector.load %arg6[%c0_3, %c0_4] : memref<144x24xbf16, #tpu.memory_space<vmem>>, vector<16x24xbf16>
    tpu.vector_store %arg6[%c0_3, %c0_4], %1 {strides = array<i32>} : memref<144x24xbf16, #tpu.memory_space<vmem>>, vector<16x24xbf16>,
    %c0_5 = arith.constant 0 : index
    %c0_6 = arith.constant 0 : index
    %c0_7 = arith.constant 0 : index
    %c1 = arith.constant 1 : index
    %3 = vector.load %arg2[%c0_5, %c0_6, %c0_7, %c1] : memref<1x1x16x42xbf16, #tpu.memory_space<vmem>>, vector<1x1x16x24xbf16>
    %4 = vector.shape_cast %3 : vector<1x1x16x24xbf16> to vector<16x24xbf16>
    %c16 = arith.constant 16 : index
    %c0_8 = arith.constant 0 : index
    %5 = vector.load %arg6[%c16, %c0_8] : memref<144x24xbf16, #tpu.memory_space<vmem>>, vector<16x24xbf16>
    tpu.vector_store %arg6[%c16, %c0_8], %4 {strides = array<i32>} : memref<144x24xbf16, #tpu.memory_space<vmem>>, vector<16x24xbf16>,
    %c0_9 = arith.constant 0 : index
    %c0_10 = arith.constant 0 : index
    %c0_11 = arith.constant 0 : index
    %c2 = arith.constant 2 : index
    %6 = vector.load %arg2[%c0_9, %c0_10, %c0_11, %c2] : memref<1x1x16x42xbf16, #tpu.memory_space<vmem>>, vector<1x1x16x24xbf16>
    %7 = vector.shape_cast %6 : vector<1x1x16x24xbf16> to vector<16x24xbf16>
    %c32 = arith.constant 32 : index
    %c0_12 = arith.constant 0 : index
    %8 = vector.load %arg6[%c32, %c0_12] : memref<144x24xbf16, #tpu.memory_space<vmem>>, vector<16x24xbf16>
    tpu.vector_store %arg6[%c32, %c0_12], %7 {strides = array<i32>} : memref<144x24xbf16, #tpu.memory_space<vmem>>, vector<16x24xbf16>,
    %c0_13 = arith.constant 0 : index
    %c0_14 = arith.constant 0 : index
    %c0_15 = arith.constant 0 : index
    %c6 = arith.constant 6 : index
    %9 = vector.load %arg2[%c0_13, %c0_14, %c0_15, %c6] : memref<1x1x16x42xbf16, #tpu.memory_space<vmem>>, vector<1x1x16x24xbf16>
    %10 = vector.shape_cast %9 : vector<1x1x16x24xbf16> to vector<16x24xbf16>
    %c48 = arith.constant 48 : index
    %c0_16 = arith.constant 0 : index
    %11 = vector.load %arg6[%c48, %c0_16] : memref<144x24xbf16, #tpu.memory_space<vmem>>, vector<16x24xbf16>
    tpu.vector_store %arg6[%c48, %c0_16], %10 {strides = array<i32>} : memref<144x24xbf16, #tpu.memory_space<vmem>>, vector<16x24xbf16>,
    %c0_17 = arith.constant 0 : index
    %c0_18 = arith.constant 0 : index
    %c0_19 = arith.constant 0 : index
    %c7 = arith.constant 7 : index
    %12 = vector.load %arg2[%c0_17, %c0_18, %c0_19, %c7] : memref<1x1x16x42xbf16, #tpu.memory_space<vmem>>, vector<1x1x16x24xbf16>
    %13 = vector.shape_cast %12 : vector<1x1x16x24xbf16> to vector<16x24xbf16>
    %c64 = arith.constant 64 : index
    %c0_20 = arith.constant 0 : index
    %14 = vector.load %arg6[%c64, %c0_20] : memref<144x24xbf16, #tpu.memory_space<vmem>>, vector<16x24xbf16>
    tpu.vector_store %arg6[%c64, %c0_20], %13 {strides = array<i32>} : memref<144x24xbf16, #tpu.memory_space<vmem>>, vector<16x24xbf16>,
    %c0_21 = arith.constant 0 : index
    %c0_22 = arith.constant 0 : index
    %c0_23 = arith.constant 0 : index
    %c8 = arith.constant 8 : index
    %15 = vector.load %arg2[%c0_21, %c0_22, %c0_23, %c8] : memref<1x1x16x42xbf16, #tpu.memory_space<vmem>>, vector<1x1x16x24xbf16>
    %16 = vector.shape_cast %15 : vector<1x1x16x24xbf16> to vector<16x24xbf16>
    %c80 = arith.constant 80 : index
    %c0_24 = arith.constant 0 : index
    %17 = vector.load %arg6[%c80, %c0_24] : memref<144x24xbf16, #tpu.memory_space<vmem>>, vector<16x24xbf16>
    tpu.vector_store %arg6[%c80, %c0_24], %16 {strides = array<i32>} : memref<144x24xbf16, #tpu.memory_space<vmem>>, vector<16x24xbf16>,
    %c0_25 = arith.constant 0 : index
    %c0_26 = arith.constant 0 : index
    %c0_27 = arith.constant 0 : index
    %c12 = arith.constant 12 : index
    %18 = vector.load %arg2[%c0_25, %c0_26, %c0_27, %c12] : memref<1x1x16x42xbf16, #tpu.memory_space<vmem>>, vector<1x1x16x24xbf16>
    %19 = vector.shape_cast %18 : vector<1x1x16x24xbf16> to vector<16x24xbf16>
    %c96 = arith.constant 96 : index
    %c0_28 = arith.constant 0 : index
    %20 = vector.load %arg6[%c96, %c0_28] : memref<144x24xbf16, #tpu.memory_space<vmem>>, vector<16x24xbf16>
    tpu.vector_store %arg6[%c96, %c0_28], %19 {strides = array<i32>} : memref<144x24xbf16, #tpu.memory_space<vmem>>, vector<16x24xbf16>,
    %c0_29 = arith.constant 0 : index
    %c0_30 = arith.constant 0 : index
    %c0_31 = arith.constant 0 : index
    %c13 = arith.constant 13 : index
    %21 = vector.load %arg2[%c0_29, %c0_30, %c0_31, %c13] : memref<1x1x16x42xbf16, #tpu.memory_space<vmem>>, vector<1x1x16x24xbf16>
    %22 = vector.shape_cast %21 : vector<1x1x16x24xbf16> to vector<16x24xbf16>
    %c112 = arith.constant 112 : index
    %c0_32 = arith.constant 0 : index
    %23 = vector.load %arg6[%c112, %c0_32] : memref<144x24xbf16, #tpu.memory_space<vmem>>, vector<16x24xbf16>
    tpu.vector_store %arg6[%c112, %c0_32], %22 {strides = array<i32>} : memref<144x24xbf16, #tpu.memory_space<vmem>>, vector<16x24xbf16>,
    %c0_33 = arith.constant 0 : index
    %c0_34 = arith.constant 0 : index
    %c0_35 = arith.constant 0 : index
    %c14 = arith.constant 14 : index
    %24 = vector.load %arg2[%c0_33, %c0_34, %c0_35, %c14] : memref<1x1x16x42xbf16, #tpu.memory_space<vmem>>, vector<1x1x16x24xbf16>
    %25 = vector.shape_cast %24 : vector<1x1x16x24xbf16> to vector<16x24xbf16>
    %c128 = arith.constant 128 : index
    %c0_36 = arith.constant 0 : index
    %26 = vector.load %arg6[%c128, %c0_36] : memref<144x24xbf16, #tpu.memory_space<vmem>>, vector<16x24xbf16>
    tpu.vector_store %arg6[%c128, %c0_36], %25 {strides = array<i32>} : memref<144x24xbf16, #tpu.memory_space<vmem>>, vector<16x24xbf16>,
    %c0_37 = arith.constant 0 : index
    %c0_38 = arith.constant 0 : index
    %27 = vector.load %arg3[%c0_37, %c0_38] : memref<32x144xbf16, #tpu.memory_space<vmem>>, vector<32x144xbf16>
    %c0_39 = arith.constant 0 : index
    %c0_40 = arith.constant 0 : index
    %28 = vector.load %arg6[%c0_39, %c0_40] : memref<144x24xbf16, #tpu.memory_space<vmem>>, vector<144x24xbf16>
    %cst = arith.constant dense<0.000000e+00> : vector<32x24xf32>
    %29 = tpu.matmul %27, %28, %cst {dimension_numbers = #tpu.dot_dimension_numbers<[1], [0], [0], [1], [0, 0, 1, 1], [], []>} : vector<32x144xbf16>, vector<144x24xbf16>, vector<32x24xf32> -> vector<32x24xf32>
    %c0_41 = arith.constant 0 : index
    %c0_42 = arith.constant 0 : index
    %30 = vector.load %arg4[%c0_41, %c0_42] : memref<32x1xf32, #tpu.memory_space<vmem>>, vector<32x1xf32>
    %31 = vector.broadcast %30 : vector<32x1xf32> to vector<32x24xf32>
    %32 = arith.addf %29, %31 : vector<32x24xf32>
    %cst_43 = arith.constant 0.000000e+00 : f32
    %33 = vector.broadcast %cst_43 : f32 to vector<32x24xf32>
    %34 = arith.maximumf %32, %33 : vector<32x24xf32>
    %35 = arith.truncf %34 : vector<32x24xf32> to vector<32x24xbf16>
    %c0_44 = arith.constant 0 : index
    %c0_45 = arith.constant 0 : index
    %c0_46 = arith.constant 0 : index
    %c0_47 = arith.constant 0 : index
    %36 = vector.load %arg5[%c0_44, %c0_45, %c0_46, %c0_47] : memref<1x1x32x24xbf16, #tpu.memory_space<vmem>>, vector<1x1x32x24xbf16>
    %37 = vector.shape_cast %36 : vector<1x1x32x24xbf16> to vector<32x24xbf16>
    %38 = vector.shape_cast %35 : vector<32x24xbf16> to vector<1x1x32x24xbf16>
    tpu.vector_store %arg5[%c0_44, %c0_45, %c0_46, %c0_47], %38 {strides = array<i32>} : memref<1x1x32x24xbf16, #tpu.memory_space<vmem>>, vector<1x1x32x24xbf16>,
    return
  }
  func.func @transform_0(%arg0: i32, %arg1: i32) -> (i32, i32, i32, i32) {
    %c0_i32 = arith.constant 0 : i32
    %c0_i32_0 = arith.constant 0 : i32
    %c0_i32_1 = arith.constant 0 : i32
    return %arg0, %arg1, %c0_i32, %c0_i32_0 : i32, i32, i32, i32
  }
  func.func @transform_1(%arg0: i32, %arg1: i32) -> (i32, i32) {
    %c0_i32 = arith.constant 0 : i32
    %c0_i32_0 = arith.constant 0 : i32
    %c0_i32_1 = arith.constant 0 : i32
    return %c0_i32, %c0_i32_0 : i32, i32
  }
  func.func @transform_2(%arg0: i32, %arg1: i32) -> (i32, i32) {
    %c0_i32 = arith.constant 0 : i32
    %c0_i32_0 = arith.constant 0 : i32
    %c0_i32_1 = arith.constant 0 : i32
    return %c0_i32, %c0_i32_0 : i32, i32
  }
  func.func @transform_3(%arg0: i32, %arg1: i32) -> (i32, i32, i32, i32) {
    %c0_i32 = arith.constant 0 : i32
    %c0_i32_0 = arith.constant 0 : i32
    %c0_i32_1 = arith.constant 0 : i32
    return %arg0, %arg1, %c0_i32, %c0_i32_0 : i32, i32, i32, i32
  }
}

module attributes {stable_mosaic.version = 11 : i64} {
  func.func @_conv3x3_kernel(%arg0: i32, %arg1: i32, %arg2: memref<1x1x32x42xbf16, #tpu.memory_space<vmem>>, %arg3: memref<32x288xbf16, #tpu.memory_space<vmem>>, %arg4: memref<32x1xf32, #tpu.memory_space<vmem>>, %arg5: memref<1x1x32x24xbf16, #tpu.memory_space<vmem>>, %arg6: memref<288x24xbf16, #tpu.memory_space<vmem>>) attributes {dimension_semantics = [#tpu.dimension_semantics<parallel>, #tpu.dimension_semantics<parallel>], iteration_bounds = array<i64: 2, 1>, scalar_prefetch = 0 : i64, scratch_operands = 1 : i64, tpu.core_type = #tpu.core_type<tc>, window_params = [{transform_indices = @transform_0, window_bounds = array<i64: 1, 1, 32, 42>}, {pipeline_mode = #tpu.pipeline_mode<synchronous>, transform_indices = @transform_1, window_bounds = array<i64: 32, 288>}, {pipeline_mode = #tpu.pipeline_mode<synchronous>, transform_indices = @transform_2, window_bounds = array<i64: 32, 1>}, {transform_indices = @transform_3, window_bounds = array<i64: 1, 1, 32, 24>}]} {
    %c0 = arith.constant 0 : index
    %c0_0 = arith.constant 0 : index
    %c0_1 = arith.constant 0 : index
    %c0_2 = arith.constant 0 : index
    %0 = vector.load %arg2[%c0, %c0_0, %c0_1, %c0_2] : memref<1x1x32x42xbf16, #tpu.memory_space<vmem>>, vector<1x1x32x24xbf16>
    %1 = vector.shape_cast %0 : vector<1x1x32x24xbf16> to vector<32x24xbf16>
    %c0_3 = arith.constant 0 : index
    %c0_4 = arith.constant 0 : index
    %2 = vector.load %arg6[%c0_3, %c0_4] : memref<288x24xbf16, #tpu.memory_space<vmem>>, vector<32x24xbf16>
    tpu.vector_store %arg6[%c0_3, %c0_4], %1 {strides = array<i32>} : memref<288x24xbf16, #tpu.memory_space<vmem>>, vector<32x24xbf16>,
    %c0_5 = arith.constant 0 : index
    %c0_6 = arith.constant 0 : index
    %c0_7 = arith.constant 0 : index
    %c1 = arith.constant 1 : index
    %3 = vector.load %arg2[%c0_5, %c0_6, %c0_7, %c1] : memref<1x1x32x42xbf16, #tpu.memory_space<vmem>>, vector<1x1x32x24xbf16>
    %4 = vector.shape_cast %3 : vector<1x1x32x24xbf16> to vector<32x24xbf16>
    %c32 = arith.constant 32 : index
    %c0_8 = arith.constant 0 : index
    %5 = vector.load %arg6[%c32, %c0_8] : memref<288x24xbf16, #tpu.memory_space<vmem>>, vector<32x24xbf16>
    tpu.vector_store %arg6[%c32, %c0_8], %4 {strides = array<i32>} : memref<288x24xbf16, #tpu.memory_space<vmem>>, vector<32x24xbf16>,
    %c0_9 = arith.constant 0 : index
    %c0_10 = arith.constant 0 : index
    %c0_11 = arith.constant 0 : index
    %c2 = arith.constant 2 : index
    %6 = vector.load %arg2[%c0_9, %c0_10, %c0_11, %c2] : memref<1x1x32x42xbf16, #tpu.memory_space<vmem>>, vector<1x1x32x24xbf16>
    %7 = vector.shape_cast %6 : vector<1x1x32x24xbf16> to vector<32x24xbf16>
    %c64 = arith.constant 64 : index
    %c0_12 = arith.constant 0 : index
    %8 = vector.load %arg6[%c64, %c0_12] : memref<288x24xbf16, #tpu.memory_space<vmem>>, vector<32x24xbf16>
    tpu.vector_store %arg6[%c64, %c0_12], %7 {strides = array<i32>} : memref<288x24xbf16, #tpu.memory_space<vmem>>, vector<32x24xbf16>,
    %c0_13 = arith.constant 0 : index
    %c0_14 = arith.constant 0 : index
    %c0_15 = arith.constant 0 : index
    %c6 = arith.constant 6 : index
    %9 = vector.load %arg2[%c0_13, %c0_14, %c0_15, %c6] : memref<1x1x32x42xbf16, #tpu.memory_space<vmem>>, vector<1x1x32x24xbf16>
    %10 = vector.shape_cast %9 : vector<1x1x32x24xbf16> to vector<32x24xbf16>
    %c96 = arith.constant 96 : index
    %c0_16 = arith.constant 0 : index
    %11 = vector.load %arg6[%c96, %c0_16] : memref<288x24xbf16, #tpu.memory_space<vmem>>, vector<32x24xbf16>
    tpu.vector_store %arg6[%c96, %c0_16], %10 {strides = array<i32>} : memref<288x24xbf16, #tpu.memory_space<vmem>>, vector<32x24xbf16>,
    %c0_17 = arith.constant 0 : index
    %c0_18 = arith.constant 0 : index
    %c0_19 = arith.constant 0 : index
    %c7 = arith.constant 7 : index
    %12 = vector.load %arg2[%c0_17, %c0_18, %c0_19, %c7] : memref<1x1x32x42xbf16, #tpu.memory_space<vmem>>, vector<1x1x32x24xbf16>
    %13 = vector.shape_cast %12 : vector<1x1x32x24xbf16> to vector<32x24xbf16>
    %c128 = arith.constant 128 : index
    %c0_20 = arith.constant 0 : index
    %14 = vector.load %arg6[%c128, %c0_20] : memref<288x24xbf16, #tpu.memory_space<vmem>>, vector<32x24xbf16>
    tpu.vector_store %arg6[%c128, %c0_20], %13 {strides = array<i32>} : memref<288x24xbf16, #tpu.memory_space<vmem>>, vector<32x24xbf16>,
    %c0_21 = arith.constant 0 : index
    %c0_22 = arith.constant 0 : index
    %c0_23 = arith.constant 0 : index
    %c8 = arith.constant 8 : index
    %15 = vector.load %arg2[%c0_21, %c0_22, %c0_23, %c8] : memref<1x1x32x42xbf16, #tpu.memory_space<vmem>>, vector<1x1x32x24xbf16>
    %16 = vector.shape_cast %15 : vector<1x1x32x24xbf16> to vector<32x24xbf16>
    %c160 = arith.constant 160 : index
    %c0_24 = arith.constant 0 : index
    %17 = vector.load %arg6[%c160, %c0_24] : memref<288x24xbf16, #tpu.memory_space<vmem>>, vector<32x24xbf16>
    tpu.vector_store %arg6[%c160, %c0_24], %16 {strides = array<i32>} : memref<288x24xbf16, #tpu.memory_space<vmem>>, vector<32x24xbf16>,
    %c0_25 = arith.constant 0 : index
    %c0_26 = arith.constant 0 : index
    %c0_27 = arith.constant 0 : index
    %c12 = arith.constant 12 : index
    %18 = vector.load %arg2[%c0_25, %c0_26, %c0_27, %c12] : memref<1x1x32x42xbf16, #tpu.memory_space<vmem>>, vector<1x1x32x24xbf16>
    %19 = vector.shape_cast %18 : vector<1x1x32x24xbf16> to vector<32x24xbf16>
    %c192 = arith.constant 192 : index
    %c0_28 = arith.constant 0 : index
    %20 = vector.load %arg6[%c192, %c0_28] : memref<288x24xbf16, #tpu.memory_space<vmem>>, vector<32x24xbf16>
    tpu.vector_store %arg6[%c192, %c0_28], %19 {strides = array<i32>} : memref<288x24xbf16, #tpu.memory_space<vmem>>, vector<32x24xbf16>,
    %c0_29 = arith.constant 0 : index
    %c0_30 = arith.constant 0 : index
    %c0_31 = arith.constant 0 : index
    %c13 = arith.constant 13 : index
    %21 = vector.load %arg2[%c0_29, %c0_30, %c0_31, %c13] : memref<1x1x32x42xbf16, #tpu.memory_space<vmem>>, vector<1x1x32x24xbf16>
    %22 = vector.shape_cast %21 : vector<1x1x32x24xbf16> to vector<32x24xbf16>
    %c224 = arith.constant 224 : index
    %c0_32 = arith.constant 0 : index
    %23 = vector.load %arg6[%c224, %c0_32] : memref<288x24xbf16, #tpu.memory_space<vmem>>, vector<32x24xbf16>
    tpu.vector_store %arg6[%c224, %c0_32], %22 {strides = array<i32>} : memref<288x24xbf16, #tpu.memory_space<vmem>>, vector<32x24xbf16>,
    %c0_33 = arith.constant 0 : index
    %c0_34 = arith.constant 0 : index
    %c0_35 = arith.constant 0 : index
    %c14 = arith.constant 14 : index
    %24 = vector.load %arg2[%c0_33, %c0_34, %c0_35, %c14] : memref<1x1x32x42xbf16, #tpu.memory_space<vmem>>, vector<1x1x32x24xbf16>
    %25 = vector.shape_cast %24 : vector<1x1x32x24xbf16> to vector<32x24xbf16>
    %c256 = arith.constant 256 : index
    %c0_36 = arith.constant 0 : index
    %26 = vector.load %arg6[%c256, %c0_36] : memref<288x24xbf16, #tpu.memory_space<vmem>>, vector<32x24xbf16>
    tpu.vector_store %arg6[%c256, %c0_36], %25 {strides = array<i32>} : memref<288x24xbf16, #tpu.memory_space<vmem>>, vector<32x24xbf16>,
    %c0_37 = arith.constant 0 : index
    %c0_38 = arith.constant 0 : index
    %27 = vector.load %arg3[%c0_37, %c0_38] : memref<32x288xbf16, #tpu.memory_space<vmem>>, vector<32x288xbf16>
    %c0_39 = arith.constant 0 : index
    %c0_40 = arith.constant 0 : index
    %28 = vector.load %arg6[%c0_39, %c0_40] : memref<288x24xbf16, #tpu.memory_space<vmem>>, vector<288x24xbf16>
    %cst = arith.constant dense<0.000000e+00> : vector<32x24xf32>
    %29 = tpu.matmul %27, %28, %cst {dimension_numbers = #tpu.dot_dimension_numbers<[1], [0], [0], [1], [0, 0, 1, 1], [], []>} : vector<32x288xbf16>, vector<288x24xbf16>, vector<32x24xf32> -> vector<32x24xf32>
    %c0_41 = arith.constant 0 : index
    %c0_42 = arith.constant 0 : index
    %30 = vector.load %arg4[%c0_41, %c0_42] : memref<32x1xf32, #tpu.memory_space<vmem>>, vector<32x1xf32>
    %31 = vector.broadcast %30 : vector<32x1xf32> to vector<32x24xf32>
    %32 = arith.addf %29, %31 : vector<32x24xf32>
    %cst_43 = arith.constant 0.000000e+00 : f32
    %33 = vector.broadcast %cst_43 : f32 to vector<32x24xf32>
    %34 = arith.maximumf %32, %33 : vector<32x24xf32>
    %35 = arith.truncf %34 : vector<32x24xf32> to vector<32x24xbf16>
    %c0_44 = arith.constant 0 : index
    %c0_45 = arith.constant 0 : index
    %c0_46 = arith.constant 0 : index
    %c0_47 = arith.constant 0 : index
    %36 = vector.load %arg5[%c0_44, %c0_45, %c0_46, %c0_47] : memref<1x1x32x24xbf16, #tpu.memory_space<vmem>>, vector<1x1x32x24xbf16>
    %37 = vector.shape_cast %36 : vector<1x1x32x24xbf16> to vector<32x24xbf16>
    %38 = vector.shape_cast %35 : vector<32x24xbf16> to vector<1x1x32x24xbf16>
    tpu.vector_store %arg5[%c0_44, %c0_45, %c0_46, %c0_47], %38 {strides = array<i32>} : memref<1x1x32x24xbf16, #tpu.memory_space<vmem>>, vector<1x1x32x24xbf16>,
    return
  }
  func.func @transform_0(%arg0: i32, %arg1: i32) -> (i32, i32, i32, i32) {
    %c0_i32 = arith.constant 0 : i32
    %c0_i32_0 = arith.constant 0 : i32
    %c0_i32_1 = arith.constant 0 : i32
    return %arg0, %arg1, %c0_i32, %c0_i32_0 : i32, i32, i32, i32
  }
  func.func @transform_1(%arg0: i32, %arg1: i32) -> (i32, i32) {
    %c0_i32 = arith.constant 0 : i32
    %c0_i32_0 = arith.constant 0 : i32
    %c0_i32_1 = arith.constant 0 : i32
    return %c0_i32, %c0_i32_0 : i32, i32
  }
  func.func @transform_2(%arg0: i32, %arg1: i32) -> (i32, i32) {
    %c0_i32 = arith.constant 0 : i32
    %c0_i32_0 = arith.constant 0 : i32
    %c0_i32_1 = arith.constant 0 : i32
    return %c0_i32, %c0_i32_0 : i32, i32
  }
  func.func @transform_3(%arg0: i32, %arg1: i32) -> (i32, i32, i32, i32) {
    %c0_i32 = arith.constant 0 : i32
    %c0_i32_0 = arith.constant 0 : i32
    %c0_i32_1 = arith.constant 0 : i32
    return %arg0, %arg1, %c0_i32, %c0_i32_0 : i32, i32, i32, i32
  }
}

module attributes {stable_mosaic.version = 11 : i64} {
  func.func @_matmul_kernel(%arg0: i32, %arg1: i32, %arg2: memref<1x32x16xbf16, #tpu.memory_space<vmem>>, %arg3: memref<64x32xbf16, #tpu.memory_space<vmem>>, %arg4: memref<64x1xf32, #tpu.memory_space<vmem>>, %arg5: memref<1x64x16xbf16, #tpu.memory_space<vmem>>) attributes {dimension_semantics = [#tpu.dimension_semantics<parallel>, #tpu.dimension_semantics<parallel>], iteration_bounds = array<i64: 2, 1>, scalar_prefetch = 0 : i64, scratch_operands = 0 : i64, tpu.core_type = #tpu.core_type<tc>, window_params = [{transform_indices = @transform_0, window_bounds = array<i64: 1, 32, 16>}, {pipeline_mode = #tpu.pipeline_mode<synchronous>, transform_indices = @transform_1, window_bounds = array<i64: 64, 32>}, {pipeline_mode = #tpu.pipeline_mode<synchronous>, transform_indices = @transform_2, window_bounds = array<i64: 64, 1>}, {transform_indices = @transform_3, window_bounds = array<i64: 1, 64, 16>}]} {
    %c0 = arith.constant 0 : index
    %c0_0 = arith.constant 0 : index
    %0 = vector.load %arg3[%c0, %c0_0] : memref<64x32xbf16, #tpu.memory_space<vmem>>, vector<64x32xbf16>
    %c0_1 = arith.constant 0 : index
    %c0_2 = arith.constant 0 : index
    %c0_3 = arith.constant 0 : index
    %1 = vector.load %arg2[%c0_1, %c0_2, %c0_3] : memref<1x32x16xbf16, #tpu.memory_space<vmem>>, vector<1x32x16xbf16>
    %2 = vector.shape_cast %1 : vector<1x32x16xbf16> to vector<32x16xbf16>
    %cst = arith.constant dense<0.000000e+00> : vector<64x16xf32>
    %3 = tpu.matmul %0, %2, %cst {dimension_numbers = #tpu.dot_dimension_numbers<[1], [0], [0], [1], [0, 0, 1, 1], [], []>} : vector<64x32xbf16>, vector<32x16xbf16>, vector<64x16xf32> -> vector<64x16xf32>
    %c0_4 = arith.constant 0 : index
    %c0_5 = arith.constant 0 : index
    %4 = vector.load %arg4[%c0_4, %c0_5] : memref<64x1xf32, #tpu.memory_space<vmem>>, vector<64x1xf32>
    %5 = vector.broadcast %4 : vector<64x1xf32> to vector<64x16xf32>
    %6 = arith.addf %3, %5 : vector<64x16xf32>
    %7 = arith.truncf %6 : vector<64x16xf32> to vector<64x16xbf16>
    %c0_6 = arith.constant 0 : index
    %c0_7 = arith.constant 0 : index
    %c0_8 = arith.constant 0 : index
    %8 = vector.load %arg5[%c0_6, %c0_7, %c0_8] : memref<1x64x16xbf16, #tpu.memory_space<vmem>>, vector<1x64x16xbf16>
    %9 = vector.shape_cast %8 : vector<1x64x16xbf16> to vector<64x16xbf16>
    %10 = vector.shape_cast %7 : vector<64x16xbf16> to vector<1x64x16xbf16>
    tpu.vector_store %arg5[%c0_6, %c0_7, %c0_8], %10 {strides = array<i32>} : memref<1x64x16xbf16, #tpu.memory_space<vmem>>, vector<1x64x16xbf16>,
    return
  }
  func.func @transform_0(%arg0: i32, %arg1: i32) -> (i32, i32, i32) {
    %c0_i32 = arith.constant 0 : i32
    %c0_i32_0 = arith.constant 0 : i32
    return %arg0, %c0_i32, %arg1 : i32, i32, i32
  }
  func.func @transform_1(%arg0: i32, %arg1: i32) -> (i32, i32) {
    %c0_i32 = arith.constant 0 : i32
    %c0_i32_0 = arith.constant 0 : i32
    %c0_i32_1 = arith.constant 0 : i32
    return %c0_i32, %c0_i32_0 : i32, i32
  }
  func.func @transform_2(%arg0: i32, %arg1: i32) -> (i32, i32) {
    %c0_i32 = arith.constant 0 : i32
    %c0_i32_0 = arith.constant 0 : i32
    %c0_i32_1 = arith.constant 0 : i32
    return %c0_i32, %c0_i32_0 : i32, i32
  }
  func.func @transform_3(%arg0: i32, %arg1: i32) -> (i32, i32, i32) {
    %c0_i32 = arith.constant 0 : i32
    %c0_i32_0 = arith.constant 0 : i32
    return %arg0, %c0_i32, %arg1 : i32, i32, i32
  }
}

module attributes {stable_mosaic.version = 11 : i64} {
  func.func @_conv3x3_kernel(%arg0: i32, %arg1: i32, %arg2: memref<1x1x16x110xbf16, #tpu.memory_space<vmem>>, %arg3: memref<1x1x16x110xbf16, #tpu.memory_space<vmem>>, %arg4: memref<16x288xbf16, #tpu.memory_space<vmem>>, %arg5: memref<16x1xf32, #tpu.memory_space<vmem>>, %arg6: memref<1x1x16x80xbf16, #tpu.memory_space<vmem>>, %arg7: memref<288x80xbf16, #tpu.memory_space<vmem>>) attributes {dimension_semantics = [#tpu.dimension_semantics<parallel>, #tpu.dimension_semantics<parallel>], iteration_bounds = array<i64: 2, 1>, scalar_prefetch = 0 : i64, scratch_operands = 1 : i64, tpu.core_type = #tpu.core_type<tc>, window_params = [{transform_indices = @transform_0, window_bounds = array<i64: 1, 1, 16, 110>}, {transform_indices = @transform_1, window_bounds = array<i64: 1, 1, 16, 110>}, {pipeline_mode = #tpu.pipeline_mode<synchronous>, transform_indices = @transform_2, window_bounds = array<i64: 16, 288>}, {pipeline_mode = #tpu.pipeline_mode<synchronous>, transform_indices = @transform_3, window_bounds = array<i64: 16, 1>}, {transform_indices = @transform_4, window_bounds = array<i64: 1, 1, 16, 80>}]} {
    %c0 = arith.constant 0 : index
    %c0_0 = arith.constant 0 : index
    %c0_1 = arith.constant 0 : index
    %c0_2 = arith.constant 0 : index
    %0 = vector.load %arg2[%c0, %c0_0, %c0_1, %c0_2] : memref<1x1x16x110xbf16, #tpu.memory_space<vmem>>, vector<1x1x16x80xbf16>
    %1 = vector.shape_cast %0 : vector<1x1x16x80xbf16> to vector<16x80xbf16>
    %c0_3 = arith.constant 0 : index
    %c0_4 = arith.constant 0 : index
    %2 = vector.load %arg7[%c0_3, %c0_4] : memref<288x80xbf16, #tpu.memory_space<vmem>>, vector<16x80xbf16>
    tpu.vector_store %arg7[%c0_3, %c0_4], %1 {strides = array<i32>} : memref<288x80xbf16, #tpu.memory_space<vmem>>, vector<16x80xbf16>,
    %c0_5 = arith.constant 0 : index
    %c0_6 = arith.constant 0 : index
    %c0_7 = arith.constant 0 : index
    %c1 = arith.constant 1 : index
    %3 = vector.load %arg2[%c0_5, %c0_6, %c0_7, %c1] : memref<1x1x16x110xbf16, #tpu.memory_space<vmem>>, vector<1x1x16x80xbf16>
    %4 = vector.shape_cast %3 : vector<1x1x16x80xbf16> to vector<16x80xbf16>
    %c16 = arith.constant 16 : index
    %c0_8 = arith.constant 0 : index
    %5 = vector.load %arg7[%c16, %c0_8] : memref<288x80xbf16, #tpu.memory_space<vmem>>, vector<16x80xbf16>
    tpu.vector_store %arg7[%c16, %c0_8], %4 {strides = array<i32>} : memref<288x80xbf16, #tpu.memory_space<vmem>>, vector<16x80xbf16>,
    %c0_9 = arith.constant 0 : index
    %c0_10 = arith.constant 0 : index
    %c0_11 = arith.constant 0 : index
    %c2 = arith.constant 2 : index
    %6 = vector.load %arg2[%c0_9, %c0_10, %c0_11, %c2] : memref<1x1x16x110xbf16, #tpu.memory_space<vmem>>, vector<1x1x16x80xbf16>
    %7 = vector.shape_cast %6 : vector<1x1x16x80xbf16> to vector<16x80xbf16>
    %c32 = arith.constant 32 : index
    %c0_12 = arith.constant 0 : index
    %8 = vector.load %arg7[%c32, %c0_12] : memref<288x80xbf16, #tpu.memory_space<vmem>>, vector<16x80xbf16>
    tpu.vector_store %arg7[%c32, %c0_12], %7 {strides = array<i32>} : memref<288x80xbf16, #tpu.memory_space<vmem>>, vector<16x80xbf16>,
    %c0_13 = arith.constant 0 : index
    %c0_14 = arith.constant 0 : index
    %c0_15 = arith.constant 0 : index
    %c10 = arith.constant 10 : index
    %9 = vector.load %arg2[%c0_13, %c0_14, %c0_15, %c10] : memref<1x1x16x110xbf16, #tpu.memory_space<vmem>>, vector<1x1x16x80xbf16>
    %10 = vector.shape_cast %9 : vector<1x1x16x80xbf16> to vector<16x80xbf16>
    %c48 = arith.constant 48 : index
    %c0_16 = arith.constant 0 : index
    %11 = vector.load %arg7[%c48, %c0_16] : memref<288x80xbf16, #tpu.memory_space<vmem>>, vector<16x80xbf16>
    tpu.vector_store %arg7[%c48, %c0_16], %10 {strides = array<i32>} : memref<288x80xbf16, #tpu.memory_space<vmem>>, vector<16x80xbf16>,
    %c0_17 = arith.constant 0 : index
    %c0_18 = arith.constant 0 : index
    %c0_19 = arith.constant 0 : index
    %c11 = arith.constant 11 : index
    %12 = vector.load %arg2[%c0_17, %c0_18, %c0_19, %c11] : memref<1x1x16x110xbf16, #tpu.memory_space<vmem>>, vector<1x1x16x80xbf16>
    %13 = vector.shape_cast %12 : vector<1x1x16x80xbf16> to vector<16x80xbf16>
    %c64 = arith.constant 64 : index
    %c0_20 = arith.constant 0 : index
    %14 = vector.load %arg7[%c64, %c0_20] : memref<288x80xbf16, #tpu.memory_space<vmem>>, vector<16x80xbf16>
    tpu.vector_store %arg7[%c64, %c0_20], %13 {strides = array<i32>} : memref<288x80xbf16, #tpu.memory_space<vmem>>, vector<16x80xbf16>,
    %c0_21 = arith.constant 0 : index
    %c0_22 = arith.constant 0 : index
    %c0_23 = arith.constant 0 : index
    %c12 = arith.constant 12 : index
    %15 = vector.load %arg2[%c0_21, %c0_22, %c0_23, %c12] : memref<1x1x16x110xbf16, #tpu.memory_space<vmem>>, vector<1x1x16x80xbf16>
    %16 = vector.shape_cast %15 : vector<1x1x16x80xbf16> to vector<16x80xbf16>
    %c80 = arith.constant 80 : index
    %c0_24 = arith.constant 0 : index
    %17 = vector.load %arg7[%c80, %c0_24] : memref<288x80xbf16, #tpu.memory_space<vmem>>, vector<16x80xbf16>
    tpu.vector_store %arg7[%c80, %c0_24], %16 {strides = array<i32>} : memref<288x80xbf16, #tpu.memory_space<vmem>>, vector<16x80xbf16>,
    %c0_25 = arith.constant 0 : index
    %c0_26 = arith.constant 0 : index
    %c0_27 = arith.constant 0 : index
    %c20 = arith.constant 20 : index
    %18 = vector.load %arg2[%c0_25, %c0_26, %c0_27, %c20] : memref<1x1x16x110xbf16, #tpu.memory_space<vmem>>, vector<1x1x16x80xbf16>
    %19 = vector.shape_cast %18 : vector<1x1x16x80xbf16> to vector<16x80xbf16>
    %c96 = arith.constant 96 : index
    %c0_28 = arith.constant 0 : index
    %20 = vector.load %arg7[%c96, %c0_28] : memref<288x80xbf16, #tpu.memory_space<vmem>>, vector<16x80xbf16>
    tpu.vector_store %arg7[%c96, %c0_28], %19 {strides = array<i32>} : memref<288x80xbf16, #tpu.memory_space<vmem>>, vector<16x80xbf16>,
    %c0_29 = arith.constant 0 : index
    %c0_30 = arith.constant 0 : index
    %c0_31 = arith.constant 0 : index
    %c21 = arith.constant 21 : index
    %21 = vector.load %arg2[%c0_29, %c0_30, %c0_31, %c21] : memref<1x1x16x110xbf16, #tpu.memory_space<vmem>>, vector<1x1x16x80xbf16>
    %22 = vector.shape_cast %21 : vector<1x1x16x80xbf16> to vector<16x80xbf16>
    %c112 = arith.constant 112 : index
    %c0_32 = arith.constant 0 : index
    %23 = vector.load %arg7[%c112, %c0_32] : memref<288x80xbf16, #tpu.memory_space<vmem>>, vector<16x80xbf16>
    tpu.vector_store %arg7[%c112, %c0_32], %22 {strides = array<i32>} : memref<288x80xbf16, #tpu.memory_space<vmem>>, vector<16x80xbf16>,
    %c0_33 = arith.constant 0 : index
    %c0_34 = arith.constant 0 : index
    %c0_35 = arith.constant 0 : index
    %c22 = arith.constant 22 : index
    %24 = vector.load %arg2[%c0_33, %c0_34, %c0_35, %c22] : memref<1x1x16x110xbf16, #tpu.memory_space<vmem>>, vector<1x1x16x80xbf16>
    %25 = vector.shape_cast %24 : vector<1x1x16x80xbf16> to vector<16x80xbf16>
    %c128 = arith.constant 128 : index
    %c0_36 = arith.constant 0 : index
    %26 = vector.load %arg7[%c128, %c0_36] : memref<288x80xbf16, #tpu.memory_space<vmem>>, vector<16x80xbf16>
    tpu.vector_store %arg7[%c128, %c0_36], %25 {strides = array<i32>} : memref<288x80xbf16, #tpu.memory_space<vmem>>, vector<16x80xbf16>,
    %c0_37 = arith.constant 0 : index
    %c0_38 = arith.constant 0 : index
    %c0_39 = arith.constant 0 : index
    %c0_40 = arith.constant 0 : index
    %27 = vector.load %arg3[%c0_37, %c0_38, %c0_39, %c0_40] : memref<1x1x16x110xbf16, #tpu.memory_space<vmem>>, vector<1x1x16x80xbf16>
    %28 = vector.shape_cast %27 : vector<1x1x16x80xbf16> to vector<16x80xbf16>
    %c144 = arith.constant 144 : index
    %c0_41 = arith.constant 0 : index
    %29 = vector.load %arg7[%c144, %c0_41] : memref<288x80xbf16, #tpu.memory_space<vmem>>, vector<16x80xbf16>
    tpu.vector_store %arg7[%c144, %c0_41], %28 {strides = array<i32>} : memref<288x80xbf16, #tpu.memory_space<vmem>>, vector<16x80xbf16>,
    %c0_42 = arith.constant 0 : index
    %c0_43 = arith.constant 0 : index
    %c0_44 = arith.constant 0 : index
    %c1_45 = arith.constant 1 : index
    %30 = vector.load %arg3[%c0_42, %c0_43, %c0_44, %c1_45] : memref<1x1x16x110xbf16, #tpu.memory_space<vmem>>, vector<1x1x16x80xbf16>
    %31 = vector.shape_cast %30 : vector<1x1x16x80xbf16> to vector<16x80xbf16>
    %c160 = arith.constant 160 : index
    %c0_46 = arith.constant 0 : index
    %32 = vector.load %arg7[%c160, %c0_46] : memref<288x80xbf16, #tpu.memory_space<vmem>>, vector<16x80xbf16>
    tpu.vector_store %arg7[%c160, %c0_46], %31 {strides = array<i32>} : memref<288x80xbf16, #tpu.memory_space<vmem>>, vector<16x80xbf16>,
    %c0_47 = arith.constant 0 : index
    %c0_48 = arith.constant 0 : index
    %c0_49 = arith.constant 0 : index
    %c2_50 = arith.constant 2 : index
    %33 = vector.load %arg3[%c0_47, %c0_48, %c0_49, %c2_50] : memref<1x1x16x110xbf16, #tpu.memory_space<vmem>>, vector<1x1x16x80xbf16>
    %34 = vector.shape_cast %33 : vector<1x1x16x80xbf16> to vector<16x80xbf16>
    %c176 = arith.constant 176 : index
    %c0_51 = arith.constant 0 : index
    %35 = vector.load %arg7[%c176, %c0_51] : memref<288x80xbf16, #tpu.memory_space<vmem>>, vector<16x80xbf16>
    tpu.vector_store %arg7[%c176, %c0_51], %34 {strides = array<i32>} : memref<288x80xbf16, #tpu.memory_space<vmem>>, vector<16x80xbf16>,
    %c0_52 = arith.constant 0 : index
    %c0_53 = arith.constant 0 : index
    %c0_54 = arith.constant 0 : index
    %c10_55 = arith.constant 10 : index
    %36 = vector.load %arg3[%c0_52, %c0_53, %c0_54, %c10_55] : memref<1x1x16x110xbf16, #tpu.memory_space<vmem>>, vector<1x1x16x80xbf16>
    %37 = vector.shape_cast %36 : vector<1x1x16x80xbf16> to vector<16x80xbf16>
    %c192 = arith.constant 192 : index
    %c0_56 = arith.constant 0 : index
    %38 = vector.load %arg7[%c192, %c0_56] : memref<288x80xbf16, #tpu.memory_space<vmem>>, vector<16x80xbf16>
    tpu.vector_store %arg7[%c192, %c0_56], %37 {strides = array<i32>} : memref<288x80xbf16, #tpu.memory_space<vmem>>, vector<16x80xbf16>,
    %c0_57 = arith.constant 0 : index
    %c0_58 = arith.constant 0 : index
    %c0_59 = arith.constant 0 : index
    %c11_60 = arith.constant 11 : index
    %39 = vector.load %arg3[%c0_57, %c0_58, %c0_59, %c11_60] : memref<1x1x16x110xbf16, #tpu.memory_space<vmem>>, vector<1x1x16x80xbf16>
    %40 = vector.shape_cast %39 : vector<1x1x16x80xbf16> to vector<16x80xbf16>
    %c208 = arith.constant 208 : index
    %c0_61 = arith.constant 0 : index
    %41 = vector.load %arg7[%c208, %c0_61] : memref<288x80xbf16, #tpu.memory_space<vmem>>, vector<16x80xbf16>
    tpu.vector_store %arg7[%c208, %c0_61], %40 {strides = array<i32>} : memref<288x80xbf16, #tpu.memory_space<vmem>>, vector<16x80xbf16>,
    %c0_62 = arith.constant 0 : index
    %c0_63 = arith.constant 0 : index
    %c0_64 = arith.constant 0 : index
    %c12_65 = arith.constant 12 : index
    %42 = vector.load %arg3[%c0_62, %c0_63, %c0_64, %c12_65] : memref<1x1x16x110xbf16, #tpu.memory_space<vmem>>, vector<1x1x16x80xbf16>
    %43 = vector.shape_cast %42 : vector<1x1x16x80xbf16> to vector<16x80xbf16>
    %c224 = arith.constant 224 : index
    %c0_66 = arith.constant 0 : index
    %44 = vector.load %arg7[%c224, %c0_66] : memref<288x80xbf16, #tpu.memory_space<vmem>>, vector<16x80xbf16>
    tpu.vector_store %arg7[%c224, %c0_66], %43 {strides = array<i32>} : memref<288x80xbf16, #tpu.memory_space<vmem>>, vector<16x80xbf16>,
    %c0_67 = arith.constant 0 : index
    %c0_68 = arith.constant 0 : index
    %c0_69 = arith.constant 0 : index
    %c20_70 = arith.constant 20 : index
    %45 = vector.load %arg3[%c0_67, %c0_68, %c0_69, %c20_70] : memref<1x1x16x110xbf16, #tpu.memory_space<vmem>>, vector<1x1x16x80xbf16>
    %46 = vector.shape_cast %45 : vector<1x1x16x80xbf16> to vector<16x80xbf16>
    %c240 = arith.constant 240 : index
    %c0_71 = arith.constant 0 : index
    %47 = vector.load %arg7[%c240, %c0_71] : memref<288x80xbf16, #tpu.memory_space<vmem>>, vector<16x80xbf16>
    tpu.vector_store %arg7[%c240, %c0_71], %46 {strides = array<i32>} : memref<288x80xbf16, #tpu.memory_space<vmem>>, vector<16x80xbf16>,
    %c0_72 = arith.constant 0 : index
    %c0_73 = arith.constant 0 : index
    %c0_74 = arith.constant 0 : index
    %c21_75 = arith.constant 21 : index
    %48 = vector.load %arg3[%c0_72, %c0_73, %c0_74, %c21_75] : memref<1x1x16x110xbf16, #tpu.memory_space<vmem>>, vector<1x1x16x80xbf16>
    %49 = vector.shape_cast %48 : vector<1x1x16x80xbf16> to vector<16x80xbf16>
    %c256 = arith.constant 256 : index
    %c0_76 = arith.constant 0 : index
    %50 = vector.load %arg7[%c256, %c0_76] : memref<288x80xbf16, #tpu.memory_space<vmem>>, vector<16x80xbf16>
    tpu.vector_store %arg7[%c256, %c0_76], %49 {strides = array<i32>} : memref<288x80xbf16, #tpu.memory_space<vmem>>, vector<16x80xbf16>,
    %c0_77 = arith.constant 0 : index
    %c0_78 = arith.constant 0 : index
    %c0_79 = arith.constant 0 : index
    %c22_80 = arith.constant 22 : index
    %51 = vector.load %arg3[%c0_77, %c0_78, %c0_79, %c22_80] : memref<1x1x16x110xbf16, #tpu.memory_space<vmem>>, vector<1x1x16x80xbf16>
    %52 = vector.shape_cast %51 : vector<1x1x16x80xbf16> to vector<16x80xbf16>
    %c272 = arith.constant 272 : index
    %c0_81 = arith.constant 0 : index
    %53 = vector.load %arg7[%c272, %c0_81] : memref<288x80xbf16, #tpu.memory_space<vmem>>, vector<16x80xbf16>
    tpu.vector_store %arg7[%c272, %c0_81], %52 {strides = array<i32>} : memref<288x80xbf16, #tpu.memory_space<vmem>>, vector<16x80xbf16>,
    %c0_82 = arith.constant 0 : index
    %c0_83 = arith.constant 0 : index
    %54 = vector.load %arg4[%c0_82, %c0_83] : memref<16x288xbf16, #tpu.memory_space<vmem>>, vector<16x288xbf16>
    %c0_84 = arith.constant 0 : index
    %c0_85 = arith.constant 0 : index
    %55 = vector.load %arg7[%c0_84, %c0_85] : memref<288x80xbf16, #tpu.memory_space<vmem>>, vector<288x80xbf16>
    %cst = arith.constant dense<0.000000e+00> : vector<16x80xf32>
    %56 = tpu.matmul %54, %55, %cst {dimension_numbers = #tpu.dot_dimension_numbers<[1], [0], [0], [1], [0, 0, 1, 1], [], []>} : vector<16x288xbf16>, vector<288x80xbf16>, vector<16x80xf32> -> vector<16x80xf32>
    %c0_86 = arith.constant 0 : index
    %c0_87 = arith.constant 0 : index
    %57 = vector.load %arg5[%c0_86, %c0_87] : memref<16x1xf32, #tpu.memory_space<vmem>>, vector<16x1xf32>
    %58 = vector.broadcast %57 : vector<16x1xf32> to vector<16x80xf32>
    %59 = arith.addf %56, %58 : vector<16x80xf32>
    %cst_88 = arith.constant 0.000000e+00 : f32
    %60 = vector.broadcast %cst_88 : f32 to vector<16x80xf32>
    %61 = arith.maximumf %59, %60 : vector<16x80xf32>
    %62 = arith.truncf %61 : vector<16x80xf32> to vector<16x80xbf16>
    %c0_89 = arith.constant 0 : index
    %c0_90 = arith.constant 0 : index
    %c0_91 = arith.constant 0 : index
    %c0_92 = arith.constant 0 : index
    %63 = vector.load %arg6[%c0_89, %c0_90, %c0_91, %c0_92] : memref<1x1x16x80xbf16, #tpu.memory_space<vmem>>, vector<1x1x16x80xbf16>
    %64 = vector.shape_cast %63 : vector<1x1x16x80xbf16> to vector<16x80xbf16>
    %65 = vector.shape_cast %62 : vector<16x80xbf16> to vector<1x1x16x80xbf16>
    tpu.vector_store %arg6[%c0_89, %c0_90, %c0_91, %c0_92], %65 {strides = array<i32>} : memref<1x1x16x80xbf16, #tpu.memory_space<vmem>>, vector<1x1x16x80xbf16>,
    return
  }
  func.func @transform_0(%arg0: i32, %arg1: i32) -> (i32, i32, i32, i32) {
    %c0_i32 = arith.constant 0 : i32
    %c0_i32_0 = arith.constant 0 : i32
    %c0_i32_1 = arith.constant 0 : i32
    return %arg0, %arg1, %c0_i32, %c0_i32_0 : i32, i32, i32, i32
  }
  func.func @transform_1(%arg0: i32, %arg1: i32) -> (i32, i32, i32, i32) {
    %c0_i32 = arith.constant 0 : i32
    %c0_i32_0 = arith.constant 0 : i32
    %c0_i32_1 = arith.constant 0 : i32
    return %arg0, %arg1, %c0_i32, %c0_i32_0 : i32, i32, i32, i32
  }
  func.func @transform_2(%arg0: i32, %arg1: i32) -> (i32, i32) {
    %c0_i32 = arith.constant 0 : i32
    %c0_i32_0 = arith.constant 0 : i32
    %c0_i32_1 = arith.constant 0 : i32
    return %c0_i32, %c0_i32_0 : i32, i32
  }
  func.func @transform_3(%arg0: i32, %arg1: i32) -> (i32, i32) {
    %c0_i32 = arith.constant 0 : i32
    %c0_i32_0 = arith.constant 0 : i32
    %c0_i32_1 = arith.constant 0 : i32
    return %c0_i32, %c0_i32_0 : i32, i32
  }
  func.func @transform_4(%arg0: i32, %arg1: i32) -> (i32, i32, i32, i32) {
    %c0_i32 = arith.constant 0 : i32
    %c0_i32_0 = arith.constant 0 : i32
    %c0_i32_1 = arith.constant 0 : i32
    return %arg0, %arg1, %c0_i32, %c0_i32_0 : i32, i32, i32, i32
  }
}

module attributes {stable_mosaic.version = 11 : i64} {
  func.func @_matmul_kernel(%arg0: i32, %arg1: i32, %arg2: memref<1x16x64xbf16, #tpu.memory_space<vmem>>, %arg3: memref<32x16xbf16, #tpu.memory_space<vmem>>, %arg4: memref<32x1xf32, #tpu.memory_space<vmem>>, %arg5: memref<1x32x64xbf16, #tpu.memory_space<vmem>>) attributes {dimension_semantics = [#tpu.dimension_semantics<parallel>, #tpu.dimension_semantics<parallel>], iteration_bounds = array<i64: 2, 1>, scalar_prefetch = 0 : i64, scratch_operands = 0 : i64, tpu.core_type = #tpu.core_type<tc>, window_params = [{transform_indices = @transform_0, window_bounds = array<i64: 1, 16, 64>}, {pipeline_mode = #tpu.pipeline_mode<synchronous>, transform_indices = @transform_1, window_bounds = array<i64: 32, 16>}, {pipeline_mode = #tpu.pipeline_mode<synchronous>, transform_indices = @transform_2, window_bounds = array<i64: 32, 1>}, {transform_indices = @transform_3, window_bounds = array<i64: 1, 32, 64>}]} {
    %c0 = arith.constant 0 : index
    %c0_0 = arith.constant 0 : index
    %0 = vector.load %arg3[%c0, %c0_0] : memref<32x16xbf16, #tpu.memory_space<vmem>>, vector<32x16xbf16>
    %c0_1 = arith.constant 0 : index
    %c0_2 = arith.constant 0 : index
    %c0_3 = arith.constant 0 : index
    %1 = vector.load %arg2[%c0_1, %c0_2, %c0_3] : memref<1x16x64xbf16, #tpu.memory_space<vmem>>, vector<1x16x64xbf16>
    %2 = vector.shape_cast %1 : vector<1x16x64xbf16> to vector<16x64xbf16>
    %cst = arith.constant dense<0.000000e+00> : vector<32x64xf32>
    %3 = tpu.matmul %0, %2, %cst {dimension_numbers = #tpu.dot_dimension_numbers<[1], [0], [0], [1], [0, 0, 1, 1], [], []>} : vector<32x16xbf16>, vector<16x64xbf16>, vector<32x64xf32> -> vector<32x64xf32>
    %c0_4 = arith.constant 0 : index
    %c0_5 = arith.constant 0 : index
    %4 = vector.load %arg4[%c0_4, %c0_5] : memref<32x1xf32, #tpu.memory_space<vmem>>, vector<32x1xf32>
    %5 = vector.broadcast %4 : vector<32x1xf32> to vector<32x64xf32>
    %6 = arith.addf %3, %5 : vector<32x64xf32>
    %7 = arith.truncf %6 : vector<32x64xf32> to vector<32x64xbf16>
    %c0_6 = arith.constant 0 : index
    %c0_7 = arith.constant 0 : index
    %c0_8 = arith.constant 0 : index
    %8 = vector.load %arg5[%c0_6, %c0_7, %c0_8] : memref<1x32x64xbf16, #tpu.memory_space<vmem>>, vector<1x32x64xbf16>
    %9 = vector.shape_cast %8 : vector<1x32x64xbf16> to vector<32x64xbf16>
    %10 = vector.shape_cast %7 : vector<32x64xbf16> to vector<1x32x64xbf16>
    tpu.vector_store %arg5[%c0_6, %c0_7, %c0_8], %10 {strides = array<i32>} : memref<1x32x64xbf16, #tpu.memory_space<vmem>>, vector<1x32x64xbf16>,
    return
  }
  func.func @transform_0(%arg0: i32, %arg1: i32) -> (i32, i32, i32) {
    %c0_i32 = arith.constant 0 : i32
    %c0_i32_0 = arith.constant 0 : i32
    return %arg0, %c0_i32, %arg1 : i32, i32, i32
  }
  func.func @transform_1(%arg0: i32, %arg1: i32) -> (i32, i32) {
    %c0_i32 = arith.constant 0 : i32
    %c0_i32_0 = arith.constant 0 : i32
    %c0_i32_1 = arith.constant 0 : i32
    return %c0_i32, %c0_i32_0 : i32, i32
  }
  func.func @transform_2(%arg0: i32, %arg1: i32) -> (i32, i32) {
    %c0_i32 = arith.constant 0 : i32
    %c0_i32_0 = arith.constant 0 : i32
    %c0_i32_1 = arith.constant 0 : i32
    return %c0_i32, %c0_i32_0 : i32, i32
  }
  func.func @transform_3(%arg0: i32, %arg1: i32) -> (i32, i32, i32) {
    %c0_i32 = arith.constant 0 : i32
    %c0_i32_0 = arith.constant 0 : i32
    return %arg0, %c0_i32, %arg1 : i32, i32, i32
  }
}

module attributes {stable_mosaic.version = 11 : i64} {
  func.func @_conv3x3_kernel(%arg0: i32, %arg1: i32, %arg2: memref<1x1x8x342xbf16, #tpu.memory_space<vmem>>, %arg3: memref<1x1x8x342xbf16, #tpu.memory_space<vmem>>, %arg4: memref<8x144xbf16, #tpu.memory_space<vmem>>, %arg5: memref<8x1xf32, #tpu.memory_space<vmem>>, %arg6: memref<1x1x8x288xbf16, #tpu.memory_space<vmem>>, %arg7: memref<144x288xbf16, #tpu.memory_space<vmem>>) attributes {dimension_semantics = [#tpu.dimension_semantics<parallel>, #tpu.dimension_semantics<parallel>], iteration_bounds = array<i64: 2, 1>, scalar_prefetch = 0 : i64, scratch_operands = 1 : i64, tpu.core_type = #tpu.core_type<tc>, window_params = [{transform_indices = @transform_0, window_bounds = array<i64: 1, 1, 8, 342>}, {transform_indices = @transform_1, window_bounds = array<i64: 1, 1, 8, 342>}, {pipeline_mode = #tpu.pipeline_mode<synchronous>, transform_indices = @transform_2, window_bounds = array<i64: 8, 144>}, {pipeline_mode = #tpu.pipeline_mode<synchronous>, transform_indices = @transform_3, window_bounds = array<i64: 8, 1>}, {transform_indices = @transform_4, window_bounds = array<i64: 1, 1, 8, 288>}]} {
    %c0 = arith.constant 0 : index
    %c0_0 = arith.constant 0 : index
    %c0_1 = arith.constant 0 : index
    %c0_2 = arith.constant 0 : index
    %0 = vector.load %arg2[%c0, %c0_0, %c0_1, %c0_2] : memref<1x1x8x342xbf16, #tpu.memory_space<vmem>>, vector<1x1x8x288xbf16>
    %1 = vector.shape_cast %0 : vector<1x1x8x288xbf16> to vector<8x288xbf16>
    %c0_3 = arith.constant 0 : index
    %c0_4 = arith.constant 0 : index
    %2 = vector.load %arg7[%c0_3, %c0_4] : memref<144x288xbf16, #tpu.memory_space<vmem>>, vector<8x288xbf16>
    tpu.vector_store %arg7[%c0_3, %c0_4], %1 {strides = array<i32>} : memref<144x288xbf16, #tpu.memory_space<vmem>>, vector<8x288xbf16>,
    %c0_5 = arith.constant 0 : index
    %c0_6 = arith.constant 0 : index
    %c0_7 = arith.constant 0 : index
    %c1 = arith.constant 1 : index
    %3 = vector.load %arg2[%c0_5, %c0_6, %c0_7, %c1] : memref<1x1x8x342xbf16, #tpu.memory_space<vmem>>, vector<1x1x8x288xbf16>
    %4 = vector.shape_cast %3 : vector<1x1x8x288xbf16> to vector<8x288xbf16>
    %c8 = arith.constant 8 : index
    %c0_8 = arith.constant 0 : index
    %5 = vector.load %arg7[%c8, %c0_8] : memref<144x288xbf16, #tpu.memory_space<vmem>>, vector<8x288xbf16>
    tpu.vector_store %arg7[%c8, %c0_8], %4 {strides = array<i32>} : memref<144x288xbf16, #tpu.memory_space<vmem>>, vector<8x288xbf16>,
    %c0_9 = arith.constant 0 : index
    %c0_10 = arith.constant 0 : index
    %c0_11 = arith.constant 0 : index
    %c2 = arith.constant 2 : index
    %6 = vector.load %arg2[%c0_9, %c0_10, %c0_11, %c2] : memref<1x1x8x342xbf16, #tpu.memory_space<vmem>>, vector<1x1x8x288xbf16>
    %7 = vector.shape_cast %6 : vector<1x1x8x288xbf16> to vector<8x288xbf16>
    %c16 = arith.constant 16 : index
    %c0_12 = arith.constant 0 : index
    %8 = vector.load %arg7[%c16, %c0_12] : memref<144x288xbf16, #tpu.memory_space<vmem>>, vector<8x288xbf16>
    tpu.vector_store %arg7[%c16, %c0_12], %7 {strides = array<i32>} : memref<144x288xbf16, #tpu.memory_space<vmem>>, vector<8x288xbf16>,
    %c0_13 = arith.constant 0 : index
    %c0_14 = arith.constant 0 : index
    %c0_15 = arith.constant 0 : index
    %c18 = arith.constant 18 : index
    %9 = vector.load %arg2[%c0_13, %c0_14, %c0_15, %c18] : memref<1x1x8x342xbf16, #tpu.memory_space<vmem>>, vector<1x1x8x288xbf16>
    %10 = vector.shape_cast %9 : vector<1x1x8x288xbf16> to vector<8x288xbf16>
    %c24 = arith.constant 24 : index
    %c0_16 = arith.constant 0 : index
    %11 = vector.load %arg7[%c24, %c0_16] : memref<144x288xbf16, #tpu.memory_space<vmem>>, vector<8x288xbf16>
    tpu.vector_store %arg7[%c24, %c0_16], %10 {strides = array<i32>} : memref<144x288xbf16, #tpu.memory_space<vmem>>, vector<8x288xbf16>,
    %c0_17 = arith.constant 0 : index
    %c0_18 = arith.constant 0 : index
    %c0_19 = arith.constant 0 : index
    %c19 = arith.constant 19 : index
    %12 = vector.load %arg2[%c0_17, %c0_18, %c0_19, %c19] : memref<1x1x8x342xbf16, #tpu.memory_space<vmem>>, vector<1x1x8x288xbf16>
    %13 = vector.shape_cast %12 : vector<1x1x8x288xbf16> to vector<8x288xbf16>
    %c32 = arith.constant 32 : index
    %c0_20 = arith.constant 0 : index
    %14 = vector.load %arg7[%c32, %c0_20] : memref<144x288xbf16, #tpu.memory_space<vmem>>, vector<8x288xbf16>
    tpu.vector_store %arg7[%c32, %c0_20], %13 {strides = array<i32>} : memref<144x288xbf16, #tpu.memory_space<vmem>>, vector<8x288xbf16>,
    %c0_21 = arith.constant 0 : index
    %c0_22 = arith.constant 0 : index
    %c0_23 = arith.constant 0 : index
    %c20 = arith.constant 20 : index
    %15 = vector.load %arg2[%c0_21, %c0_22, %c0_23, %c20] : memref<1x1x8x342xbf16, #tpu.memory_space<vmem>>, vector<1x1x8x288xbf16>
    %16 = vector.shape_cast %15 : vector<1x1x8x288xbf16> to vector<8x288xbf16>
    %c40 = arith.constant 40 : index
    %c0_24 = arith.constant 0 : index
    %17 = vector.load %arg7[%c40, %c0_24] : memref<144x288xbf16, #tpu.memory_space<vmem>>, vector<8x288xbf16>
    tpu.vector_store %arg7[%c40, %c0_24], %16 {strides = array<i32>} : memref<144x288xbf16, #tpu.memory_space<vmem>>, vector<8x288xbf16>,
    %c0_25 = arith.constant 0 : index
    %c0_26 = arith.constant 0 : index
    %c0_27 = arith.constant 0 : index
    %c36 = arith.constant 36 : index
    %18 = vector.load %arg2[%c0_25, %c0_26, %c0_27, %c36] : memref<1x1x8x342xbf16, #tpu.memory_space<vmem>>, vector<1x1x8x288xbf16>
    %19 = vector.shape_cast %18 : vector<1x1x8x288xbf16> to vector<8x288xbf16>
    %c48 = arith.constant 48 : index
    %c0_28 = arith.constant 0 : index
    %20 = vector.load %arg7[%c48, %c0_28] : memref<144x288xbf16, #tpu.memory_space<vmem>>, vector<8x288xbf16>
    tpu.vector_store %arg7[%c48, %c0_28], %19 {strides = array<i32>} : memref<144x288xbf16, #tpu.memory_space<vmem>>, vector<8x288xbf16>,
    %c0_29 = arith.constant 0 : index
    %c0_30 = arith.constant 0 : index
    %c0_31 = arith.constant 0 : index
    %c37 = arith.constant 37 : index
    %21 = vector.load %arg2[%c0_29, %c0_30, %c0_31, %c37] : memref<1x1x8x342xbf16, #tpu.memory_space<vmem>>, vector<1x1x8x288xbf16>
    %22 = vector.shape_cast %21 : vector<1x1x8x288xbf16> to vector<8x288xbf16>
    %c56 = arith.constant 56 : index
    %c0_32 = arith.constant 0 : index
    %23 = vector.load %arg7[%c56, %c0_32] : memref<144x288xbf16, #tpu.memory_space<vmem>>, vector<8x288xbf16>
    tpu.vector_store %arg7[%c56, %c0_32], %22 {strides = array<i32>} : memref<144x288xbf16, #tpu.memory_space<vmem>>, vector<8x288xbf16>,
    %c0_33 = arith.constant 0 : index
    %c0_34 = arith.constant 0 : index
    %c0_35 = arith.constant 0 : index
    %c38 = arith.constant 38 : index
    %24 = vector.load %arg2[%c0_33, %c0_34, %c0_35, %c38] : memref<1x1x8x342xbf16, #tpu.memory_space<vmem>>, vector<1x1x8x288xbf16>
    %25 = vector.shape_cast %24 : vector<1x1x8x288xbf16> to vector<8x288xbf16>
    %c64 = arith.constant 64 : index
    %c0_36 = arith.constant 0 : index
    %26 = vector.load %arg7[%c64, %c0_36] : memref<144x288xbf16, #tpu.memory_space<vmem>>, vector<8x288xbf16>
    tpu.vector_store %arg7[%c64, %c0_36], %25 {strides = array<i32>} : memref<144x288xbf16, #tpu.memory_space<vmem>>, vector<8x288xbf16>,
    %c0_37 = arith.constant 0 : index
    %c0_38 = arith.constant 0 : index
    %c0_39 = arith.constant 0 : index
    %c0_40 = arith.constant 0 : index
    %27 = vector.load %arg3[%c0_37, %c0_38, %c0_39, %c0_40] : memref<1x1x8x342xbf16, #tpu.memory_space<vmem>>, vector<1x1x8x288xbf16>
    %28 = vector.shape_cast %27 : vector<1x1x8x288xbf16> to vector<8x288xbf16>
    %c72 = arith.constant 72 : index
    %c0_41 = arith.constant 0 : index
    %29 = vector.load %arg7[%c72, %c0_41] : memref<144x288xbf16, #tpu.memory_space<vmem>>, vector<8x288xbf16>
    tpu.vector_store %arg7[%c72, %c0_41], %28 {strides = array<i32>} : memref<144x288xbf16, #tpu.memory_space<vmem>>, vector<8x288xbf16>,
    %c0_42 = arith.constant 0 : index
    %c0_43 = arith.constant 0 : index
    %c0_44 = arith.constant 0 : index
    %c1_45 = arith.constant 1 : index
    %30 = vector.load %arg3[%c0_42, %c0_43, %c0_44, %c1_45] : memref<1x1x8x342xbf16, #tpu.memory_space<vmem>>, vector<1x1x8x288xbf16>
    %31 = vector.shape_cast %30 : vector<1x1x8x288xbf16> to vector<8x288xbf16>
    %c80 = arith.constant 80 : index
    %c0_46 = arith.constant 0 : index
    %32 = vector.load %arg7[%c80, %c0_46] : memref<144x288xbf16, #tpu.memory_space<vmem>>, vector<8x288xbf16>
    tpu.vector_store %arg7[%c80, %c0_46], %31 {strides = array<i32>} : memref<144x288xbf16, #tpu.memory_space<vmem>>, vector<8x288xbf16>,
    %c0_47 = arith.constant 0 : index
    %c0_48 = arith.constant 0 : index
    %c0_49 = arith.constant 0 : index
    %c2_50 = arith.constant 2 : index
    %33 = vector.load %arg3[%c0_47, %c0_48, %c0_49, %c2_50] : memref<1x1x8x342xbf16, #tpu.memory_space<vmem>>, vector<1x1x8x288xbf16>
    %34 = vector.shape_cast %33 : vector<1x1x8x288xbf16> to vector<8x288xbf16>
    %c88 = arith.constant 88 : index
    %c0_51 = arith.constant 0 : index
    %35 = vector.load %arg7[%c88, %c0_51] : memref<144x288xbf16, #tpu.memory_space<vmem>>, vector<8x288xbf16>
    tpu.vector_store %arg7[%c88, %c0_51], %34 {strides = array<i32>} : memref<144x288xbf16, #tpu.memory_space<vmem>>, vector<8x288xbf16>,
    %c0_52 = arith.constant 0 : index
    %c0_53 = arith.constant 0 : index
    %c0_54 = arith.constant 0 : index
    %c18_55 = arith.constant 18 : index
    %36 = vector.load %arg3[%c0_52, %c0_53, %c0_54, %c18_55] : memref<1x1x8x342xbf16, #tpu.memory_space<vmem>>, vector<1x1x8x288xbf16>
    %37 = vector.shape_cast %36 : vector<1x1x8x288xbf16> to vector<8x288xbf16>
    %c96 = arith.constant 96 : index
    %c0_56 = arith.constant 0 : index
    %38 = vector.load %arg7[%c96, %c0_56] : memref<144x288xbf16, #tpu.memory_space<vmem>>, vector<8x288xbf16>
    tpu.vector_store %arg7[%c96, %c0_56], %37 {strides = array<i32>} : memref<144x288xbf16, #tpu.memory_space<vmem>>, vector<8x288xbf16>,
    %c0_57 = arith.constant 0 : index
    %c0_58 = arith.constant 0 : index
    %c0_59 = arith.constant 0 : index
    %c19_60 = arith.constant 19 : index
    %39 = vector.load %arg3[%c0_57, %c0_58, %c0_59, %c19_60] : memref<1x1x8x342xbf16, #tpu.memory_space<vmem>>, vector<1x1x8x288xbf16>
    %40 = vector.shape_cast %39 : vector<1x1x8x288xbf16> to vector<8x288xbf16>
    %c104 = arith.constant 104 : index
    %c0_61 = arith.constant 0 : index
    %41 = vector.load %arg7[%c104, %c0_61] : memref<144x288xbf16, #tpu.memory_space<vmem>>, vector<8x288xbf16>
    tpu.vector_store %arg7[%c104, %c0_61], %40 {strides = array<i32>} : memref<144x288xbf16, #tpu.memory_space<vmem>>, vector<8x288xbf16>,
    %c0_62 = arith.constant 0 : index
    %c0_63 = arith.constant 0 : index
    %c0_64 = arith.constant 0 : index
    %c20_65 = arith.constant 20 : index
    %42 = vector.load %arg3[%c0_62, %c0_63, %c0_64, %c20_65] : memref<1x1x8x342xbf16, #tpu.memory_space<vmem>>, vector<1x1x8x288xbf16>
    %43 = vector.shape_cast %42 : vector<1x1x8x288xbf16> to vector<8x288xbf16>
    %c112 = arith.constant 112 : index
    %c0_66 = arith.constant 0 : index
    %44 = vector.load %arg7[%c112, %c0_66] : memref<144x288xbf16, #tpu.memory_space<vmem>>, vector<8x288xbf16>
    tpu.vector_store %arg7[%c112, %c0_66], %43 {strides = array<i32>} : memref<144x288xbf16, #tpu.memory_space<vmem>>, vector<8x288xbf16>,
    %c0_67 = arith.constant 0 : index
    %c0_68 = arith.constant 0 : index
    %c0_69 = arith.constant 0 : index
    %c36_70 = arith.constant 36 : index
    %45 = vector.load %arg3[%c0_67, %c0_68, %c0_69, %c36_70] : memref<1x1x8x342xbf16, #tpu.memory_space<vmem>>, vector<1x1x8x288xbf16>
    %46 = vector.shape_cast %45 : vector<1x1x8x288xbf16> to vector<8x288xbf16>
    %c120 = arith.constant 120 : index
    %c0_71 = arith.constant 0 : index
    %47 = vector.load %arg7[%c120, %c0_71] : memref<144x288xbf16, #tpu.memory_space<vmem>>, vector<8x288xbf16>
    tpu.vector_store %arg7[%c120, %c0_71], %46 {strides = array<i32>} : memref<144x288xbf16, #tpu.memory_space<vmem>>, vector<8x288xbf16>,
    %c0_72 = arith.constant 0 : index
    %c0_73 = arith.constant 0 : index
    %c0_74 = arith.constant 0 : index
    %c37_75 = arith.constant 37 : index
    %48 = vector.load %arg3[%c0_72, %c0_73, %c0_74, %c37_75] : memref<1x1x8x342xbf16, #tpu.memory_space<vmem>>, vector<1x1x8x288xbf16>
    %49 = vector.shape_cast %48 : vector<1x1x8x288xbf16> to vector<8x288xbf16>
    %c128 = arith.constant 128 : index
    %c0_76 = arith.constant 0 : index
    %50 = vector.load %arg7[%c128, %c0_76] : memref<144x288xbf16, #tpu.memory_space<vmem>>, vector<8x288xbf16>
    tpu.vector_store %arg7[%c128, %c0_76], %49 {strides = array<i32>} : memref<144x288xbf16, #tpu.memory_space<vmem>>, vector<8x288xbf16>,
    %c0_77 = arith.constant 0 : index
    %c0_78 = arith.constant 0 : index
    %c0_79 = arith.constant 0 : index
    %c38_80 = arith.constant 38 : index
    %51 = vector.load %arg3[%c0_77, %c0_78, %c0_79, %c38_80] : memref<1x1x8x342xbf16, #tpu.memory_space<vmem>>, vector<1x1x8x288xbf16>
    %52 = vector.shape_cast %51 : vector<1x1x8x288xbf16> to vector<8x288xbf16>
    %c136 = arith.constant 136 : index
    %c0_81 = arith.constant 0 : index
    %53 = vector.load %arg7[%c136, %c0_81] : memref<144x288xbf16, #tpu.memory_space<vmem>>, vector<8x288xbf16>
    tpu.vector_store %arg7[%c136, %c0_81], %52 {strides = array<i32>} : memref<144x288xbf16, #tpu.memory_space<vmem>>, vector<8x288xbf16>,
    %c0_82 = arith.constant 0 : index
    %c0_83 = arith.constant 0 : index
    %54 = vector.load %arg4[%c0_82, %c0_83] : memref<8x144xbf16, #tpu.memory_space<vmem>>, vector<8x144xbf16>
    %c0_84 = arith.constant 0 : index
    %c0_85 = arith.constant 0 : index
    %55 = vector.load %arg7[%c0_84, %c0_85] : memref<144x288xbf16, #tpu.memory_space<vmem>>, vector<144x288xbf16>
    %cst = arith.constant dense<0.000000e+00> : vector<8x288xf32>
    %56 = tpu.matmul %54, %55, %cst {dimension_numbers = #tpu.dot_dimension_numbers<[1], [0], [0], [1], [0, 0, 1, 1], [], []>} : vector<8x144xbf16>, vector<144x288xbf16>, vector<8x288xf32> -> vector<8x288xf32>
    %c0_86 = arith.constant 0 : index
    %c0_87 = arith.constant 0 : index
    %57 = vector.load %arg5[%c0_86, %c0_87] : memref<8x1xf32, #tpu.memory_space<vmem>>, vector<8x1xf32>
    %58 = vector.broadcast %57 : vector<8x1xf32> to vector<8x288xf32>
    %59 = arith.addf %56, %58 : vector<8x288xf32>
    %cst_88 = arith.constant 0.000000e+00 : f32
    %60 = vector.broadcast %cst_88 : f32 to vector<8x288xf32>
    %61 = arith.maximumf %59, %60 : vector<8x288xf32>
    %62 = arith.truncf %61 : vector<8x288xf32> to vector<8x288xbf16>
    %c0_89 = arith.constant 0 : index
    %c0_90 = arith.constant 0 : index
    %c0_91 = arith.constant 0 : index
    %c0_92 = arith.constant 0 : index
    %63 = vector.load %arg6[%c0_89, %c0_90, %c0_91, %c0_92] : memref<1x1x8x288xbf16, #tpu.memory_space<vmem>>, vector<1x1x8x288xbf16>
    %64 = vector.shape_cast %63 : vector<1x1x8x288xbf16> to vector<8x288xbf16>
    %65 = vector.shape_cast %62 : vector<8x288xbf16> to vector<1x1x8x288xbf16>
    tpu.vector_store %arg6[%c0_89, %c0_90, %c0_91, %c0_92], %65 {strides = array<i32>} : memref<1x1x8x288xbf16, #tpu.memory_space<vmem>>, vector<1x1x8x288xbf16>,
    return
  }
  func.func @transform_0(%arg0: i32, %arg1: i32) -> (i32, i32, i32, i32) {
    %c0_i32 = arith.constant 0 : i32
    %c0_i32_0 = arith.constant 0 : i32
    %c0_i32_1 = arith.constant 0 : i32
    return %arg0, %arg1, %c0_i32, %c0_i32_0 : i32, i32, i32, i32
  }
  func.func @transform_1(%arg0: i32, %arg1: i32) -> (i32, i32, i32, i32) {
    %c0_i32 = arith.constant 0 : i32
    %c0_i32_0 = arith.constant 0 : i32
    %c0_i32_1 = arith.constant 0 : i32
    return %arg0, %arg1, %c0_i32, %c0_i32_0 : i32, i32, i32, i32
  }
  func.func @transform_2(%arg0: i32, %arg1: i32) -> (i32, i32) {
    %c0_i32 = arith.constant 0 : i32
    %c0_i32_0 = arith.constant 0 : i32
    %c0_i32_1 = arith.constant 0 : i32
    return %c0_i32, %c0_i32_0 : i32, i32
  }
  func.func @transform_3(%arg0: i32, %arg1: i32) -> (i32, i32) {
    %c0_i32 = arith.constant 0 : i32
    %c0_i32_0 = arith.constant 0 : i32
    %c0_i32_1 = arith.constant 0 : i32
    return %c0_i32, %c0_i32_0 : i32, i32
  }
  func.func @transform_4(%arg0: i32, %arg1: i32) -> (i32, i32, i32, i32) {
    %c0_i32 = arith.constant 0 : i32
    %c0_i32_0 = arith.constant 0 : i32
    %c0_i32_1 = arith.constant 0 : i32
    return %arg0, %arg1, %c0_i32, %c0_i32_0 : i32, i32, i32, i32
  }
}

module attributes {stable_mosaic.version = 11 : i64} {
  func.func @_matmul_kernel(%arg0: i32, %arg1: i32, %arg2: memref<1x8x256xbf16, #tpu.memory_space<vmem>>, %arg3: memref<2x8xbf16, #tpu.memory_space<vmem>>, %arg4: memref<2x1xf32, #tpu.memory_space<vmem>>, %arg5: memref<1x2x256xf32, #tpu.memory_space<vmem>>) attributes {dimension_semantics = [#tpu.dimension_semantics<parallel>, #tpu.dimension_semantics<parallel>], iteration_bounds = array<i64: 2, 1>, scalar_prefetch = 0 : i64, scratch_operands = 0 : i64, tpu.core_type = #tpu.core_type<tc>, window_params = [{transform_indices = @transform_0, window_bounds = array<i64: 1, 8, 256>}, {pipeline_mode = #tpu.pipeline_mode<synchronous>, transform_indices = @transform_1, window_bounds = array<i64: 2, 8>}, {pipeline_mode = #tpu.pipeline_mode<synchronous>, transform_indices = @transform_2, window_bounds = array<i64: 2, 1>}, {transform_indices = @transform_3, window_bounds = array<i64: 1, 2, 256>}]} {
    %c0 = arith.constant 0 : index
    %c0_0 = arith.constant 0 : index
    %0 = vector.load %arg3[%c0, %c0_0] : memref<2x8xbf16, #tpu.memory_space<vmem>>, vector<2x8xbf16>
    %c0_1 = arith.constant 0 : index
    %c0_2 = arith.constant 0 : index
    %c0_3 = arith.constant 0 : index
    %1 = vector.load %arg2[%c0_1, %c0_2, %c0_3] : memref<1x8x256xbf16, #tpu.memory_space<vmem>>, vector<1x8x256xbf16>
    %2 = vector.shape_cast %1 : vector<1x8x256xbf16> to vector<8x256xbf16>
    %cst = arith.constant dense<0.000000e+00> : vector<2x256xf32>
    %3 = tpu.matmul %0, %2, %cst {dimension_numbers = #tpu.dot_dimension_numbers<[1], [0], [0], [1], [0, 0, 1, 1], [], []>} : vector<2x8xbf16>, vector<8x256xbf16>, vector<2x256xf32> -> vector<2x256xf32>
    %c0_4 = arith.constant 0 : index
    %c0_5 = arith.constant 0 : index
    %4 = vector.load %arg4[%c0_4, %c0_5] : memref<2x1xf32, #tpu.memory_space<vmem>>, vector<2x1xf32>
    %5 = vector.broadcast %4 : vector<2x1xf32> to vector<2x256xf32>
    %6 = arith.addf %3, %5 : vector<2x256xf32>
    %7 = arith.negf %6 : vector<2x256xf32>
    %8 = math.exp %7 : vector<2x256xf32>
    %cst_6 = arith.constant 1.000000e+00 : f32
    %9 = vector.broadcast %cst_6 : f32 to vector<2x256xf32>
    %10 = arith.addf %9, %8 : vector<2x256xf32>
    %11 = arith.divf %9, %10 : vector<2x256xf32>
    %c0_7 = arith.constant 0 : index
    %c0_8 = arith.constant 0 : index
    %c0_9 = arith.constant 0 : index
    %12 = vector.load %arg5[%c0_7, %c0_8, %c0_9] : memref<1x2x256xf32, #tpu.memory_space<vmem>>, vector<1x2x256xf32>
    %13 = vector.shape_cast %12 : vector<1x2x256xf32> to vector<2x256xf32>
    %14 = vector.shape_cast %11 : vector<2x256xf32> to vector<1x2x256xf32>
    tpu.vector_store %arg5[%c0_7, %c0_8, %c0_9], %14 {strides = array<i32>} : memref<1x2x256xf32, #tpu.memory_space<vmem>>, vector<1x2x256xf32>,
    return
  }
  func.func @transform_0(%arg0: i32, %arg1: i32) -> (i32, i32, i32) {
    %c0_i32 = arith.constant 0 : i32
    %c0_i32_0 = arith.constant 0 : i32
    return %arg0, %c0_i32, %arg1 : i32, i32, i32
  }
  func.func @transform_1(%arg0: i32, %arg1: i32) -> (i32, i32) {
    %c0_i32 = arith.constant 0 : i32
    %c0_i32_0 = arith.constant 0 : i32
    %c0_i32_1 = arith.constant 0 : i32
    return %c0_i32, %c0_i32_0 : i32, i32
  }
  func.func @transform_2(%arg0: i32, %arg1: i32) -> (i32, i32) {
    %c0_i32 = arith.constant 0 : i32
    %c0_i32_0 = arith.constant 0 : i32
    %c0_i32_1 = arith.constant 0 : i32
    return %c0_i32, %c0_i32_0 : i32, i32
  }
  func.func @transform_3(%arg0: i32, %arg1: i32) -> (i32, i32, i32) {
    %c0_i32 = arith.constant 0 : i32
    %c0_i32_0 = arith.constant 0 : i32
    return %arg0, %c0_i32, %arg1 : i32, i32, i32
  }
}

</mosaic_0001>

<bundles_post_ra>
// kernel: unet_forward.13
= control target key start
LH: loop header
LB: loop body
LE: loop exit
PB: predicated region body
PF: predicated region fallthrough
CT: control target
= control target key end

     0   :  { %s800_s12 = smov 0   ;;  %s802_s13 = smov 0   ;;  %s898_s0 = inlined_call_operand.vmem [shape: bf16[2,1,8,342], index: 0, kind: input, shape index: {}]   ;;  %s899_s1 = inlined_call_operand.vmem [shape: bf16[8,72], index: 1, kind: input, shape index: {}]   ;;  %s900_s2 = inlined_call_operand.vmem [shape: f32[8,1], index: 2, kind: input, shape index: {}]   ;;  %s901_s3 = inlined_call_operand.vmem [shape: bf16[2,1,8,288], index: 3, kind: output, shape index: {}]  }
   0x1   :  { %s804_s14 = smov 0  }
   0x2 LB: > { %s25_s15 = sadd.s32 1, %s763_s13  ;;  %p656_p0 = scmp.ge.s32.totalorder %s767_s14, 1  ;;  %s767_s14 = sphi %s804_s14, %s13_s14   ;;  %s763_s13 = sphi %s802_s13, %s903_s13   ;;  %s759_s12 = sphi %s800_s12, %s902_s12  }
   0x3   : > { %p27_p1 = scmp.ge.s32.totalorder %s25_s15, 2  ;;  %p157_p2 = scmp.lt.s32.totalorder %s767_s14, 3 }
   0x5   : > { %s905_s15 = smov (%p27_p1, %s25_s15), 0  ;;  %p158_p3 = pnand %p656_p0, %p157_p2 }
   0x6   : > { %p189_p4 = scmp.lt.s32.totalorder (!%p158_p3), %s759_s12, 1  ;;  %v769_v1 = vmov (!%p158_p3), 0.0   ;;  %s770_s20 = smov (!%p158_p3), 126   ;;  %vm211_vm0 = vcmask (!%p158_p3), 257024   ;;  %v777_v11 = vmov (!%p158_p3), 0   ;;  %vm778_vm1 = vmmov (!%p158_p3), 0  }
   0x7   : > { %161 = sbr.rel (%p158_p3) target bundleno = 393 (0x189), region = 32  ;;  %689 = vmatprep.subr.bf16.mxu1 (!%p158_p3), %v769_v1  ;;  %s771_s21 = smov (!%p158_p3), 127   ;;  %493 = vmatprep.mubr.bf16.mxu0 (!%p158_p3), %v777_v11  ;;  %v369_v12 = vld [vmem:[%s900_s2] sm:$0xff] (!%p158_p3)  ;;  %vm223_vm2 = vcmask (!%p158_p3), 1043456   ;;  %vm242_vm3 = vcmask (!%p158_p3), 1031168   ;;  %vm225_vm4 = vcmask (!%p158_p3), 1039360  }
   0x8   : > { %s772_s22 = smov (!%p158_p3), 110   ;;  %s773_s23 = smov (!%p158_p3), 109   ;;  %739 = vset.pattern.permute.xlu0 (!%p158_p3), %v777_v11  ;;  %699 = vmatprep.mubr.msk.bf16.mxu1 (!%p158_p3), %vm778_vm1, %v769_v1  ;;  %vm259_vm5 = vcmask (!%p158_p3), 900096   ;;  %vm276_vm6 = vcmask (!%p158_p3), 891904   ;;  %vm293_vm7 = vcmask (!%p158_p3), 883712   ;;  %vm310_vm8 = vcmask (!%p158_p3), 752640  }
   0x9   : > { %s774_s24 = smov (!%p158_p3), 108   ;;  %s775_s25 = smov (!%p158_p3), 92   ;;  %vm327_vm9 = vcmask (!%p158_p3), 744448   ;;  %vm344_vm10 = vcmask (!%p158_p3), 736256   ;;  %vm447_vm11 = vcmask (!%p158_p3), 588800  }
   0xa   : > { %s776_s26 = smov (!%p158_p3), 91   ;;  %s779_s27 = smov (!%p158_p3), 90  }
   0xe   : > { %s907_s12 = smov (!%p189_p4, %s759_s12), 1 }
   0xf   : > { %s703_s16 = smul.u32 12, %s907_s12 }
  0x11   : > { %s826_s19 = scalar_lea.vmem %s898_s0, %s703_s16  ;;  %s206_s7 = scalar_lea.vmem %s901_s3, %s703_s16 }
  0x12   : > { %v829_v0 = vld [vmem:[%s826_s19] sm:$0xff]  ;;  %v232_v2 = vld [vmem:[%s826_s19 + $0x8] sm:$0xf] }
  0x13   : > { %235 = vrot.lane.b32.xlu1 %v829_v0, %s770_s20  ;;  %217 = vrot.lane.b32.xlu0 %v829_v0, %s771_s21  ;;  %v214_v3 = vld [vmem:[%s826_s19 + $0x8] sm:$0xf] }
  0x14   : > { %v209_v4 = vld [vmem:[%s826_s19 + $0x8] sm:$0xf] }
  0x15   : > { %212 = vst.msk [vmem:[#allocation2 + $0x8] sm:$0xf] %vm211_vm0, %v209_v4  ;;  %v249_v5 = vld [vmem:[%s826_s19 + $0x8] sm:$0xf] }
  0x16   : > { %v266_v6 = vld [vmem:[%s826_s19 + $0x8] sm:$0xf] }
  0x17   : > { %237 = vrot.lane.b32.xlu1 %v232_v2, %s770_s20  ;;  %219 = vrot.lane.b32.xlu0 %v214_v3, %s771_s21  ;;  %v283_v7 = vld [vmem:[%s826_s19 + $0x8] sm:$0xf] }
  0x18   : > { %v300_v8 = vld [vmem:[%s826_s19 + $0x8] sm:$0xf] }
  0x19   : > { %v317_v9 = vld [vmem:[%s826_s19 + $0x8] sm:$0xf] }
  0x1a   : > { %v334_v10 = vld [vmem:[%s826_s19 + $0x8] sm:$0xf] }
  0x1b   : > { %254 = vrot.lane.b32.xlu1 %v249_v5, %s772_s22  ;;  %252 = vrot.lane.b32.xlu0 %v829_v0, %s772_s22 }
  0x1f   : > { %271 = vrot.lane.b32.xlu1 %v266_v6, %s773_s23  ;;  %269 = vrot.lane.b32.xlu0 %v829_v0, %s773_s23 }
  0x23   : > { %288 = vrot.lane.b32.xlu1 %v283_v7, %s774_s24  ;;  %286 = vrot.lane.b32.xlu0 %v829_v0, %s774_s24 }
  0x27   : > { %305 = vrot.lane.b32.xlu1 %v300_v8, %s775_s25  ;;  %303 = vrot.lane.b32.xlu0 %v829_v0, %s775_s25 }
  0x2b   : > { %322 = vrot.lane.b32.xlu1 %v317_v9, %s776_s26  ;;  %320 = vrot.lane.b32.xlu0 %v829_v0, %s776_s26 }
  0x2f   : > { %339 = vrot.lane.b32.xlu1 %v334_v10, %s779_s27  ;;  %337 = vrot.lane.b32.xlu0 %v829_v0, %s779_s27 }
  0x33   : > { %372 = vperm.xlu0 %739, %v369_v12  }
  0x85   : > { %v236_v13 = vpop.permute.xlu1 %235  ;;  %v218_v14 = vpop.permute.xlu0 %217 }
  0x86   : > { %v239_v17 = vrot.slane %v236_v13, 4  ;;  %v221_v18 = vrot.slane %v218_v14, 4 }
  0x89   : > { %v238_v15 = vpop.permute.xlu1 %237  ;;  %v220_v16 = vpop.permute.xlu0 %219 }
  0x8a   : > { %v240_v19 = vrot.slane %v238_v15, 4  ;;  %247 = vst.msk [vmem:[#allocation2 + $0x20] sm:$0xf] %vm211_vm0, %v238_v15  ;;  %v222_v20 = vrot.slane %v220_v16, 4  ;;  %230 = vst.msk [vmem:[#allocation2 + $0x14] sm:$0xf] %vm211_vm0, %v220_v16 }
  0x8c   : > { %v241_v21 = vsel %vm223_vm2, %v239_v17, %v240_v19  ;;  %v224_v22 = vsel %vm223_vm2, %v221_v18, %v222_v20 }
  0x8d   : > { %v243_v23 = vsel %vm242_vm3, %v236_v13, %v241_v21  ;;  %v226_v24 = vsel %vm225_vm4, %v218_v14, %v224_v22  ;;  %v255_v25 = vpop.permute.xlu1 %254  ;;  %v253_v26 = vpop.permute.xlu0 %252  ;;  %v350_v13 = vld [vmem:[%s899_s1] sm:$0xf] }
  0x8e   : > { %v257_v27 = vrot.slane %v255_v25, 4  ;;  %264 = vst.msk [vmem:[#allocation2 + $0x2c] sm:$0xf] %vm211_vm0, %v255_v25  ;;  %v256_v28 = vrot.slane %v253_v26, 4  ;;  %v660_v29 = vcombine.high %v829_v0, %v226_v24  ;;  %v659_v30 = vcombine.low %v829_v0, %v226_v24 }
  0x90   : > { %v258_v31 = vsel %vm223_vm2, %v256_v28, %v257_v27  ;;  %461 = vmatprep.subr.bf16.mxu0 %v660_v29 }
  0x91   : > { %v260_v32 = vsel %vm259_vm5, %v253_v26, %v258_v31  ;;  %v272_v33 = vpop.permute.xlu1 %271  ;;  %v270_v34 = vpop.permute.xlu0 %269  ;;  %v740_v35 = vld [vmem:[#allocation2 + $0x8] ss:$12 sps:$4 sm:$0xff]   ;;  %462 = vmatpush1.bf16.msra.mxu0 %v659_v30 }
  0x92   : > { %v274_v36 = vrot.slane %v272_v33, 4  ;;  %281 = vst.msk [vmem:[#allocation2 + $0x38] sm:$0xf] %vm211_vm0, %v272_v33  ;;  %v273_v37 = vrot.slane %v270_v34, 4  ;;  %v663_v38 = vcombine.high %v243_v23, %v260_v32  ;;  %v662_v39 = vcombine.low %v243_v23, %v260_v32  ;;  %690 = vmatpush3.bf16.msra.mxu1 %v740_v35 }
  0x93   : > { %691 = vmatprep.subr.bf16.mxu1 %v769_v1 }
  0x94   : > { %v275_v40 = vsel %vm223_vm2, %v273_v37, %v274_v36  ;;  %463 = vmatprep.subr.bf16.mxu0 %v663_v38 }
  0x95   : > { %v277_v41 = vsel %vm276_vm6, %v270_v34, %v275_v40  ;;  %v289_v42 = vpop.permute.xlu1 %288  ;;  %v287_v43 = vpop.permute.xlu0 %286  ;;  %v741_v44 = vld [vmem:[#allocation2 + $0x20] ss:$12 sps:$4 sm:$0xff]   ;;  %464 = vmatpush1.bf16.msra.mxu0 %v662_v39 }
  0x96   : > { %v291_v45 = vrot.slane %v289_v42, 4  ;;  %298 = vst.msk [vmem:[#allocation2 + $0x44] sm:$0xf] %vm211_vm0, %v289_v42  ;;  %v290_v46 = vrot.slane %v287_v43, 4  ;;  %692 = vmatpush3.bf16.msra.mxu1 %v741_v44 }
  0x97   : > { %693 = vmatprep.subr.bf16.mxu1 %v769_v1 }
  0x98   : > { %v292_v47 = vsel %vm223_vm2, %v290_v46, %v291_v45 }
  0x99   : > { %v294_v48 = vsel %vm293_vm7, %v287_v43, %v292_v47  ;;  %v306_v49 = vpop.permute.xlu1 %305  ;;  %v304_v50 = vpop.permute.xlu0 %303 }
  0x9a   : > { %v308_v51 = vrot.slane %v306_v49, 4  ;;  %315 = vst.msk [vmem:[#allocation2 + $0x50] sm:$0xf] %vm211_vm0, %v306_v49  ;;  %v307_v52 = vrot.slane %v304_v50, 4  ;;  %v666_v53 = vcombine.high %v277_v41, %v294_v48  ;;  %v665_v54 = vcombine.low %v277_v41, %v294_v48 }
  0x9c   : > { %v309_v55 = vsel %vm223_vm2, %v307_v52, %v308_v51  ;;  %465 = vmatprep.subr.bf16.mxu0 %v666_v53 }
  0x9d   : > { %v311_v56 = vsel %vm310_vm8, %v304_v50, %v309_v55  ;;  %v323_v57 = vpop.permute.xlu1 %322  ;;  %v321_v58 = vpop.permute.xlu0 %320  ;;  %v742_v59 = vld [vmem:[#allocation2 + $0x38] ss:$12 sps:$4 sm:$0xff]   ;;  %466 = vmatpush1.bf16.msra.mxu0 %v665_v54 }
  0x9e   : > { %v325_v60 = vrot.slane %v323_v57, 4  ;;  %332 = vst.msk [vmem:[#allocation2 + $0x5c] sm:$0xf] %vm211_vm0, %v323_v57  ;;  %v324_v61 = vrot.slane %v321_v58, 4  ;;  %694 = vmatpush3.bf16.msra.mxu1 %v742_v59 }
  0x9f   : > { %695 = vmatprep.subr.bf16.mxu1 %v769_v1 }
  0xa0   : > { %v326_v62 = vsel %vm223_vm2, %v324_v61, %v325_v60 }
  0xa1   : > { %v328_v63 = vsel %vm327_vm9, %v321_v58, %v326_v62  ;;  %v340_v0 = vpop.permute.xlu1 %339  ;;  %v338_v2 = vpop.permute.xlu0 %337 }
  0xa2   : > { %v342_v3 = vrot.slane %v340_v0, 4  ;;  %349 = vst.msk [vmem:[#allocation2 + $0x68] sm:$0xf] %vm211_vm0, %v340_v0  ;;  %v341_v4 = vrot.slane %v338_v2, 4  ;;  %v669_v5 = vcombine.high %v311_v56, %v328_v63  ;;  %v668_v6 = vcombine.low %v311_v56, %v328_v63 }
  0xa4   : > { %v343_v7 = vsel %vm223_vm2, %v341_v4, %v342_v3  ;;  %467 = vmatprep.subr.bf16.mxu0 %v669_v5 }
  0xa5   : > { %v345_v8 = vsel %vm344_vm10, %v338_v2, %v343_v7  ;;  %v743_v9 = vld [vmem:[#allocation2 + $0x50] ss:$12 sps:$4 sm:$0xff]   ;;  %468 = vmatpush1.bf16.msra.mxu0 %v668_v6 }
  0xa6   : > { %v672_v10 = vcombine.high %v345_v8, %v345_v8  ;;  %v671_v11 = vcombine.low %v345_v8, %v345_v8  ;;  %696 = vmatpush3.bf16.msra.mxu1 %v743_v9 }
  0xa7   : > { %697 = vmatprep.subr.bf16.mxu1 %v769_v1 }
  0xa8   : > { %674 = vmatprep.subr.msk.bf16.mxu0 %vm223_vm2, %v672_v10  ;;  %v453_v12 = vsel %vm223_vm2, %v671_v11, 0 }
  0xa9   : > { %v744_v14 = vld [vmem:[#allocation2 + $0x68] ss:$0 sps:$4 sm:$0xff]   ;;  %470 = vmatpush1.bf16.msra.mxu0 %v453_v12 }
  0xaa   : > { %v459_v15 = vsel %vm223_vm2, %v744_v14, 0 }
  0xab   : > { %698 = vmatpush3.bf16.msra.mxu1 %v459_v15 }
  0xac   : > { %675 = vmatmul.mubr.msk.bf16.vlgmr.msra.gmra.mrb[0].mxu0 %vm447_vm11, %v350_v13 }
  0xae   : > { %700 = vmatmul.mubr.msk.bf16.vlgmr.msra.gmra.mrb[0].mxu1 %vm447_vm11, %v350_v13 }
  0xb2   : > { %v373_v16 = vpop.permute.xlu0 %372 }
 0x17f   : > { %v495_v17 = vpop.f32.mrb[0].mxu0 }
 0x180   : > { %v496_v1 = vadd.f32 %v495_v17, %v373_v16  ;;  %v497_v18 = vpop.f32.mrb[1].mxu0 }
 0x181   : > { %v498_v19 = vadd.f32 %v497_v18, %v373_v16  ;;  %v499_v20 = vpop.f32.mrb[2].mxu0  ;;  %v536_v21 = vpop.f32.mrb[0].mxu1 }
 0x182   : > { %v542_v22 = vmax.f32 %v496_v1, 0.0  ;;  %v500_v23 = vpop.f32.mrb[3].mxu0  ;;  %v701_v24 = vpop.f32.mrb[1].mxu1  ;;  %v537_v25 = vadd.f32 %v536_v21, %v373_v16 }
 0x183   : > { %v543_v26 = vmax.f32 %v498_v19, 0.0  ;;  %v539_v27 = vpop.f32.mrb[2].mxu1 }
 0x184   : > { %v544_v28 = vmax.f32 %v537_v25, 0.0  ;;  %v702_v30 = vpop.f32.mrb[3].mxu1 }
 0x185   : > { %v681_v29 = vpack.c.bf16 %v543_v26, %v542_v22 }
 0x186   : > { %v682_v31 = vpack.c.bf16 %v544_v28, %v544_v28 }
 0x187   : > { %558 = vst [vmem:[%s206_s7] sm:$0xff] %v681_v29 }
 0x188   : > { %559 = vst.msk [vmem:[%s206_s7 + $0x8] sm:$0xf] %vm211_vm0, %v682_v31 }
 0x189 PF: > { %s13_s14 = sadd.s32 1, %s767_s14   ;;  %s902_s12 = smov %s763_s13 }
 0x18a   : > { %p10_p5 = scmp.ge.s32.totalorder %s13_s14, 4   ;;  %s903_s13 = smov %s905_s15 }
 0x18c   :  { %12 = sbr.rel (!%p10_p5) target bundleno = 2 (0x2), region = 62 }

// kernel: unet_forward.15
= control target key start
LH: loop header
LB: loop body
LE: loop exit
PB: predicated region body
PF: predicated region fallthrough
CT: control target
= control target key end

     0   :  { %s595_s12 = smov 0   ;;  %s597_s13 = smov 0   ;;  %s658_s0 = inlined_call_operand.vmem [shape: bf16[2,1,8,110], index: 0, kind: input, shape index: {}]   ;;  %s659_s1 = inlined_call_operand.vmem [shape: bf16[16,72], index: 1, kind: input, shape index: {}]   ;;  %s660_s2 = inlined_call_operand.vmem [shape: f32[16,1], index: 2, kind: input, shape index: {}]   ;;  %s661_s3 = inlined_call_operand.vmem [shape: bf16[2,1,16,80], index: 3, kind: output, shape index: {}]  }
   0x1   :  { %s599_s14 = smov 0  }
   0x2 LB: > { %s25_s15 = sadd.s32 1, %s558_s13  ;;  %p459_p0 = scmp.ge.s32.totalorder %s562_s14, 1  ;;  %s562_s14 = sphi %s599_s14, %s13_s14   ;;  %s558_s13 = sphi %s597_s13, %s663_s13   ;;  %s554_s12 = sphi %s595_s12, %s662_s12  }
   0x3   : > { %p27_p1 = scmp.ge.s32.totalorder %s25_s15, 2  ;;  %p155_p2 = scmp.lt.s32.totalorder %s562_s14, 3 }
   0x5   : > { %s665_s15 = smov (%p27_p1, %s25_s15), 0  ;;  %p156_p3 = pnand %p459_p0, %p155_p2 }
   0x6   : > { %p185_p4 = scmp.lt.s32.totalorder (!%p156_p3), %s554_s12, 1  ;;  %v564_v0 = vmov (!%p156_p3), 0.0   ;;  %s565_s20 = smov (!%p156_p3), 127   ;;  %vm203_vm0 = vcmask (!%p156_p3), 650240   ;;  %vm573_vm1 = vmmov (!%p156_p3), 0   ;;  %v264_v10 = vld [vmem:[%s660_s2] sm:$0xff] (!%p156_p3) }
   0x7   : > { %159 = sbr.rel (%p156_p3) target bundleno = 381 (0x17d), region = 32  ;;  %483 = vmatprep.subr.bf16.mxu0 (!%p156_p3), %v564_v0  ;;  %s566_s21 = smov (!%p156_p3), 118   ;;  %493 = vmatprep.mubr.msk.bf16.mxu0 (!%p156_p3), %vm573_vm1, %v564_v0  ;;  %v265_v11 = vld [vmem:[%s660_s2 + $0x8] sm:$0xff] (!%p156_p3)  ;;  %v574_v12 = vmov (!%p156_p3), 0   ;;  %vm312_vm2 = vcmask (!%p156_p3), 1043456   ;;  %v539_v27 = vld [vmem:[%s659_s1] sm:$0xff] (!%p156_p3)  }
   0x8   : > { %s567_s22 = smov (!%p156_p3), 126   ;;  %s568_s23 = smov (!%p156_p3), 117   ;;  %532 = vset.pattern.permute.xlu0 (!%p156_p3), %v574_v12  ;;  %533 = vset.pattern.permute.xlu1 (!%p156_p3), %v574_v12  ;;  %vm308_vm3 = vcmask (!%p156_p3), 588800  }
   0x9   : > { %s569_s24 = smov (!%p156_p3), 116   ;;  %s570_s25 = smov (!%p156_p3), 108  }
   0xa   : > { %s571_s26 = smov (!%p156_p3), 107   ;;  %s572_s27 = smov (!%p156_p3), 106  }
   0xe   : > { %s667_s12 = smov (!%p185_p4, %s554_s12), 1 }
   0xf   : > { %s460_s16 = sshll.u32 %s667_s12, 2  ;;  %s474_s7 = sshll.u32 %s667_s12, 3 }
  0x10   : > { %s191_s19 = scalar_lea.vmem %s658_s0, %s460_s16  ;;  %s200_s10 = scalar_lea.vmem %s661_s3, %s474_s7 }
  0x11   : > { %v205_v1 = vld [vmem:[%s191_s19] sm:$0xf] }
  0x12   : > { %v217_v2 = vld [vmem:[%s191_s19] sm:$0xf]  ;;  %207 = vrot.lane.b32.xlu0 %v205_v1, %s565_s20 }
  0x13   : > { %219 = vrot.lane.b32.xlu1 %v217_v2, %s566_s21  ;;  %v211_v3 = vld [vmem:[%s191_s19] sm:$0xf] }
  0x14   : > { %v223_v4 = vld [vmem:[%s191_s19] sm:$0xf] }
  0x15   : > { %v202_v5 = vld [vmem:[%s191_s19] sm:$0xf] }
  0x16   : > { %204 = vst.msk [vmem:[#allocation2] sm:$0xf] %vm203_vm0, %v202_v5  ;;  %213 = vrot.lane.b32.xlu0 %v211_v3, %s567_s22  ;;  %v229_v6 = vld [vmem:[%s191_s19] sm:$0xf] }
  0x17   : > { %225 = vrot.lane.b32.xlu1 %v223_v4, %s568_s23  ;;  %v235_v7 = vld [vmem:[%s191_s19] sm:$0xf] }
  0x18   : > { %v241_v8 = vld [vmem:[%s191_s19] sm:$0xf] }
  0x19   : > { %v247_v9 = vld [vmem:[%s191_s19] sm:$0xf] }
  0x1a   : > { %231 = vrot.lane.b32.xlu0 %v229_v6, %s569_s24 }
  0x1b   : > { %237 = vrot.lane.b32.xlu1 %v235_v7, %s570_s25 }
  0x1e   : > { %243 = vrot.lane.b32.xlu0 %v241_v8, %s571_s26 }
  0x1f   : > { %249 = vrot.lane.b32.xlu1 %v247_v9, %s572_s27 }
  0x22   : > { %268 = vperm.xlu0 %532, %v264_v10  }
  0x23   : > { %273 = vperm.xlu1 %533, %v265_v11  }
  0x84   : > { %v208_v13 = vpop.permute.xlu0 %207 }
  0x85   : > { %v220_v14 = vpop.permute.xlu1 %219  ;;  %210 = vst.msk [vmem:[#allocation2 + $0x4] sm:$0xf] %vm203_vm0, %v208_v13 }
  0x86   : > { %222 = vst.msk [vmem:[#allocation2 + $0xc] sm:$0xf] %vm203_vm0, %v220_v14 }
  0x88   : > { %v214_v15 = vpop.permute.xlu0 %213 }
  0x89   : > { %v226_v16 = vpop.permute.xlu1 %225  ;;  %216 = vst.msk [vmem:[#allocation2 + $0x8] sm:$0xf] %vm203_vm0, %v214_v15 }
  0x8a   : > { %228 = vst.msk [vmem:[#allocation2 + $0x10] sm:$0xf] %vm203_vm0, %v226_v16 }
  0x8c   : > { %v232_v17 = vpop.permute.xlu0 %231  ;;  %v534_v19 = vld [vmem:[#allocation2] sm:$0xff]  }
  0x8d   : > { %v238_v18 = vpop.permute.xlu1 %237  ;;  %234 = vst.msk [vmem:[#allocation2 + $0x14] sm:$0xf] %vm203_vm0, %v232_v17  ;;  %484 = vmatpush3.bf16.msra.mxu0 %v534_v19 }
  0x8e   : > { %240 = vst.msk [vmem:[#allocation2 + $0x18] sm:$0xf] %vm203_vm0, %v238_v18  ;;  %485 = vmatprep.subr.bf16.mxu0 %v564_v0 }
  0x90   : > { %v244_v20 = vpop.permute.xlu0 %243  ;;  %v535_v22 = vld [vmem:[#allocation2 + $0x8] sm:$0xff]  }
  0x91   : > { %v250_v21 = vpop.permute.xlu1 %249  ;;  %246 = vst.msk [vmem:[#allocation2 + $0x1c] sm:$0xf] %vm203_vm0, %v244_v20  ;;  %486 = vmatpush3.bf16.msra.mxu0 %v535_v22 }
  0x92   : > { %252 = vst.msk [vmem:[#allocation2 + $0x20] sm:$0xf] %vm203_vm0, %v250_v21  ;;  %487 = vmatprep.subr.bf16.mxu0 %v564_v0 }
  0x94   : > { %v536_v23 = vld [vmem:[#allocation2 + $0x10] sm:$0xff]  }
  0x95   : > { %488 = vmatpush3.bf16.msra.mxu0 %v536_v23 }
  0x96   : > { %489 = vmatprep.subr.bf16.mxu0 %v564_v0 }
  0x98   : > { %v537_v24 = vld [vmem:[#allocation2 + $0x18] sm:$0xff]  }
  0x99   : > { %v538_v25 = vld [vmem:[#allocation2 + $0x20] ss:$0 sps:$4 sm:$0xff]   ;;  %490 = vmatpush3.bf16.msra.mxu0 %v537_v24 }
  0x9a   : > { %491 = vmatprep.subr.bf16.mxu0 %v564_v0  ;;  %v314_v26 = vsel %vm312_vm2, %v538_v25, 0 }
  0x9d   : > { %492 = vmatpush3.bf16.msra.mxu0 %v314_v26 }
  0xa0   : > { %494 = vmatmul.mubr.msk.bf16.vlgmr.msra.gmra.mrb[0].mxu0 %vm308_vm3, %v539_v27 }
  0xa1   : > { %v269_v28 = vpop.permute.xlu0 %268 }
  0xa2   : > { %v274_v30 = vpop.permute.xlu1 %273 }
 0x173   : > { %v350_v29 = vpop.f32.mrb[0].mxu0 }
 0x174   : > { %v351_v31 = vadd.f32 %v350_v29, %v269_v28  ;;  %v495_v32 = vpop.f32.mrb[1].mxu0 }
 0x175   : > { %v353_v33 = vpop.f32.mrb[2].mxu0 }
 0x176   : > { %v357_v34 = vmax.f32 %v351_v31, 0.0  ;;  %v354_v35 = vadd.f32 %v353_v33, %v274_v30  ;;  %v496_v36 = vpop.f32.mrb[3].mxu0 }
 0x178   : > { %v475_v37 = vpack.c.bf16 %v357_v34, %v357_v34  ;;  %v358_v38 = vmax.f32 %v354_v35, 0.0 }
 0x17a   : > { %367 = vst.msk [vmem:[%s200_s10] sm:$0xf] %vm203_vm0, %v475_v37  ;;  %v476_v39 = vpack.c.bf16 %v358_v38, %v358_v38 }
 0x17c   : > { %368 = vst.msk [vmem:[%s200_s10 + $0x4] sm:$0xf] %vm203_vm0, %v476_v39 }
 0x17d PF: > { %s13_s14 = sadd.s32 1, %s562_s14   ;;  %s662_s12 = smov %s558_s13 }
 0x17e   : > { %p10_p5 = scmp.ge.s32.totalorder %s13_s14, 4   ;;  %s663_s13 = smov %s665_s15 }
 0x180   :  { %12 = sbr.rel (!%p10_p5) target bundleno = 2 (0x2), region = 62 }

// kernel: unet_forward.16
= control target key start
LH: loop header
LB: loop body
LE: loop exit
PB: predicated region body
PF: predicated region fallthrough
CT: control target
= control target key end

     0   :  { %s617_s12 = smov 0   ;;  %s619_s13 = smov 0   ;;  %s689_s0 = inlined_call_operand.vmem [shape: bf16[2,1,16,110], index: 0, kind: input, shape index: {}]   ;;  %s690_s1 = inlined_call_operand.vmem [shape: bf16[16,144], index: 1, kind: input, shape index: {}]   ;;  %s691_s2 = inlined_call_operand.vmem [shape: f32[16,1], index: 2, kind: input, shape index: {}]   ;;  %s692_s3 = inlined_call_operand.vmem [shape: bf16[2,1,16,80], index: 3, kind: output, shape index: {}]  }
   0x1   :  { %s621_s14 = smov 0  }
   0x2 LB: > { %s25_s15 = sadd.s32 1, %s582_s13  ;;  %p492_p0 = scmp.ge.s32.totalorder %s586_s14, 1  ;;  %s586_s14 = sphi %s621_s14, %s13_s14   ;;  %s582_s13 = sphi %s619_s13, %s694_s13   ;;  %s578_s12 = sphi %s617_s12, %s693_s12  }
   0x3   : > { %p27_p1 = scmp.ge.s32.totalorder %s25_s15, 2  ;;  %p157_p2 = scmp.lt.s32.totalorder %s586_s14, 3 }
   0x5   : > { %s696_s15 = smov (%p27_p1, %s25_s15), 0  ;;  %p158_p3 = pnand %p492_p0, %p157_p2 }
   0x6   : > { %p189_p4 = scmp.lt.s32.totalorder (!%p158_p3), %s578_s12, 1  ;;  %v588_v0 = vmov (!%p158_p3), 0   ;;  %s589_s20 = smov (!%p158_p3), 127   ;;  %vm216_vm0 = vcmask (!%p158_p3), 654336   ;;  %v563_v11 = vld [vmem:[%s690_s1 + $0x4] ss:$8 sps:$4 sm:$0xff] (!%p158_p3)  }
   0x7   : > { %161 = sbr.rel (%p158_p3) target bundleno = 393 (0x189), region = 32  ;;  %342 = vmatprep.subr.bf16.mxu0 (!%p158_p3), %v588_v0  ;;  %550 = vset.pattern.permute.xlu0 (!%p158_p3), %v588_v0  ;;  %s590_s21 = smov (!%p158_p3), 118   ;;  %vm338_vm1 = vcmask (!%p158_p3), 130048   ;;  %v317_v12 = vld [vmem:[%s691_s2] sm:$0xff] (!%p158_p3)  ;;  %v318_v13 = vld [vmem:[%s691_s2 + $0x8] sm:$0xff] (!%p158_p3)  ;;  %vm393_vm2 = vcmask (!%p158_p3), 650240  }
   0x8   : > { %551 = vset.pattern.permute.xlu1 (!%p158_p3), %v588_v0  ;;  %s591_s22 = smov (!%p158_p3), 126   ;;  %s592_s23 = smov (!%p158_p3), 117   ;;  %508 = vmatprep.mubr.msk.bf16.mxu0 (!%p158_p3), %vm338_vm1, %v563_v11  ;;  %v561_v30 = vld [vmem:[%s690_s1] ss:$8 sps:$4 sm:$0xff] (!%p158_p3)  }
   0x9   : > { %s593_s24 = smov (!%p158_p3), 116   ;;  %s594_s25 = smov (!%p158_p3), 108  }
   0xa   : > { %s595_s26 = smov (!%p158_p3), 107   ;;  %s596_s27 = smov (!%p158_p3), 106  }
   0xe   : > { %s698_s12 = smov (!%p189_p4, %s578_s12), 1 }
   0xf   : > { %s513_s16 = sshll.u32 %s698_s12, 3 }
  0x10   : > { %s197_s19 = scalar_lea.vmem %s689_s0, %s513_s16  ;;  %s206_s11 = scalar_lea.vmem %s692_s3, %s513_s16 }
  0x11   : > { %v552_v1 = vld [vmem:[%s197_s19] sm:$0xff]  }
  0x12   : > { %v553_v2 = vld [vmem:[%s197_s19] sm:$0xff]   ;;  %225 = vrot.lane.b32.xlu0 %v552_v1, %s589_s20 }
  0x13   : > { %v554_v3 = vld [vmem:[%s197_s19] sm:$0xff]  }
  0x14   : > { %247 = vrot.lane.b32.xlu1 %v554_v3, %s590_s21  ;;  %v555_v4 = vld [vmem:[%s197_s19] sm:$0xff]  }
  0x15   : > { %v556_v5 = vld [vmem:[%s197_s19] sm:$0xff]  }
  0x16   : > { %236 = vrot.lane.b32.xlu0 %v553_v2, %s591_s22  ;;  %v557_v6 = vld [vmem:[%s197_s19] sm:$0xff]  }
  0x17   : > { %v560_v7 = vld [vmem:[%s197_s19] sm:$0xff]  }
  0x18   : > { %258 = vrot.lane.b32.xlu1 %v555_v4, %s592_s23  ;;  %v558_v8 = vld [vmem:[%s197_s19] sm:$0xff]   ;;  %217 = vst.msk [vmem:[#allocation2] sm:$0xff] %vm216_vm0, %v560_v7 }
  0x19   : > { %v559_v9 = vld [vmem:[%s197_s19] sm:$0xff]  }
  0x1a   : > { %269 = vrot.lane.b32.xlu0 %v556_v5, %s593_s24 }
  0x1c   : > { %280 = vrot.lane.b32.xlu1 %v557_v6, %s594_s25 }
  0x1e   : > { %291 = vrot.lane.b32.xlu0 %v558_v8, %s595_s26 }
  0x1f   : > { %v308_v10 = vld [vmem:[#allocation2] sm:$0xff] }
  0x20   : > { %302 = vrot.lane.b32.xlu1 %v559_v9, %s596_s27  ;;  %343 = vmatpush1.bf16.msra.mxu0 %v308_v10 }
  0x21   : > { %344 = vmatprep.subr.bf16.mxu0 %v588_v0 }
  0x22   : > { %321 = vperm.xlu0 %550, %v317_v12  }
  0x24   : > { %326 = vperm.xlu1 %551, %v318_v13  }
  0x84   : > { %v226_v14 = vpop.permute.xlu0 %225 }
  0x85   : > { %228 = vst.msk [vmem:[#allocation2 + $0x8] sm:$0xff] %vm216_vm0, %v226_v14 }
  0x86   : > { %v248_v15 = vpop.permute.xlu1 %247 }
  0x87   : > { %250 = vst.msk [vmem:[#allocation2 + $0x18] sm:$0xff] %vm216_vm0, %v248_v15 }
  0x88   : > { %v237_v16 = vpop.permute.xlu0 %236 }
  0x89   : > { %239 = vst.msk [vmem:[#allocation2 + $0x10] sm:$0xff] %vm216_vm0, %v237_v16 }
  0x8a   : > { %v259_v17 = vpop.permute.xlu1 %258 }
  0x8b   : > { %261 = vst.msk [vmem:[#allocation2 + $0x20] sm:$0xff] %vm216_vm0, %v259_v17 }
  0x8c   : > { %v309_v18 = vld [vmem:[#allocation2 + $0x8] sm:$0xff]  ;;  %v270_v19 = vpop.permute.xlu0 %269 }
  0x8d   : > { %345 = vmatpush1.bf16.msra.mxu0 %v309_v18  ;;  %272 = vst.msk [vmem:[#allocation2 + $0x28] sm:$0xff] %vm216_vm0, %v270_v19 }
  0x8e   : > { %346 = vmatprep.subr.bf16.mxu0 %v588_v0  ;;  %v281_v20 = vpop.permute.xlu1 %280  ;;  %v311_v23 = vld [vmem:[#allocation2 + $0x18] sm:$0xff] }
  0x8f   : > { %283 = vst.msk [vmem:[#allocation2 + $0x30] sm:$0xff] %vm216_vm0, %v281_v20 }
  0x90   : > { %v310_v21 = vld [vmem:[#allocation2 + $0x10] sm:$0xff]  ;;  %v292_v22 = vpop.permute.xlu0 %291 }
  0x91   : > { %347 = vmatpush1.bf16.msra.mxu0 %v310_v21  ;;  %294 = vst.msk [vmem:[#allocation2 + $0x38] sm:$0xff] %vm216_vm0, %v292_v22 }
  0x92   : > { %348 = vmatprep.subr.bf16.mxu0 %v588_v0  ;;  %v303_v24 = vpop.permute.xlu1 %302  ;;  %v312_v25 = vld [vmem:[#allocation2 + $0x20] sm:$0xff] }
  0x93   : > { %305 = vst.msk [vmem:[#allocation2 + $0x40] sm:$0xff] %vm216_vm0, %v303_v24 }
  0x94   : > { %v313_v26 = vld [vmem:[#allocation2 + $0x28] sm:$0xff] }
  0x95   : > { %349 = vmatpush1.bf16.msra.mxu0 %v311_v23 }
  0x96   : > { %350 = vmatprep.subr.bf16.mxu0 %v588_v0  ;;  %v314_v27 = vld [vmem:[#allocation2 + $0x30] sm:$0xff] }
  0x98   : > { %v315_v28 = vld [vmem:[#allocation2 + $0x38] sm:$0xff] }
  0x99   : > { %351 = vmatpush1.bf16.msra.mxu0 %v312_v25 }
  0x9a   : > { %352 = vmatprep.subr.bf16.mxu0 %v588_v0  ;;  %v316_v29 = vld [vmem:[#allocation2 + $0x40] sm:$0xff] }
  0x9d   : > { %353 = vmatpush1.bf16.msra.mxu0 %v313_v26 }
  0x9e   : > { %354 = vmatprep.subr.bf16.mxu0 %v588_v0 }
  0xa1   : > { %355 = vmatpush1.bf16.msra.mxu0 %v314_v27  ;;  %v322_v31 = vpop.permute.xlu0 %321 }
  0xa2   : > { %356 = vmatprep.subr.bf16.mxu0 %v588_v0 }
  0xa3   : > { %v327_v33 = vpop.permute.xlu1 %326 }
  0xa5   : > { %357 = vmatpush1.bf16.msra.mxu0 %v315_v28 }
  0xa6   : > { %358 = vmatprep.subr.bf16.mxu0 %v588_v0 }
  0xa9   : > { %359 = vmatpush1.bf16.msra.mxu0 %v316_v29 }
  0xac   : > { %375 = vmatmul.mubr.bf16.vlgmr.msra.gmra.mrb[0].mxu0 %v561_v30 }
 0x17f   : > { %v376_v32 = vpop.f32.mrb[0].mxu0 }
 0x180   : > { %v377_v34 = vadd.f32 %v376_v32, %v322_v31  ;;  %v378_v35 = vpop.f32.mrb[1].mxu0 }
 0x181   : > { %v379_v36 = vpop.f32.mrb[2].mxu0 }
 0x182   : > { %v383_v37 = vmax.f32 %v377_v34, 0.0  ;;  %v380_v38 = vadd.f32 %v379_v36, %v327_v33  ;;  %v381_v39 = vpop.f32.mrb[3].mxu0 }
 0x184   : > { %v515_v40 = vpack.c.bf16 %v383_v37, %v383_v37  ;;  %v384_v41 = vmax.f32 %v380_v38, 0.0 }
 0x186   : > { %394 = vst.msk [vmem:[%s206_s11] sm:$0xf] %vm393_vm2, %v515_v40  ;;  %v516_v42 = vpack.c.bf16 %v384_v41, %v384_v41 }
 0x188   : > { %395 = vst.msk [vmem:[%s206_s11 + $0x4] sm:$0xf] %vm393_vm2, %v516_v42 }
 0x189 PF: > { %s13_s14 = sadd.s32 1, %s586_s14   ;;  %s693_s12 = smov %s582_s13 }
 0x18a   : > { %p10_p5 = scmp.ge.s32.totalorder %s13_s14, 4   ;;  %s694_s13 = smov %s696_s15 }
 0x18c   :  { %12 = sbr.rel (!%p10_p5) target bundleno = 2 (0x2), region = 62 }

// kernel: tile.13
= control target key start
LH: loop header
LB: loop body
LE: loop exit
PB: predicated region body
PF: predicated region fallthrough
CT: control target
= control target key end

     0   :  { %s22_s0 = inlined_call_operand.vmem [shape: f32[16], index: 0, kind: input, shape index: {}]   ;;  %s23_s1 = inlined_call_operand.vmem [shape: f32[4,16], index: 1, kind: output, shape index: {}]  }
   0x1   :  { %v4_v0 = vld [vmem:[%s22_s0] ss:$0 sm:$0xff] }
   0x2   :  { %5 = vst [vmem:[%s23_s1] sm:$0xf] %v4_v0 }

// kernel: tile.0
= control target key start
LH: loop header
LB: loop body
LE: loop exit
PB: predicated region body
PF: predicated region fallthrough
CT: control target
= control target key end

     0   :  { %s176_s8 = smov 125   ;;  %s177_s9 = smov 126   ;;  %vm7_vm0 = vcmask 7168   ;;  %s331_s0 = inlined_call_operand.vmem [shape: f32[4,16], index: 0, kind: input, shape index: {}]   ;;  %s332_s1 = inlined_call_operand.vmem [shape: f32[64,1], index: 1, kind: output, shape index: {}]  }
   0x1   :  { %v4_v0 = vld [vmem:[%s331_s0] sm:$0xf]  ;;  %s175_s0 = smov 127   ;;  %s178_s10 = smov 124  }
   0x2   :  { %5 = vst [vmem:[#allocation0] sm:$0xf] %v4_v0  ;;  %s179_s11 = smov 123   ;;  %s180_s12 = smov 122  }
   0x3   :  { %s181_s13 = smov 121   ;;  %s182_s14 = smov 120  }
   0x4   :  { %s183_s19 = smov 119   ;;  %s184_s20 = smov 118  }
   0x5   :  { %s185_s21 = smov 117   ;;  %s186_s22 = smov 116  }
   0x6   :  { %s187_s23 = smov 115   ;;  %s188_s24 = smov 114  }
   0x7   :  { %s189_s25 = smov 113  }
   0x9   :  { %v10_v1 = vld [vmem:[#allocation0] sm:$0xf]  }
   0xa   :  { %v26_v2 = vld [vmem:[#allocation0] sm:$0xf]   ;;  %11 = vrot.lane.b32.xlu0 %v10_v1, %s175_s0 }
   0xb   :  { %27 = vrot.lane.b32.xlu1 %v26_v2, %s176_s8  ;;  %v18_v3 = vld [vmem:[#allocation0] sm:$0xf]  }
   0xc   :  { %v34_v4 = vld [vmem:[#allocation0] sm:$0xf]  }
   0xd   :  { %v42_v5 = vld [vmem:[#allocation0] sm:$0xf]  }
   0xe   :  { %19 = vrot.lane.b32.xlu0 %v18_v3, %s177_s9  ;;  %v50_v6 = vld [vmem:[#allocation0] sm:$0xf]  }
   0xf   :  { %35 = vrot.lane.b32.xlu1 %v34_v4, %s178_s10  ;;  %v58_v7 = vld [vmem:[#allocation0] sm:$0xf]  }
  0x10   :  { %v66_v8 = vld [vmem:[#allocation0] sm:$0xf]  }
  0x11   :  { %v74_v9 = vld [vmem:[#allocation0] sm:$0xf]  }
  0x12   :  { %43 = vrot.lane.b32.xlu0 %v42_v5, %s179_s11  ;;  %v82_v10 = vld [vmem:[#allocation0] sm:$0xf]  }
  0x13   :  { %51 = vrot.lane.b32.xlu1 %v50_v6, %s180_s12  ;;  %v6_v11 = vld [vmem:[#allocation0] sm:$0xf]  }
  0x14   :  { %8 = vst.msk [vmem:[%s332_s1] ss:$16 sm:$0x3] %vm7_vm0, %v6_v11   ;;  %9 = vst.msk [vmem:[%s332_s1] ss:$16 sm:$0xc] %vm7_vm0, %v6_v11  }
  0x15   :  { %v90_v12 = vld [vmem:[#allocation0] sm:$0xf]  }
  0x16   :  { %59 = vrot.lane.b32.xlu0 %v58_v7, %s181_s13  ;;  %v98_v13 = vld [vmem:[#allocation0] sm:$0xf]  }
  0x17   :  { %67 = vrot.lane.b32.xlu1 %v66_v8, %s182_s14  ;;  %v106_v14 = vld [vmem:[#allocation0] sm:$0xf]  }
  0x18   :  { %v114_v15 = vld [vmem:[#allocation0] sm:$0xf]  }
  0x19   :  { %v122_v16 = vld [vmem:[#allocation0] sm:$0xf]  }
  0x1a   :  { %75 = vrot.lane.b32.xlu0 %v74_v9, %s183_s19 }
  0x1b   :  { %83 = vrot.lane.b32.xlu1 %v82_v10, %s184_s20 }
  0x1e   :  { %91 = vrot.lane.b32.xlu0 %v90_v12, %s185_s21 }
  0x1f   :  { %99 = vrot.lane.b32.xlu1 %v98_v13, %s186_s22 }
  0x22   :  { %107 = vrot.lane.b32.xlu0 %v106_v14, %s187_s23 }
  0x23   :  { %115 = vrot.lane.b32.xlu1 %v114_v15, %s188_s24 }
  0x26   :  { %123 = vrot.lane.b32.xlu0 %v122_v16, %s189_s25 }
  0x7c   :  { %v12_v17 = vpop.permute.xlu0 %11  }
  0x7d   :  { %v28_v18 = vpop.permute.xlu1 %27   ;;  %130 = vst.msk [vmem:[%s332_s1 + $0x1] ss:$16 sm:$0x3] %vm7_vm0, %v12_v17   ;;  %131 = vst.msk [vmem:[%s332_s1 + $0x1] ss:$16 sm:$0xc] %vm7_vm0, %v12_v17  }
  0x7e   :  { %134 = vst.msk [vmem:[%s332_s1 + $0x3] ss:$16 sm:$0x3] %vm7_vm0, %v28_v18   ;;  %135 = vst.msk [vmem:[%s332_s1 + $0x3] ss:$16 sm:$0xc] %vm7_vm0, %v28_v18  }
  0x80   :  { %v20_v19 = vpop.permute.xlu0 %19  }
  0x81   :  { %v36_v20 = vpop.permute.xlu1 %35   ;;  %132 = vst.msk [vmem:[%s332_s1 + $0x2] ss:$16 sm:$0x3] %vm7_vm0, %v20_v19   ;;  %133 = vst.msk [vmem:[%s332_s1 + $0x2] ss:$16 sm:$0xc] %vm7_vm0, %v20_v19  }
  0x82   :  { %136 = vst.msk [vmem:[%s332_s1 + $0x4] ss:$16 sm:$0x3] %vm7_vm0, %v36_v20   ;;  %137 = vst.msk [vmem:[%s332_s1 + $0x4] ss:$16 sm:$0xc] %vm7_vm0, %v36_v20  }
  0x84   :  { %v44_v21 = vpop.permute.xlu0 %43  }
  0x85   :  { %v52_v22 = vpop.permute.xlu1 %51   ;;  %138 = vst.msk [vmem:[%s332_s1 + $0x5] ss:$16 sm:$0x3] %vm7_vm0, %v44_v21   ;;  %139 = vst.msk [vmem:[%s332_s1 + $0x5] ss:$16 sm:$0xc] %vm7_vm0, %v44_v21  }
  0x86   :  { %140 = vst.msk [vmem:[%s332_s1 + $0x6] ss:$16 sm:$0x3] %vm7_vm0, %v52_v22   ;;  %141 = vst.msk [vmem:[%s332_s1 + $0x6] ss:$16 sm:$0xc] %vm7_vm0, %v52_v22  }
  0x88   :  { %v60_v23 = vpop.permute.xlu0 %59  }
  0x89   :  { %v68_v24 = vpop.permute.xlu1 %67   ;;  %142 = vst.msk [vmem:[%s332_s1 + $0x7] ss:$16 sm:$0x3] %vm7_vm0, %v60_v23   ;;  %143 = vst.msk [vmem:[%s332_s1 + $0x7] ss:$16 sm:$0xc] %vm7_vm0, %v60_v23  }
  0x8a   :  { %144 = vst.msk [vmem:[%s332_s1 + $0x8] ss:$16 sm:$0x3] %vm7_vm0, %v68_v24   ;;  %145 = vst.msk [vmem:[%s332_s1 + $0x8] ss:$16 sm:$0xc] %vm7_vm0, %v68_v24  }
  0x8c   :  { %v76_v25 = vpop.permute.xlu0 %75  }
  0x8d   :  { %v84_v26 = vpop.permute.xlu1 %83   ;;  %146 = vst.msk [vmem:[%s332_s1 + $0x9] ss:$16 sm:$0x3] %vm7_vm0, %v76_v25   ;;  %147 = vst.msk [vmem:[%s332_s1 + $0x9] ss:$16 sm:$0xc] %vm7_vm0, %v76_v25  }
  0x8e   :  { %148 = vst.msk [vmem:[%s332_s1 + $0xa] ss:$16 sm:$0x3] %vm7_vm0, %v84_v26   ;;  %149 = vst.msk [vmem:[%s332_s1 + $0xa] ss:$16 sm:$0xc] %vm7_vm0, %v84_v26  }
  0x90   :  { %v92_v27 = vpop.permute.xlu0 %91  }
  0x91   :  { %v100_v28 = vpop.permute.xlu1 %99   ;;  %150 = vst.msk [vmem:[%s332_s1 + $0xb] ss:$16 sm:$0x3] %vm7_vm0, %v92_v27   ;;  %151 = vst.msk [vmem:[%s332_s1 + $0xb] ss:$16 sm:$0xc] %vm7_vm0, %v92_v27  }
  0x92   :  { %152 = vst.msk [vmem:[%s332_s1 + $0xc] ss:$16 sm:$0x3] %vm7_vm0, %v100_v28   ;;  %153 = vst.msk [vmem:[%s332_s1 + $0xc] ss:$16 sm:$0xc] %vm7_vm0, %v100_v28  }
  0x94   :  { %v108_v29 = vpop.permute.xlu0 %107  }
  0x95   :  { %v116_v30 = vpop.permute.xlu1 %115   ;;  %154 = vst.msk [vmem:[%s332_s1 + $0xd] ss:$16 sm:$0x3] %vm7_vm0, %v108_v29   ;;  %155 = vst.msk [vmem:[%s332_s1 + $0xd] ss:$16 sm:$0xc] %vm7_vm0, %v108_v29  }
  0x96   :  { %156 = vst.msk [vmem:[%s332_s1 + $0xe] ss:$16 sm:$0x3] %vm7_vm0, %v116_v30   ;;  %157 = vst.msk [vmem:[%s332_s1 + $0xe] ss:$16 sm:$0xc] %vm7_vm0, %v116_v30  }
  0x98   :  { %v124_v31 = vpop.permute.xlu0 %123  }
  0x99   :  { %158 = vst.msk [vmem:[%s332_s1 + $0xf] ss:$16 sm:$0x3] %vm7_vm0, %v124_v31   ;;  %159 = vst.msk [vmem:[%s332_s1 + $0xf] ss:$16 sm:$0xc] %vm7_vm0, %v124_v31  }

// kernel: unet_forward.17
= control target key start
LH: loop header
LB: loop body
LE: loop exit
PB: predicated region body
PF: predicated region fallthrough
CT: control target
= control target key end

     0   :  { %s691_s12 = smov 0   ;;  %s693_s13 = smov 0   ;;  %s781_s0 = inlined_call_operand.vmem [shape: bf16[2,1,16,42], index: 0, kind: input, shape index: {}]   ;;  %s782_s1 = inlined_call_operand.vmem [shape: bf16[32,144], index: 1, kind: input, shape index: {}]   ;;  %s783_s2 = inlined_call_operand.vmem [shape: f32[32,1], index: 2, kind: input, shape index: {}]   ;;  %s784_s3 = inlined_call_operand.vmem [shape: bf16[2,1,32,24], index: 3, kind: output, shape index: {}]  }
   0x1   :  { %s695_s14 = smov 0  }
   0x2 LB: > { %s25_s15 = sadd.s32 1, %s656_s13  ;;  %p538_p0 = scmp.ge.s32.totalorder %s660_s14, 1  ;;  %s660_s14 = sphi %s695_s14, %s13_s14   ;;  %s656_s13 = sphi %s693_s13, %s786_s13   ;;  %s652_s12 = sphi %s691_s12, %s785_s12  }
   0x3   : > { %p27_p1 = scmp.ge.s32.totalorder %s25_s15, 2  ;;  %p157_p2 = scmp.lt.s32.totalorder %s660_s14, 3 }
   0x5   : > { %s788_s15 = smov (%p27_p1, %s25_s15), 0  ;;  %p158_p3 = pnand %p538_p0, %p157_p2 }
   0x6   : > { %p189_p4 = scmp.lt.s32.totalorder (!%p158_p3), %s652_s12, 1  ;;  %v662_v0 = vmov (!%p158_p3), 0   ;;  %s663_s20 = smov (!%p158_p3), 127   ;;  %vm216_vm0 = vcmask (!%p158_p3), 195584   ;;  %v634_v11 = vld [vmem:[%s782_s1 + $0x4] ss:$8 sps:$4 sm:$0xff] (!%p158_p3)  }
   0x7   : > { %161 = sbr.rel (%p158_p3) target bundleno = 393 (0x189), region = 32  ;;  %368 = vmatprep.subr.bf16.mxu0 (!%p158_p3), %v662_v0  ;;  %570 = vmatprep.subr.bf16.mxu1 (!%p158_p3), %v662_v0  ;;  %s664_s21 = smov (!%p158_p3), 122   ;;  %vm361_vm1 = vcmask (!%p158_p3), 130048   ;;  %v637_v12 = vld [vmem:[%s782_s1 + $0x14] ss:$8 sps:$4 sm:$0xff] (!%p158_p3)   ;;  %v320_v13 = vld [vmem:[%s783_s2 + $0x8] sm:$0xff] (!%p158_p3) }
   0x8   : > { %622 = vset.pattern.permute.xlu1 (!%p158_p3), %v662_v0  ;;  %621 = vset.pattern.permute.xlu0 (!%p158_p3), %v662_v0  ;;  %s665_s22 = smov (!%p158_p3), 126   ;;  %s666_s23 = smov (!%p158_p3), 121   ;;  %v319_v14 = vld [vmem:[%s783_s2] sm:$0xff] (!%p158_p3)  ;;  %v321_v15 = vld [vmem:[%s783_s2 + $0x10] sm:$0xff] (!%p158_p3)  ;;  %v322_v16 = vld [vmem:[%s783_s2 + $0x18] sm:$0xff] (!%p158_p3)  ;;  %vm437_vm2 = vcmask (!%p158_p3), 191488  }
   0x9   : > { %s667_s24 = smov (!%p158_p3), 120   ;;  %s668_s25 = smov (!%p158_p3), 116   ;;  %556 = vmatprep.mubr.msk.bf16.mxu0 (!%p158_p3), %vm361_vm1, %v634_v11  ;;  %557 = vmatprep.mubr.msk.bf16.mxu1 (!%p158_p3), %vm361_vm1, %v637_v12  ;;  %v632_v33 = vld [vmem:[%s782_s1] ss:$8 sps:$4 sm:$0xff] (!%p158_p3)   ;;  %v635_v34 = vld [vmem:[%s782_s1 + $0x10] ss:$8 sps:$4 sm:$0xff] (!%p158_p3)  }
   0xa   : > { %s669_s26 = smov (!%p158_p3), 115   ;;  %s670_s27 = smov (!%p158_p3), 114  }
   0xe   : > { %s790_s12 = smov (!%p189_p4, %s652_s12), 1 }
   0xf   : > { %s564_s16 = sshll.u32 %s790_s12, 3 }
  0x10   : > { %s197_s19 = scalar_lea.vmem %s781_s0, %s564_s16 }
  0x11   : > { %v623_v1 = vld [vmem:[%s197_s19] sm:$0xff]  }
  0x12   : > { %v624_v2 = vld [vmem:[%s197_s19] sm:$0xff]   ;;  %225 = vrot.lane.b32.xlu0 %v623_v1, %s663_s20 }
  0x13   : > { %v625_v3 = vld [vmem:[%s197_s19] sm:$0xff]  }
  0x14   : > { %247 = vrot.lane.b32.xlu1 %v625_v3, %s664_s21  ;;  %v626_v4 = vld [vmem:[%s197_s19] sm:$0xff]   ;;  %s565_s21 = sshll.u32 %s790_s12, 4 }
  0x15   : > { %v627_v5 = vld [vmem:[%s197_s19] sm:$0xff]  }
  0x16   : > { %236 = vrot.lane.b32.xlu0 %v624_v2, %s665_s22  ;;  %v628_v6 = vld [vmem:[%s197_s19] sm:$0xff]  }
  0x17   : > { %v631_v7 = vld [vmem:[%s197_s19] sm:$0xff]  }
  0x18   : > { %258 = vrot.lane.b32.xlu1 %v626_v4, %s666_s23  ;;  %v629_v8 = vld [vmem:[%s197_s19] sm:$0xff]   ;;  %217 = vst.msk [vmem:[#allocation2] sm:$0xff] %vm216_vm0, %v631_v7 }
  0x19   : > { %v630_v9 = vld [vmem:[%s197_s19] sm:$0xff]  }
  0x1a   : > { %269 = vrot.lane.b32.xlu0 %v627_v5, %s667_s24  ;;  %s206_s24 = scalar_lea.vmem %s784_s3, %s565_s21 }
  0x1c   : > { %280 = vrot.lane.b32.xlu1 %v628_v6, %s668_s25 }
  0x1e   : > { %291 = vrot.lane.b32.xlu0 %v629_v8, %s669_s26 }
  0x1f   : > { %v310_v10 = vld [vmem:[#allocation2] sm:$0xff] }
  0x20   : > { %302 = vrot.lane.b32.xlu1 %v630_v9, %s670_s27  ;;  %369 = vmatpush1.bf16.msra.mxu0 %v310_v10 }
  0x21   : > { %579 = vmatpush1.bf16.msra.mxu1 %v310_v10  ;;  %370 = vmatprep.subr.bf16.mxu0 %v662_v0 }
  0x22   : > { %571 = vmatprep.subr.bf16.mxu1 %v662_v0  ;;  %325 = vperm.xlu0 %621, %v319_v14  }
  0x24   : > { %330 = vperm.xlu1 %622, %v320_v13  }
  0x26   : > { %340 = vperm.xlu0 %621, %v322_v16  }
  0x28   : > { %335 = vperm.xlu1 %622, %v321_v15  }
  0x84   : > { %v226_v17 = vpop.permute.xlu0 %225 }
  0x85   : > { %228 = vst.msk [vmem:[#allocation2 + $0x8] sm:$0xff] %vm216_vm0, %v226_v17 }
  0x86   : > { %v248_v18 = vpop.permute.xlu1 %247 }
  0x87   : > { %250 = vst.msk [vmem:[#allocation2 + $0x18] sm:$0xff] %vm216_vm0, %v248_v18 }
  0x88   : > { %v237_v19 = vpop.permute.xlu0 %236 }
  0x89   : > { %239 = vst.msk [vmem:[#allocation2 + $0x10] sm:$0xff] %vm216_vm0, %v237_v19 }
  0x8a   : > { %v259_v20 = vpop.permute.xlu1 %258 }
  0x8b   : > { %261 = vst.msk [vmem:[#allocation2 + $0x20] sm:$0xff] %vm216_vm0, %v259_v20 }
  0x8c   : > { %v311_v21 = vld [vmem:[#allocation2 + $0x8] sm:$0xff]  ;;  %v270_v22 = vpop.permute.xlu0 %269 }
  0x8d   : > { %371 = vmatpush1.bf16.msra.mxu0 %v311_v21  ;;  %580 = vmatpush1.bf16.msra.mxu1 %v311_v21  ;;  %272 = vst.msk [vmem:[#allocation2 + $0x28] sm:$0xff] %vm216_vm0, %v270_v22 }
  0x8e   : > { %372 = vmatprep.subr.bf16.mxu0 %v662_v0  ;;  %572 = vmatprep.subr.bf16.mxu1 %v662_v0  ;;  %v281_v23 = vpop.permute.xlu1 %280  ;;  %v313_v26 = vld [vmem:[#allocation2 + $0x18] sm:$0xff] }
  0x8f   : > { %283 = vst.msk [vmem:[#allocation2 + $0x30] sm:$0xff] %vm216_vm0, %v281_v23 }
  0x90   : > { %v312_v24 = vld [vmem:[#allocation2 + $0x10] sm:$0xff]  ;;  %v292_v25 = vpop.permute.xlu0 %291 }
  0x91   : > { %373 = vmatpush1.bf16.msra.mxu0 %v312_v24  ;;  %581 = vmatpush1.bf16.msra.mxu1 %v312_v24  ;;  %294 = vst.msk [vmem:[#allocation2 + $0x38] sm:$0xff] %vm216_vm0, %v292_v25 }
  0x92   : > { %374 = vmatprep.subr.bf16.mxu0 %v662_v0  ;;  %573 = vmatprep.subr.bf16.mxu1 %v662_v0  ;;  %v303_v27 = vpop.permute.xlu1 %302  ;;  %v314_v28 = vld [vmem:[#allocation2 + $0x20] sm:$0xff] }
  0x93   : > { %305 = vst.msk [vmem:[#allocation2 + $0x40] sm:$0xff] %vm216_vm0, %v303_v27 }
  0x94   : > { %v315_v29 = vld [vmem:[#allocation2 + $0x28] sm:$0xff] }
  0x95   : > { %375 = vmatpush1.bf16.msra.mxu0 %v313_v26  ;;  %582 = vmatpush1.bf16.msra.mxu1 %v313_v26 }
  0x96   : > { %376 = vmatprep.subr.bf16.mxu0 %v662_v0  ;;  %574 = vmatprep.subr.bf16.mxu1 %v662_v0  ;;  %v316_v30 = vld [vmem:[#allocation2 + $0x30] sm:$0xff] }
  0x98   : > { %v317_v31 = vld [vmem:[#allocation2 + $0x38] sm:$0xff] }
  0x99   : > { %377 = vmatpush1.bf16.msra.mxu0 %v314_v28  ;;  %583 = vmatpush1.bf16.msra.mxu1 %v314_v28 }
  0x9a   : > { %378 = vmatprep.subr.bf16.mxu0 %v662_v0  ;;  %575 = vmatprep.subr.bf16.mxu1 %v662_v0  ;;  %v318_v32 = vld [vmem:[#allocation2 + $0x40] sm:$0xff] }
  0x9d   : > { %379 = vmatpush1.bf16.msra.mxu0 %v315_v29  ;;  %584 = vmatpush1.bf16.msra.mxu1 %v315_v29 }
  0x9e   : > { %380 = vmatprep.subr.bf16.mxu0 %v662_v0  ;;  %576 = vmatprep.subr.bf16.mxu1 %v662_v0 }
  0xa1   : > { %381 = vmatpush1.bf16.msra.mxu0 %v316_v30  ;;  %585 = vmatpush1.bf16.msra.mxu1 %v316_v30  ;;  %v326_v36 = vpop.permute.xlu0 %325 }
  0xa2   : > { %382 = vmatprep.subr.bf16.mxu0 %v662_v0  ;;  %577 = vmatprep.subr.bf16.mxu1 %v662_v0 }
  0xa3   : > { %v331_v35 = vpop.permute.xlu1 %330 }
  0xa5   : > { %383 = vmatpush1.bf16.msra.mxu0 %v317_v31  ;;  %586 = vmatpush1.bf16.msra.mxu1 %v317_v31  ;;  %v341_v38 = vpop.permute.xlu0 %340 }
  0xa6   : > { %384 = vmatprep.subr.bf16.mxu0 %v662_v0  ;;  %578 = vmatprep.subr.bf16.mxu1 %v662_v0 }
  0xa7   : > { %v336_v37 = vpop.permute.xlu1 %335 }
  0xa9   : > { %385 = vmatpush1.bf16.msra.mxu0 %v318_v32  ;;  %587 = vmatpush1.bf16.msra.mxu1 %v318_v32 }
  0xac   : > { %401 = vmatmul.mubr.bf16.vlgmr.msra.gmra.mrb[0].mxu0 %v632_v33  ;;  %409 = vmatmul.mubr.bf16.vlgmr.msra.gmra.mrb[0].mxu1 %v635_v34 }
 0x17f   : > { %v402_v39 = vpop.f32.mrb[0].mxu0  ;;  %v410_v40 = vpop.f32.mrb[0].mxu1 }
 0x180   : > { %v403_v41 = vadd.f32 %v402_v39, %v326_v36  ;;  %v411_v42 = vadd.f32 %v410_v40, %v336_v37  ;;  %v404_v43 = vpop.f32.mrb[1].mxu0  ;;  %v412_v44 = vpop.f32.mrb[1].mxu1 }
 0x181   : > { %v405_v45 = vpop.f32.mrb[2].mxu0  ;;  %v413_v46 = vpop.f32.mrb[2].mxu1 }
 0x182   : > { %v417_v47 = vmax.f32 %v403_v41, 0.0  ;;  %v419_v48 = vmax.f32 %v411_v42, 0.0  ;;  %v406_v49 = vadd.f32 %v405_v45, %v331_v35  ;;  %v414_v50 = vadd.f32 %v413_v46, %v341_v38  ;;  %v407_v51 = vpop.f32.mrb[3].mxu0  ;;  %v415_v52 = vpop.f32.mrb[3].mxu1 }
 0x184   : > { %v566_v53 = vpack.c.bf16 %v417_v47, %v417_v47  ;;  %v568_v54 = vpack.c.bf16 %v419_v48, %v419_v48  ;;  %v418_v55 = vmax.f32 %v406_v49, 0.0  ;;  %v420_v56 = vmax.f32 %v414_v50, 0.0 }
 0x186   : > { %438 = vst.msk [vmem:[%s206_s24] sm:$0xf] %vm437_vm2, %v566_v53  ;;  %440 = vst.msk [vmem:[%s206_s24 + $0x8] sm:$0xf] %vm437_vm2, %v568_v54  ;;  %v567_v57 = vpack.c.bf16 %v418_v55, %v418_v55  ;;  %v569_v58 = vpack.c.bf16 %v420_v56, %v420_v56 }
 0x188   : > { %439 = vst.msk [vmem:[%s206_s24 + $0x4] sm:$0xf] %vm437_vm2, %v567_v57  ;;  %441 = vst.msk [vmem:[%s206_s24 + $0xc] sm:$0xf] %vm437_vm2, %v569_v58 }
 0x189 PF: > { %s13_s14 = sadd.s32 1, %s660_s14   ;;  %s785_s12 = smov %s656_s13 }
 0x18a   : > { %p10_p5 = scmp.ge.s32.totalorder %s13_s14, 4   ;;  %s786_s13 = smov %s788_s15 }
 0x18c   :  { %12 = sbr.rel (!%p10_p5) target bundleno = 2 (0x2), region = 62 }

// kernel: tile.18
= control target key start
LH: loop header
LB: loop body
LE: loop exit
PB: predicated region body
PF: predicated region fallthrough
CT: control target
= control target key end

     0   :  { %s22_s0 = inlined_call_operand.vmem [shape: f32[8], index: 0, kind: input, shape index: {}]   ;;  %s23_s1 = inlined_call_operand.vmem [shape: f32[4,8], index: 1, kind: output, shape index: {}]  }
   0x1   :  { %v4_v0 = vld [vmem:[%s22_s0] ss:$0 sm:$0xff] }
   0x2   :  { %5 = vst [vmem:[%s23_s1] sm:$0xf] %v4_v0 }

// kernel: tile.1
= control target key start
LH: loop header
LB: loop body
LE: loop exit
PB: predicated region body
PF: predicated region fallthrough
CT: control target
= control target key end

     0   :  { %s66_s8 = smov 125   ;;  %vm7_vm0 = vcmask 7168   ;;  %s67_s11 = smov 126   ;;  %s117_s0 = inlined_call_operand.vmem [shape: f32[4,8], index: 0, kind: input, shape index: {}]   ;;  %s118_s1 = inlined_call_operand.vmem [shape: f32[32,1], index: 1, kind: output, shape index: {}]  }
   0x1   :  { %v4_v0 = vld [vmem:[%s117_s0] sm:$0xf]  ;;  %s65_s0 = smov 127   ;;  %s68_s12 = smov 124  }
   0x2   :  { %5 = vst [vmem:[#allocation0] sm:$0xf] %v4_v0  ;;  %s69_s13 = smov 123   ;;  %s70_s14 = smov 122  }
   0x3   :  { %s71_s15 = smov 121  }
   0x9   :  { %v9_v1 = vld [vmem:[#allocation0] sm:$0xf]  }
   0xa   :  { %v21_v2 = vld [vmem:[#allocation0] sm:$0xf]   ;;  %10 = vrot.lane.b32.xlu0 %v9_v1, %s65_s0 }
   0xb   :  { %22 = vrot.lane.b32.xlu1 %v21_v2, %s66_s8  ;;  %v15_v3 = vld [vmem:[#allocation0] sm:$0xf]  }
   0xc   :  { %v27_v4 = vld [vmem:[#allocation0] sm:$0xf]  }
   0xd   :  { %v6_v5 = vld [vmem:[#allocation0] sm:$0xf]  }
   0xe   :  { %8 = vst.msk [vmem:[%s118_s1] ss:$8 sm:$0xf] %vm7_vm0, %v6_v5   ;;  %16 = vrot.lane.b32.xlu0 %v15_v3, %s67_s11  ;;  %v33_v6 = vld [vmem:[#allocation0] sm:$0xf]  }
   0xf   :  { %28 = vrot.lane.b32.xlu1 %v27_v4, %s68_s12  ;;  %v39_v7 = vld [vmem:[#allocation0] sm:$0xf]  }
  0x10   :  { %v45_v8 = vld [vmem:[#allocation0] sm:$0xf]  }
  0x12   :  { %34 = vrot.lane.b32.xlu0 %v33_v6, %s69_s13 }
  0x13   :  { %40 = vrot.lane.b32.xlu1 %v39_v7, %s70_s14 }
  0x16   :  { %46 = vrot.lane.b32.xlu0 %v45_v8, %s71_s15 }
  0x7c   :  { %v11_v9 = vpop.permute.xlu0 %10  }
  0x7d   :  { %v23_v10 = vpop.permute.xlu1 %22   ;;  %51 = vst.msk [vmem:[%s118_s1 + $0x1] ss:$8 sm:$0xf] %vm7_vm0, %v11_v9  }
  0x7e   :  { %53 = vst.msk [vmem:[%s118_s1 + $0x3] ss:$8 sm:$0xf] %vm7_vm0, %v23_v10  }
  0x80   :  { %v17_v11 = vpop.permute.xlu0 %16  }
  0x81   :  { %v29_v12 = vpop.permute.xlu1 %28   ;;  %52 = vst.msk [vmem:[%s118_s1 + $0x2] ss:$8 sm:$0xf] %vm7_vm0, %v17_v11  }
  0x82   :  { %54 = vst.msk [vmem:[%s118_s1 + $0x4] ss:$8 sm:$0xf] %vm7_vm0, %v29_v12  }
  0x84   :  { %v35_v13 = vpop.permute.xlu0 %34  }
  0x85   :  { %v41_v14 = vpop.permute.xlu1 %40   ;;  %55 = vst.msk [vmem:[%s118_s1 + $0x5] ss:$8 sm:$0xf] %vm7_vm0, %v35_v13  }
  0x86   :  { %56 = vst.msk [vmem:[%s118_s1 + $0x6] ss:$8 sm:$0xf] %vm7_vm0, %v41_v14  }
  0x88   :  { %v47_v15 = vpop.permute.xlu0 %46  }
  0x89   :  { %57 = vst.msk [vmem:[%s118_s1 + $0x7] ss:$8 sm:$0xf] %vm7_vm0, %v47_v15  }

// kernel: unet_forward.18
= control target key start
LH: loop header
LB: loop body
LE: loop exit
PB: predicated region body
PF: predicated region fallthrough
CT: control target
= control target key end

     0   :  { %s906_s12 = smov 0   ;;  %s908_s13 = smov 0   ;;  %s1020_s0 = inlined_call_operand.vmem [shape: bf16[2,1,32,42], index: 0, kind: input, shape index: {}]   ;;  %s1021_s1 = inlined_call_operand.vmem [shape: bf16[32,288], index: 1, kind: input, shape index: {}]   ;;  %s1022_s2 = inlined_call_operand.vmem [shape: f32[32,1], index: 2, kind: input, shape index: {}]   ;;  %s1023_s3 = inlined_call_operand.vmem [shape: bf16[2,1,32,24], index: 3, kind: output, shape index: {}]  }
   0x1   :  { %s910_s14 = smov 0  }
   0x2 LB: > { %s25_s15 = sadd.s32 1, %s871_s13  ;;  %p709_p0 = scmp.ge.s32.totalorder %s875_s14, 1  ;;  %s875_s14 = sphi %s910_s14, %s13_s14   ;;  %s871_s13 = sphi %s908_s13, %s1025_s13   ;;  %s867_s12 = sphi %s906_s12, %s1024_s12  }
   0x3   : > { %p27_p1 = scmp.ge.s32.totalorder %s25_s15, 2  ;;  %p157_p2 = scmp.lt.s32.totalorder %s875_s14, 3 }
   0x5   : > { %s1027_s15 = smov (%p27_p1, %s25_s15), 0  ;;  %p158_p3 = pnand %p709_p0, %p157_p2 }
   0x6   : > { %p189_p4 = scmp.lt.s32.totalorder (!%p158_p3), %s867_s12, 1  ;;  %s877_s20 = smov (!%p158_p3), 121   ;;  %vm224_vm0 = vcmask (!%p158_p3), 195584   ;;  %v847_v17 = vld [vmem:[%s1021_s1 + $0x4] ss:$12 sps:$4 sm:$0xff] (!%p158_p3)   ;;  %vm483_vm1 = vcmask (!%p158_p3), 261120  }
   0x7   : > { %161 = sbr.rel (%p158_p3) target bundleno = 407 (0x197), region = 32  ;;  %s878_s21 = smov (!%p158_p3), 120   ;;  %522 = vmatprep.mubr.bf16.mxu0 (!%p158_p3), %v847_v17  ;;  %v848_v19 = vld [vmem:[%s1021_s1 + $0x8] ss:$12 sps:$4 sm:$0xff] (!%p158_p3)   ;;  %v429_v20 = vld [vmem:[%s1022_s2] sm:$0xff] (!%p158_p3)  ;;  %v885_v22 = vmov (!%p158_p3), 0  }
   0x8   : > { %s879_s22 = smov (!%p158_p3), 127   ;;  %s880_s23 = smov (!%p158_p3), 116   ;;  %788 = vmatprep.mubr.msk.bf16.mxu1 (!%p158_p3), %vm483_vm1, %v848_v19  ;;  %v430_v21 = vld [vmem:[%s1022_s2 + $0x8] sm:$0xff] (!%p158_p3)  ;;  %825 = vset.pattern.permute.xlu0 (!%p158_p3), %v885_v22  ;;  %v432_v23 = vld [vmem:[%s1022_s2 + $0x18] sm:$0xff] (!%p158_p3)  ;;  %v431_v24 = vld [vmem:[%s1022_s2 + $0x10] sm:$0xff] (!%p158_p3)  ;;  %vm608_vm2 = vcmask (!%p158_p3), 191488  }
   0x9   : > { %s881_s24 = smov (!%p158_p3), 126   ;;  %s882_s25 = smov (!%p158_p3), 115   ;;  %826 = vset.pattern.permute.xlu1 (!%p158_p3), %v885_v22  ;;  %v845_v58 = vld [vmem:[%s1021_s1] ss:$12 sps:$4 sm:$0xff] (!%p158_p3)   ;;  %v850_v60 = vld [vmem:[%s1021_s1 + $0x1c] ss:$12 sps:$4 sm:$0xff] (!%p158_p3)  }
   0xa   : > { %s883_s26 = smov (!%p158_p3), 122   ;;  %s884_s29 = smov (!%p158_p3), 114   ;;  %v849_v61 = vld [vmem:[%s1021_s1 + $0x20] ss:$12 sps:$4 sm:$0xff] (!%p158_p3)   ;;  %v852_v62 = vld [vmem:[%s1021_s1 + $0x18] ss:$12 sps:$4 sm:$0xff] (!%p158_p3)  }
   0xe   : > { %s1029_s12 = smov (!%p189_p4, %s867_s12), 1 }
   0xf   : > { %s746_s16 = sshll.u32 %s1029_s12, 4 }
  0x10   : > { %s932_s19 = scalar_lea.vmem %s1020_s0, %s746_s16  ;;  %s206_s28 = scalar_lea.vmem %s1023_s3, %s746_s16 }
  0x11   : > { %v827_v0 = vld [vmem:[%s932_s19] sm:$0xff]   ;;  %v829_v2 = vld [vmem:[%s932_s19 + $0x8] sm:$0xff]  }
  0x12   : > { %v828_v1 = vld [vmem:[%s932_s19] sm:$0xff]   ;;  %307 = vrot.lane.b32.xlu0 %v827_v0, %s877_s20  ;;  %v830_v4 = vld [vmem:[%s932_s19 + $0x8] sm:$0xff]  }
  0x13   : > { %329 = vrot.lane.b32.xlu1 %v828_v1, %s878_s21  ;;  %v831_v3 = vld [vmem:[%s932_s19] sm:$0xff]   ;;  %v833_v5 = vld [vmem:[%s932_s19 + $0x8] sm:$0xff]  }
  0x14   : > { %v832_v6 = vld [vmem:[%s932_s19] sm:$0xff]   ;;  %v834_v8 = vld [vmem:[%s932_s19 + $0x8] sm:$0xff]  }
  0x15   : > { %v835_v7 = vld [vmem:[%s932_s19] sm:$0xff]   ;;  %v837_v9 = vld [vmem:[%s932_s19 + $0x8] sm:$0xff]  }
  0x16   : > { %309 = vrot.lane.b32.xlu0 %v829_v2, %s877_s20  ;;  %v843_v10 = vld [vmem:[%s932_s19] sm:$0xff]   ;;  %v844_v11 = vld [vmem:[%s932_s19 + $0x8] sm:$0xff]  }
  0x17   : > { %241 = vrot.lane.b32.xlu1 %v831_v3, %s879_s22  ;;  %v836_v12 = vld [vmem:[%s932_s19] sm:$0xff]   ;;  %225 = vst.msk [vmem:[#allocation2] sm:$0xff] %vm224_vm0, %v843_v10  ;;  %226 = vst.msk [vmem:[#allocation2 + $0x8] sm:$0xff] %vm224_vm0, %v844_v11  ;;  %v838_v14 = vld [vmem:[%s932_s19 + $0x8] sm:$0xff]  }
  0x18   : > { %v839_v13 = vld [vmem:[%s932_s19] sm:$0xff]   ;;  %v841_v15 = vld [vmem:[%s932_s19 + $0x8] sm:$0xff]  }
  0x19   : > { %v840_v16 = vld [vmem:[%s932_s19] sm:$0xff]   ;;  %v842_v18 = vld [vmem:[%s932_s19 + $0x8] sm:$0xff]  }
  0x1a   : > { %331 = vrot.lane.b32.xlu0 %v830_v4, %s878_s21 }
  0x1b   : > { %243 = vrot.lane.b32.xlu1 %v833_v5, %s879_s22 }
  0x1e   : > { %351 = vrot.lane.b32.xlu0 %v832_v6, %s880_s23  ;;  %v411_v29 = vld [vmem:[#allocation2] sm:$0xff]  ;;  %v412_v33 = vld [vmem:[#allocation2 + $0x8] sm:$0xff] }
  0x1f   : > { %263 = vrot.lane.b32.xlu1 %v835_v7, %s881_s24 }
  0x22   : > { %353 = vrot.lane.b32.xlu0 %v834_v8, %s880_s23 }
  0x23   : > { %265 = vrot.lane.b32.xlu1 %v837_v9, %s881_s24 }
  0x26   : > { %373 = vrot.lane.b32.xlu0 %v836_v12, %s882_s25 }
  0x27   : > { %285 = vrot.lane.b32.xlu1 %v839_v13, %s883_s26 }
  0x2a   : > { %375 = vrot.lane.b32.xlu0 %v838_v14, %s882_s25 }
  0x2b   : > { %287 = vrot.lane.b32.xlu1 %v841_v15, %s883_s26 }
  0x2e   : > { %395 = vrot.lane.b32.xlu0 %v840_v16, %s884_s29 }
  0x2f   : > { %397 = vrot.lane.b32.xlu1 %v842_v18, %s884_s29 }
  0x32   : > { %435 = vperm.xlu0 %825, %v429_v20  }
  0x33   : > { %440 = vperm.xlu1 %826, %v430_v21  }
  0x36   : > { %450 = vperm.xlu0 %825, %v432_v23  }
  0x37   : > { %445 = vperm.xlu1 %826, %v431_v24  }
  0x84   : > { %v308_v25 = vpop.permute.xlu0 %307 }
  0x85   : > { %313 = vst.msk [vmem:[#allocation2 + $0x40] sm:$0xff] %vm224_vm0, %v308_v25  ;;  %v330_v26 = vpop.permute.xlu1 %329 }
  0x86   : > { %335 = vst.msk [vmem:[#allocation2 + $0x50] sm:$0xff] %vm224_vm0, %v330_v26 }
  0x88   : > { %v310_v27 = vpop.permute.xlu0 %309 }
  0x89   : > { %314 = vst.msk [vmem:[#allocation2 + $0x48] sm:$0xff] %vm224_vm0, %v310_v27  ;;  %v242_v28 = vpop.permute.xlu1 %241 }
  0x8a   : > { %247 = vst.msk [vmem:[#allocation2 + $0x10] sm:$0xff] %vm224_vm0, %v242_v28 }
  0x8c   : > { %v332_v30 = vpop.permute.xlu0 %331  ;;  %v419_v31 = vld [vmem:[#allocation2 + $0x40] sm:$0xff] }
  0x8d   : > { %336 = vst.msk [vmem:[#allocation2 + $0x58] sm:$0xff] %vm224_vm0, %v332_v30  ;;  %752 = vmatprep.subr.bf16.mxu0 %v419_v31  ;;  %v244_v32 = vpop.permute.xlu1 %243  ;;  %v421_v36 = vld [vmem:[#allocation2 + $0x50] sm:$0xff] }
  0x8e   : > { %753 = vmatpush3.bf16.msra.mxu0 %v411_v29  ;;  %248 = vst.msk [vmem:[#allocation2 + $0x18] sm:$0xff] %vm224_vm0, %v244_v32 }
  0x90   : > { %v352_v34 = vpop.permute.xlu0 %351  ;;  %v420_v35 = vld [vmem:[#allocation2 + $0x48] sm:$0xff] }
  0x91   : > { %357 = vst.msk [vmem:[#allocation2 + $0x60] sm:$0xff] %vm224_vm0, %v352_v34  ;;  %754 = vmatprep.subr.bf16.mxu0 %v420_v35  ;;  %v264_v37 = vpop.permute.xlu1 %263  ;;  %v413_v38 = vld [vmem:[#allocation2 + $0x10] sm:$0xff] }
  0x92   : > { %755 = vmatpush3.bf16.msra.mxu0 %v412_v33  ;;  %269 = vst.msk [vmem:[#allocation2 + $0x20] sm:$0xff] %vm224_vm0, %v264_v37 }
  0x93   : > { %756 = vmatprep.subr.bf16.mxu0 %v421_v36 }
  0x94   : > { %v354_v39 = vpop.permute.xlu0 %353  ;;  %v422_v40 = vld [vmem:[#allocation2 + $0x58] sm:$0xff] }
  0x95   : > { %358 = vst.msk [vmem:[#allocation2 + $0x68] sm:$0xff] %vm224_vm0, %v354_v39  ;;  %v266_v41 = vpop.permute.xlu1 %265  ;;  %v414_v42 = vld [vmem:[#allocation2 + $0x18] sm:$0xff] }
  0x96   : > { %757 = vmatpush3.bf16.msra.mxu0 %v413_v38  ;;  %270 = vst.msk [vmem:[#allocation2 + $0x28] sm:$0xff] %vm224_vm0, %v266_v41 }
  0x97   : > { %758 = vmatprep.subr.bf16.mxu0 %v422_v40 }
  0x98   : > { %v374_v43 = vpop.permute.xlu0 %373  ;;  %v423_v44 = vld [vmem:[#allocation2 + $0x60] sm:$0xff] }
  0x99   : > { %379 = vst.msk [vmem:[#allocation2 + $0x70] sm:$0xff] %vm224_vm0, %v374_v43  ;;  %v286_v45 = vpop.permute.xlu1 %285  ;;  %v415_v46 = vld [vmem:[#allocation2 + $0x20] sm:$0xff] }
  0x9a   : > { %759 = vmatpush3.bf16.msra.mxu0 %v414_v42  ;;  %291 = vst.msk [vmem:[#allocation2 + $0x30] sm:$0xff] %vm224_vm0, %v286_v45 }
  0x9b   : > { %760 = vmatprep.subr.bf16.mxu0 %v423_v44 }
  0x9c   : > { %v376_v47 = vpop.permute.xlu0 %375  ;;  %v424_v48 = vld [vmem:[#allocation2 + $0x68] sm:$0xff] }
  0x9d   : > { %380 = vst.msk [vmem:[#allocation2 + $0x78] sm:$0xff] %vm224_vm0, %v376_v47  ;;  %v288_v49 = vpop.permute.xlu1 %287  ;;  %v416_v50 = vld [vmem:[#allocation2 + $0x28] sm:$0xff] }
  0x9e   : > { %761 = vmatpush3.bf16.msra.mxu0 %v415_v46  ;;  %292 = vst.msk [vmem:[#allocation2 + $0x38] sm:$0xff] %vm224_vm0, %v288_v49 }
  0x9f   : > { %762 = vmatprep.subr.bf16.mxu0 %v424_v48 }
  0xa0   : > { %v396_v51 = vpop.permute.xlu0 %395  ;;  %v425_v52 = vld [vmem:[#allocation2 + $0x70] sm:$0xff] }
  0xa1   : > { %401 = vst.msk [vmem:[#allocation2 + $0x80] sm:$0xff] %vm224_vm0, %v396_v51  ;;  %v398_v53 = vpop.permute.xlu1 %397  ;;  %v417_v54 = vld [vmem:[#allocation2 + $0x30] sm:$0xff] }
  0xa2   : > { %763 = vmatpush3.bf16.msra.mxu0 %v416_v50  ;;  %402 = vst.msk [vmem:[#allocation2 + $0x88] sm:$0xff] %vm224_vm0, %v398_v53 }
  0xa3   : > { %764 = vmatprep.subr.bf16.mxu0 %v425_v52 }
  0xa4   : > { %v426_v55 = vld [vmem:[#allocation2 + $0x78] sm:$0xff] }
  0xa5   : > { %v418_v56 = vld [vmem:[#allocation2 + $0x38] sm:$0xff] }
  0xa6   : > { %765 = vmatpush3.bf16.msra.mxu0 %v417_v54 }
  0xa7   : > { %766 = vmatprep.subr.bf16.mxu0 %v426_v55 }
  0xa8   : > { %v427_v57 = vld [vmem:[#allocation2 + $0x80] sm:$0xff] }
  0xa9   : > { %784 = vmatprep.subr.bf16.mxu1 %v427_v57  ;;  %v428_v59 = vld [vmem:[#allocation2 + $0x88] sm:$0xff] }
  0xaa   : > { %767 = vmatpush3.bf16.msra.mxu0 %v418_v56  ;;  %785 = vmatpush3.bf16.msra.mxu1 %v427_v57 }
  0xab   : > { %786 = vmatprep.subr.bf16.mxu1 %v428_v59 }
  0xad   : > { %523 = vmatmul.mubr.bf16.vlgmr.msra.gmra.mrb[0].mxu0 %v845_v58 }
  0xae   : > { %787 = vmatpush3.bf16.msra.mxu1 %v428_v59  ;;  %530 = vmatprep.mubr.bf16.mxu0 %v850_v60 }
  0xb1   : > { %789 = vmatmul.mubr.msk.bf16.vlgmr.msra.gmra.mrb[0].mxu1 %vm483_vm1, %v849_v61  ;;  %v436_v1 = vpop.permute.xlu0 %435 }
  0xb2   : > { %v441_v5 = vpop.permute.xlu1 %440 }
  0xb5   : > { %531 = vmatmul.mubr.bf16.gmra.mrb[4].mxu0 %v852_v62  ;;  %v451_v27 = vpop.permute.xlu0 %450 }
  0xb6   : > { %v446_v22 = vpop.permute.xlu1 %445 }
 0x180   : > { %v768_v63 = vpop.f32.mrb[0].mxu0 }
 0x181   : > { %v769_v0 = vpop.f32.mrb[1].mxu0 }
 0x182   : > { %v770_v2 = vadd.f32 %v769_v0, %v768_v63  ;;  %v771_v3 = vpop.f32.mrb[2].mxu0 }
 0x183   : > { %v772_v4 = vpop.f32.mrb[3].mxu0 }
 0x184   : > { %v525_v6 = vadd.f32 %v770_v2, %v436_v1  ;;  %v773_v7 = vadd.f32 %v772_v4, %v771_v3  ;;  %v790_v8 = vpop.f32.mrb[0].mxu1 }
 0x185   : > { %v573_v9 = vpop.f32.mrb[1].mxu1 }
 0x186   : > { %v574_v10 = vadd.f32 %v573_v9, %v525_v6  ;;  %v528_v11 = vadd.f32 %v773_v7, %v441_v5  ;;  %v791_v12 = vpop.f32.mrb[2].mxu1 }
 0x187   : > { %v576_v13 = vpop.f32.mrb[3].mxu1 }
 0x188   : > { %v588_v14 = vmax.f32 %v574_v10, 0.0  ;;  %v577_v15 = vadd.f32 %v576_v13, %v528_v11  ;;  %v774_v16 = vpop.f32.mrb[4].mxu0 }
 0x189   : > { %v775_v17 = vpop.f32.mrb[5].mxu0 }
 0x18a   : > { %v748_v18 = vpack.c.bf16 %v588_v14, %v588_v14  ;;  %v589_v19 = vmax.f32 %v577_v15, 0.0  ;;  %v776_v20 = vadd.f32 %v775_v17, %v774_v16  ;;  %v777_v21 = vpop.f32.mrb[6].mxu0 }
 0x18b   : > { %v778_v23 = vpop.f32.mrb[7].mxu0 }
 0x18c   : > { %609 = vst.msk [vmem:[%s206_s28] sm:$0xf] %vm608_vm2, %v748_v18  ;;  %v749_v24 = vpack.c.bf16 %v589_v19, %v589_v19  ;;  %v533_v25 = vadd.f32 %v776_v20, %v446_v22  ;;  %v779_v26 = vadd.f32 %v778_v23, %v777_v21 }
 0x18e   : > { %610 = vst.msk [vmem:[%s206_s28 + $0x4] sm:$0xf] %vm608_vm2, %v749_v24  ;;  %v582_v28 = vadd.f32 %v790_v8, %v533_v25  ;;  %v536_v29 = vadd.f32 %v779_v26, %v451_v27 }
 0x190   : > { %v590_v30 = vmax.f32 %v582_v28, 0.0  ;;  %v585_v31 = vadd.f32 %v791_v12, %v536_v29 }
 0x192   : > { %v750_v32 = vpack.c.bf16 %v590_v30, %v590_v30  ;;  %v591_v33 = vmax.f32 %v585_v31, 0.0 }
 0x194   : > { %611 = vst.msk [vmem:[%s206_s28 + $0x8] sm:$0xf] %vm608_vm2, %v750_v32  ;;  %v751_v34 = vpack.c.bf16 %v591_v33, %v591_v33 }
 0x196   : > { %612 = vst.msk [vmem:[%s206_s28 + $0xc] sm:$0xf] %vm608_vm2, %v751_v34 }
 0x197 PF: > { %s13_s14 = sadd.s32 1, %s875_s14   ;;  %s1024_s12 = smov %s871_s13 }
 0x198   : > { %p10_p5 = scmp.ge.s32.totalorder %s13_s14, 4   ;;  %s1025_s13 = smov %s1027_s15 }
 0x19a   :  { %12 = sbr.rel (!%p10_p5) target bundleno = 2 (0x2), region = 62 }

// kernel: unet_forward.19
= control target key start
LH: loop header
LB: loop body
LE: loop exit
PB: predicated region body
PF: predicated region fallthrough
CT: control target
= control target key end

     0   :  { %s636_s12 = smov 0   ;;  %s638_s13 = smov 0   ;;  %s721_s0 = inlined_call_operand.vmem [shape: bf16[2,32,16], index: 0, kind: input, shape index: {}]   ;;  %s722_s1 = inlined_call_operand.vmem [shape: bf16[64,32], index: 1, kind: input, shape index: {}]   ;;  %s723_s2 = inlined_call_operand.vmem [shape: f32[64,1], index: 2, kind: input, shape index: {}]   ;;  %s724_s3 = inlined_call_operand.vmem [shape: bf16[2,64,16], index: 3, kind: output, shape index: {}]  }
   0x1   :  { %s640_s14 = smov 0  }
   0x2 LB: > { %s25_s15 = sadd.s32 1, %s609_s13  ;;  %p501_p0 = scmp.ge.s32.totalorder %s613_s14, 1  ;;  %s613_s14 = sphi %s640_s14, %s13_s14   ;;  %s609_s13 = sphi %s638_s13, %s726_s13   ;;  %s605_s12 = sphi %s636_s12, %s725_s12  }
   0x3   : > { %p27_p1 = scmp.ge.s32.totalorder %s25_s15, 2  ;;  %p156_p2 = scmp.lt.s32.totalorder %s613_s14, 3 }
   0x5   : > { %s728_s15 = smov (%p27_p1, %s25_s15), 0  ;;  %p157_p3 = pnand %p501_p0, %p156_p2 }
   0x6   : > { %p186_p4 = scmp.lt.s32.totalorder (!%p157_p3), %s605_s12, 1  ;;  %v587_v0 = vld [vmem:[%s722_s1] sm:$0xff] (!%p157_p3)   ;;  %vm295_vm0 = vcmask (!%p157_p3), 261120   ;;  %v588_v1 = vld [vmem:[%s722_s1 + $0x10] sm:$0xff] (!%p157_p3)   ;;  %v615_v2 = vmov (!%p157_p3), 0   ;;  %v218_v7 = vld [vmem:[%s723_s2 + $0x18] sm:$0xff] (!%p157_p3) }
   0x7   : > { %160 = sbr.rel (%p157_p3) target bundleno = 246 (0xf6), region = 32  ;;  %546 = vmatprep.mubr.msk.bf16.mxu0 (!%p157_p3), %vm295_vm0, %v587_v0  ;;  %550 = vmatprep.mubr.msk.bf16.mxu1 (!%p157_p3), %vm295_vm0, %v588_v1  ;;  %v217_v3 = vld [vmem:[%s723_s2 + $0x10] sm:$0xff] (!%p157_p3)  ;;  %v215_v4 = vld [vmem:[%s723_s2] sm:$0xff] (!%p157_p3)  ;;  %v216_v8 = vld [vmem:[%s723_s2 + $0x8] sm:$0xff] (!%p157_p3)  ;;  %vm405_vm1 = vcmask (!%p157_p3), 125952  }
   0x8   : > { %584 = vset.pattern.permute.xlu1 (!%p157_p3), %v615_v2  ;;  %583 = vset.pattern.permute.xlu0 (!%p157_p3), %v615_v2  ;;  %v589_v9 = vld [vmem:[%s722_s1 + $0x8] sm:$0xff] (!%p157_p3)   ;;  %v590_v10 = vld [vmem:[%s722_s1 + $0x18] sm:$0xff] (!%p157_p3)   ;;  %v219_v12 = vld [vmem:[%s723_s2 + $0x20] sm:$0xff] (!%p157_p3) }
   0x9   : > { %235 = vperm.xlu1 (!%p157_p3), %584, %v217_v3   ;;  %225 = vperm.xlu0 (!%p157_p3), %583, %v215_v4   ;;  %v220_v11 = vld [vmem:[%s723_s2 + $0x28] sm:$0xff] (!%p157_p3)  ;;  %v222_v13 = vld [vmem:[%s723_s2 + $0x38] sm:$0xff] (!%p157_p3)  ;;  %v221_v14 = vld [vmem:[%s723_s2 + $0x30] sm:$0xff] (!%p157_p3) }
   0xd   : > { %240 = vperm.xlu1 (!%p157_p3), %584, %v218_v7   ;;  %230 = vperm.xlu0 (!%p157_p3), %583, %v216_v8  }
   0xe   : > { %s730_s12 = smov (!%p186_p4, %s605_s12), 1 }
   0xf   : > { %s526_s20 = sshll.u32 %s730_s12, 4  ;;  %s527_s21 = sshll.u32 %s730_s12, 5 }
  0x10   : > { %s193_s27 = scalar_lea.vmem %s721_s0, %s526_s20  ;;  %s201_s24 = scalar_lea.vmem %s724_s3, %s527_s21 }
  0x11   : > { %v585_v5 = vld [vmem:[%s193_s27] sm:$0xff]   ;;  %v586_v6 = vld [vmem:[%s193_s27 + $0x8] sm:$0xff]   ;;  %250 = vperm.xlu1 %584, %v220_v11   ;;  %245 = vperm.xlu0 %583, %v219_v12  }
  0x12   : > { %542 = vmatprep.subr.bf16.mxu0 %v585_v5  ;;  %554 = vmatprep.subr.bf16.mxu1 %v585_v5 }
  0x13   : > { %543 = vmatpush3.bf16.msra.mxu0 %v585_v5  ;;  %556 = vmatpush3.bf16.msra.mxu1 %v585_v5 }
  0x14   : > { %544 = vmatprep.subr.bf16.mxu0 %v586_v6  ;;  %555 = vmatprep.subr.bf16.mxu1 %v586_v6 }
  0x15   : > { %260 = vperm.xlu1 %584, %v222_v13   ;;  %255 = vperm.xlu0 %583, %v221_v14  }
  0x17   : > { %545 = vmatpush3.bf16.msra.mxu0 %v586_v6  ;;  %557 = vmatpush3.bf16.msra.mxu1 %v586_v6 }
  0x1a   : > { %547 = vmatmul.mubr.msk.bf16.vlgmr.msra.gmra.mrb[0].mxu0 %vm295_vm0, %v589_v9  ;;  %551 = vmatmul.mubr.msk.bf16.vlgmr.msra.gmra.mrb[0].mxu1 %vm295_vm0, %v590_v10 }
  0x88   : > { %v236_v15 = vpop.permute.xlu1 %235  ;;  %v226_v16 = vpop.permute.xlu0 %225 }
  0x8c   : > { %v241_v17 = vpop.permute.xlu1 %240  ;;  %v231_v18 = vpop.permute.xlu0 %230 }
  0x90   : > { %v251_v19 = vpop.permute.xlu1 %250  ;;  %v246_v20 = vpop.permute.xlu0 %245 }
  0x94   : > { %v261_v21 = vpop.permute.xlu1 %260  ;;  %v256_v22 = vpop.permute.xlu0 %255 }
  0xed   : > { %v548_v23 = vpop.f32.mrb[0].mxu0  ;;  %v552_v24 = vpop.f32.mrb[0].mxu1 }
  0xee   : > { %v351_v25 = vadd.f32 %v548_v23, %v236_v15  ;;  %v367_v26 = vadd.f32 %v552_v24, %v256_v22  ;;  %v342_v27 = vpop.f32.mrb[1].mxu0  ;;  %v358_v28 = vpop.f32.mrb[1].mxu1 }
  0xef   : > { %v343_v29 = vadd.f32 %v342_v27, %v226_v16  ;;  %v359_v30 = vadd.f32 %v358_v28, %v246_v20  ;;  %v549_v31 = vpop.f32.mrb[2].mxu0  ;;  %v553_v32 = vpop.f32.mrb[2].mxu1 }
  0xf0   : > { %v530_v33 = vpack.c.bf16 %v351_v25, %v351_v25  ;;  %v534_v34 = vpack.c.bf16 %v367_v26, %v367_v26  ;;  %v354_v35 = vadd.f32 %v549_v31, %v241_v17  ;;  %v370_v36 = vadd.f32 %v553_v32, %v261_v21  ;;  %v345_v37 = vpop.f32.mrb[3].mxu0  ;;  %v361_v38 = vpop.f32.mrb[3].mxu1 }
  0xf1   : > { %v528_v39 = vpack.c.bf16 %v343_v29, %v343_v29  ;;  %v532_v40 = vpack.c.bf16 %v359_v30, %v359_v30  ;;  %v346_v41 = vadd.f32 %v345_v37, %v231_v18  ;;  %v362_v42 = vadd.f32 %v361_v38, %v251_v19 }
  0xf2   : > { %408 = vst.msk [vmem:[%s201_s24 + $0x8] sm:$0xf] %vm405_vm1, %v530_v33  ;;  %412 = vst.msk [vmem:[%s201_s24 + $0x18] sm:$0xf] %vm405_vm1, %v534_v34  ;;  %v531_v43 = vpack.c.bf16 %v354_v35, %v354_v35  ;;  %v535_v44 = vpack.c.bf16 %v370_v36, %v370_v36 }
  0xf3   : > { %406 = vst.msk [vmem:[%s201_s24] sm:$0xf] %vm405_vm1, %v528_v39  ;;  %410 = vst.msk [vmem:[%s201_s24 + $0x10] sm:$0xf] %vm405_vm1, %v532_v40  ;;  %v529_v45 = vpack.c.bf16 %v346_v41, %v346_v41  ;;  %v533_v46 = vpack.c.bf16 %v362_v42, %v362_v42 }
  0xf4   : > { %409 = vst.msk [vmem:[%s201_s24 + $0xc] sm:$0xf] %vm405_vm1, %v531_v43  ;;  %413 = vst.msk [vmem:[%s201_s24 + $0x1c] sm:$0xf] %vm405_vm1, %v535_v44 }
  0xf5   : > { %407 = vst.msk [vmem:[%s201_s24 + $0x4] sm:$0xf] %vm405_vm1, %v529_v45  ;;  %411 = vst.msk [vmem:[%s201_s24 + $0x14] sm:$0xf] %vm405_vm1, %v533_v46 }
  0xf6 PF: > { %s13_s14 = sadd.s32 1, %s613_s14   ;;  %s725_s12 = smov %s609_s13 }
  0xf7   : > { %p10_p5 = scmp.ge.s32.totalorder %s13_s14, 4   ;;  %s726_s13 = smov %s728_s15 }
  0xf9   :  { %12 = sbr.rel (!%p10_p5) target bundleno = 2 (0x2), region = 62 }

// kernel: unet_forward.20
= control target key start
LH: loop header
LB: loop body
LE: loop exit
PB: predicated region body
PF: predicated region fallthrough
CT: control target
= control target key end

     0   :  { %s919_s15 = smov 0   ;;  %s921_s16 = smov 0   ;;  %s1020_s0 = inlined_call_operand.vmem [shape: bf16[2,1,16,110], index: 0, kind: input, shape index: {}]   ;;  %s1021_s1 = inlined_call_operand.vmem [shape: bf16[2,1,16,110], index: 1, kind: input, shape index: {}]   ;;  %s1022_s2 = inlined_call_operand.vmem [shape: bf16[16,288], index: 2, kind: input, shape index: {}]   ;;  %s1023_s3 = inlined_call_operand.vmem [shape: f32[16,1], index: 3, kind: input, shape index: {}]   ;;  %s1024_s4 = inlined_call_operand.vmem [shape: bf16[2,1,16,80], index: 4, kind: output, shape index: {}]  }
   0x1   :  { %s923_s17 = smov 0  }
   0x2 LB: > { %s26_s18 = sadd.s32 1, %s877_s16  ;;  %p729_p0 = scmp.ge.s32.totalorder %s881_s17, 1  ;;  %s881_s17 = sphi %s923_s17, %s14_s17   ;;  %s877_s16 = sphi %s921_s16, %s1026_s16   ;;  %s873_s15 = sphi %s919_s15, %s1025_s15  }
   0x3   : > { %p28_p1 = scmp.ge.s32.totalorder %s26_s18, 2  ;;  %p198_p2 = scmp.lt.s32.totalorder %s881_s17, 3 }
   0x5   : > { %s1028_s18 = smov (%p28_p1, %s26_s18), 0  ;;  %p199_p3 = pnand %p729_p0, %p198_p2 }
   0x6   : > { %p241_p4 = scmp.lt.s32.totalorder (!%p199_p3), %s873_s15, 1  ;;  %s883_s26 = smov (!%p199_p3), 106   ;;  %vm277_vm0 = vcmask (!%p199_p3), 654336   ;;  %v890_v16 = vmov (!%p199_p3), 0.0   ;;  %v857_v18 = vld [vmem:[%s1022_s2 + $0x4] ss:$12 sps:$4 sm:$0xff] (!%p199_p3)  }
   0x7   : > { %202 = sbr.rel (%p199_p3) target bundleno = 399 (0x18f), region = 36  ;;  %s884_s27 = smov (!%p199_p3), 127   ;;  %792 = vmatprep.subr.bf16.mxu1 (!%p199_p3), %v890_v16  ;;  %549 = vmatprep.mubr.bf16.mxu0 (!%p199_p3), %v857_v18  ;;  %vm892_vm1 = vmmov (!%p199_p3), 0   ;;  %v486_v20 = vld [vmem:[%s1023_s3] sm:$0xff] (!%p199_p3)  ;;  %v487_v21 = vld [vmem:[%s1023_s3 + $0x8] sm:$0xff] (!%p199_p3)  ;;  %v893_v22 = vmov (!%p199_p3), 0  }
   0x8   : > { %s885_s28 = smov (!%p199_p3), 126   ;;  %s886_s29 = smov (!%p199_p3), 118   ;;  %796 = vmatprep.mubr.msk.bf16.mxu1 (!%p199_p3), %vm892_vm1, %v890_v16  ;;  %835 = vset.pattern.permute.xlu0 (!%p199_p3), %v893_v22  ;;  %v855_v56 = vld [vmem:[%s1022_s2] ss:$12 sps:$4 sm:$0xff] (!%p199_p3)   ;;  %v858_v58 = vld [vmem:[%s1022_s2 + $0x8] ss:$12 sps:$4 sm:$0xff] (!%p199_p3)  }
   0x9   : > { %s887_s30 = smov (!%p199_p3), 117   ;;  %s888_s5 = smov (!%p199_p3), 116   ;;  %836 = vset.pattern.permute.xlu1 (!%p199_p3), %v893_v22  ;;  %vm513_vm2 = vcmask (!%p199_p3), 261120   ;;  %vm609_vm3 = vcmask (!%p199_p3), 650240  }
   0xa   : > { %s889_s6 = smov (!%p199_p3), 108   ;;  %s891_s9 = smov (!%p199_p3), 107  }
   0xe   : > { %s1030_s15 = smov (!%p241_p4, %s873_s15), 1 }
   0xf   : > { %s937_s19 = sshll.u32 %s1030_s15, 3 }
  0x10   : > { %s943_s22 = scalar_lea.vmem %s1020_s0, %s937_s19  ;;  %s949_s25 = scalar_lea.vmem %s1021_s1, %s937_s19 }
  0x11   : > { %v837_v0 = vld [vmem:[%s943_s22] sm:$0xff]   ;;  %s267_s24 = scalar_lea.vmem %s1024_s4, %s937_s19 }
  0x12   : > { %v838_v1 = vld [vmem:[%s949_s25] sm:$0xff]   ;;  %363 = vrot.lane.b32.xlu0 %v837_v0, %s883_s26 }
  0x13   : > { %v839_v2 = vld [vmem:[%s943_s22] sm:$0xff]   ;;  %383 = vrot.lane.b32.xlu1 %v838_v1, %s884_s27 }
  0x14   : > { %v840_v3 = vld [vmem:[%s943_s22] sm:$0xff]  }
  0x15   : > { %v841_v4 = vld [vmem:[%s949_s25] sm:$0xff]  }
  0x16   : > { %286 = vrot.lane.b32.xlu0 %v839_v2, %s884_s27  ;;  %v842_v5 = vld [vmem:[%s943_s22] sm:$0xff]  }
  0x17   : > { %297 = vrot.lane.b32.xlu1 %v840_v3, %s885_s28  ;;  %v843_v6 = vld [vmem:[%s949_s25] sm:$0xff]  }
  0x18   : > { %v844_v7 = vld [vmem:[%s943_s22] sm:$0xff]  }
  0x19   : > { %v845_v8 = vld [vmem:[%s949_s25] sm:$0xff]  }
  0x1a   : > { %394 = vrot.lane.b32.xlu0 %v841_v4, %s885_s28  ;;  %v846_v9 = vld [vmem:[%s943_s22] sm:$0xff]  }
  0x1b   : > { %308 = vrot.lane.b32.xlu1 %v842_v5, %s886_s29  ;;  %v853_v10 = vld [vmem:[%s943_s22] sm:$0xff]  }
  0x1c   : > { %v854_v11 = vld [vmem:[%s949_s25] sm:$0xff]   ;;  %278 = vst.msk [vmem:[#allocation2] sm:$0xff] %vm277_vm0, %v853_v10 }
  0x1d   : > { %v847_v12 = vld [vmem:[%s949_s25] sm:$0xff]   ;;  %375 = vst.msk [vmem:[#allocation2 + $0x48] sm:$0xff] %vm277_vm0, %v854_v11 }
  0x1e   : > { %405 = vrot.lane.b32.xlu0 %v843_v6, %s886_s29  ;;  %v848_v13 = vld [vmem:[%s943_s22] sm:$0xff]  }
  0x1f   : > { %319 = vrot.lane.b32.xlu1 %v844_v7, %s887_s30  ;;  %v849_v14 = vld [vmem:[%s949_s25] sm:$0xff]  }
  0x20   : > { %v850_v15 = vld [vmem:[%s943_s22] sm:$0xff]  }
  0x21   : > { %v851_v17 = vld [vmem:[%s949_s25] sm:$0xff]  }
  0x22   : > { %416 = vrot.lane.b32.xlu0 %v845_v8, %s887_s30  ;;  %v852_v19 = vld [vmem:[%s949_s25] sm:$0xff]  }
  0x23   : > { %330 = vrot.lane.b32.xlu1 %v846_v9, %s888_s5  ;;  %v468_v27 = vld [vmem:[#allocation2] sm:$0xff] }
  0x24   : > { %v477_v30 = vld [vmem:[#allocation2 + $0x48] sm:$0xff] }
  0x26   : > { %427 = vrot.lane.b32.xlu0 %v847_v12, %s888_s5 }
  0x27   : > { %341 = vrot.lane.b32.xlu1 %v848_v13, %s889_s6 }
  0x2a   : > { %438 = vrot.lane.b32.xlu0 %v849_v14, %s889_s6 }
  0x2b   : > { %352 = vrot.lane.b32.xlu1 %v850_v15, %s891_s9 }
  0x2e   : > { %449 = vrot.lane.b32.xlu0 %v851_v17, %s891_s9 }
  0x2f   : > { %460 = vrot.lane.b32.xlu1 %v852_v19, %s883_s26 }
  0x32   : > { %490 = vperm.xlu0 %835, %v486_v20  }
  0x33   : > { %495 = vperm.xlu1 %836, %v487_v21  }
  0x84   : > { %v364_v23 = vpop.permute.xlu0 %363 }
  0x85   : > { %366 = vst.msk [vmem:[#allocation2 + $0x40] sm:$0xff] %vm277_vm0, %v364_v23  ;;  %v384_v24 = vpop.permute.xlu1 %383 }
  0x86   : > { %386 = vst.msk [vmem:[#allocation2 + $0x50] sm:$0xff] %vm277_vm0, %v384_v24 }
  0x88   : > { %v287_v25 = vpop.permute.xlu0 %286 }
  0x89   : > { %289 = vst.msk [vmem:[#allocation2 + $0x8] sm:$0xff] %vm277_vm0, %v287_v25  ;;  %v298_v26 = vpop.permute.xlu1 %297 }
  0x8a   : > { %300 = vst.msk [vmem:[#allocation2 + $0x10] sm:$0xff] %vm277_vm0, %v298_v26 }
  0x8c   : > { %v395_v28 = vpop.permute.xlu0 %394  ;;  %v476_v29 = vld [vmem:[#allocation2 + $0x40] sm:$0xff] }
  0x8d   : > { %397 = vst.msk [vmem:[#allocation2 + $0x58] sm:$0xff] %vm277_vm0, %v395_v28  ;;  %767 = vmatprep.subr.bf16.mxu0 %v476_v29  ;;  %v309_v31 = vpop.permute.xlu1 %308  ;;  %v478_v34 = vld [vmem:[#allocation2 + $0x50] sm:$0xff] }
  0x8e   : > { %768 = vmatpush3.bf16.msra.mxu0 %v468_v27  ;;  %311 = vst.msk [vmem:[#allocation2 + $0x18] sm:$0xff] %vm277_vm0, %v309_v31 }
  0x8f   : > { %769 = vmatprep.subr.bf16.mxu0 %v477_v30 }
  0x90   : > { %v406_v32 = vpop.permute.xlu0 %405  ;;  %v469_v33 = vld [vmem:[#allocation2 + $0x8] sm:$0xff] }
  0x91   : > { %408 = vst.msk [vmem:[#allocation2 + $0x60] sm:$0xff] %vm277_vm0, %v406_v32  ;;  %v320_v35 = vpop.permute.xlu1 %319  ;;  %v470_v36 = vld [vmem:[#allocation2 + $0x10] sm:$0xff] }
  0x92   : > { %770 = vmatpush3.bf16.msra.mxu0 %v469_v33  ;;  %322 = vst.msk [vmem:[#allocation2 + $0x20] sm:$0xff] %vm277_vm0, %v320_v35 }
  0x93   : > { %771 = vmatprep.subr.bf16.mxu0 %v478_v34 }
  0x94   : > { %v417_v37 = vpop.permute.xlu0 %416  ;;  %v479_v38 = vld [vmem:[#allocation2 + $0x58] sm:$0xff] }
  0x95   : > { %419 = vst.msk [vmem:[#allocation2 + $0x68] sm:$0xff] %vm277_vm0, %v417_v37  ;;  %v331_v39 = vpop.permute.xlu1 %330  ;;  %v471_v40 = vld [vmem:[#allocation2 + $0x18] sm:$0xff] }
  0x96   : > { %772 = vmatpush3.bf16.msra.mxu0 %v470_v36  ;;  %333 = vst.msk [vmem:[#allocation2 + $0x28] sm:$0xff] %vm277_vm0, %v331_v39 }
  0x97   : > { %773 = vmatprep.subr.bf16.mxu0 %v479_v38 }
  0x98   : > { %v428_v41 = vpop.permute.xlu0 %427  ;;  %v480_v42 = vld [vmem:[#allocation2 + $0x60] sm:$0xff] }
  0x99   : > { %430 = vst.msk [vmem:[#allocation2 + $0x70] sm:$0xff] %vm277_vm0, %v428_v41  ;;  %v342_v43 = vpop.permute.xlu1 %341  ;;  %v472_v44 = vld [vmem:[#allocation2 + $0x20] sm:$0xff] }
  0x9a   : > { %774 = vmatpush3.bf16.msra.mxu0 %v471_v40  ;;  %344 = vst.msk [vmem:[#allocation2 + $0x30] sm:$0xff] %vm277_vm0, %v342_v43 }
  0x9b   : > { %775 = vmatprep.subr.bf16.mxu0 %v480_v42 }
  0x9c   : > { %v439_v45 = vpop.permute.xlu0 %438  ;;  %v481_v46 = vld [vmem:[#allocation2 + $0x68] sm:$0xff] }
  0x9d   : > { %441 = vst.msk [vmem:[#allocation2 + $0x78] sm:$0xff] %vm277_vm0, %v439_v45  ;;  %v353_v47 = vpop.permute.xlu1 %352  ;;  %v473_v48 = vld [vmem:[#allocation2 + $0x28] sm:$0xff] }
  0x9e   : > { %776 = vmatpush3.bf16.msra.mxu0 %v472_v44  ;;  %355 = vst.msk [vmem:[#allocation2 + $0x38] sm:$0xff] %vm277_vm0, %v353_v47 }
  0x9f   : > { %777 = vmatprep.subr.bf16.mxu0 %v481_v46 }
  0xa0   : > { %v450_v49 = vpop.permute.xlu0 %449  ;;  %v482_v50 = vld [vmem:[#allocation2 + $0x70] sm:$0xff] }
  0xa1   : > { %452 = vst.msk [vmem:[#allocation2 + $0x80] sm:$0xff] %vm277_vm0, %v450_v49  ;;  %v461_v51 = vpop.permute.xlu1 %460  ;;  %v474_v52 = vld [vmem:[#allocation2 + $0x30] sm:$0xff] }
  0xa2   : > { %778 = vmatpush3.bf16.msra.mxu0 %v473_v48  ;;  %463 = vst.msk [vmem:[#allocation2 + $0x88] sm:$0xff] %vm277_vm0, %v461_v51 }
  0xa3   : > { %779 = vmatprep.subr.bf16.mxu0 %v482_v50 }
  0xa4   : > { %v483_v53 = vld [vmem:[#allocation2 + $0x78] sm:$0xff] }
  0xa5   : > { %v475_v54 = vld [vmem:[#allocation2 + $0x38] sm:$0xff] }
  0xa6   : > { %780 = vmatpush3.bf16.msra.mxu0 %v474_v52 }
  0xa7   : > { %781 = vmatprep.subr.bf16.mxu0 %v483_v53 }
  0xa8   : > { %v484_v55 = vld [vmem:[#allocation2 + $0x80] sm:$0xff] }
  0xa9   : > { %793 = vmatpush3.bf16.msra.mxu1 %v484_v55  ;;  %v485_v57 = vld [vmem:[#allocation2 + $0x88] sm:$0xff] }
  0xaa   : > { %782 = vmatpush3.bf16.msra.mxu0 %v475_v54  ;;  %794 = vmatprep.subr.bf16.mxu1 %v890_v16 }
  0xad   : > { %550 = vmatmul.mubr.bf16.vlgmr.msra.gmra.mrb[0].mxu0 %v855_v56  ;;  %795 = vmatpush3.bf16.msra.mxu1 %v485_v57 }
  0xb0   : > { %797 = vmatmul.mubr.msk.bf16.vlgmr.msra.gmra.mrb[0].mxu1 %vm513_vm2, %v858_v58 }
  0xb1   : > { %v491_v61 = vpop.permute.xlu0 %490 }
  0xb2   : > { %v496_v0 = vpop.permute.xlu1 %495 }
 0x180   : > { %v783_v59 = vpop.f32.mrb[0].mxu0 }
 0x181   : > { %v784_v60 = vpop.f32.mrb[1].mxu0 }
 0x182   : > { %v785_v62 = vadd.f32 %v784_v60, %v783_v59  ;;  %v786_v63 = vpop.f32.mrb[2].mxu0 }
 0x183   : > { %v592_v1 = vpop.f32.mrb[0].mxu1  ;;  %v787_v2 = vpop.f32.mrb[3].mxu0 }
 0x184   : > { %v552_v3 = vadd.f32 %v785_v62, %v491_v61  ;;  %v788_v4 = vadd.f32 %v787_v2, %v786_v63  ;;  %v798_v5 = vpop.f32.mrb[1].mxu1 }
 0x185   : > { %v595_v6 = vpop.f32.mrb[2].mxu1 }
 0x186   : > { %v593_v7 = vadd.f32 %v592_v1, %v552_v3  ;;  %v555_v8 = vadd.f32 %v788_v4, %v496_v0  ;;  %v799_v9 = vpop.f32.mrb[3].mxu1 }
 0x188   : > { %v599_v10 = vmax.f32 %v593_v7, 0.0  ;;  %v596_v11 = vadd.f32 %v595_v6, %v555_v8 }
 0x18a   : > { %v765_v12 = vpack.c.bf16 %v599_v10, %v599_v10  ;;  %v600_v13 = vmax.f32 %v596_v11, 0.0 }
 0x18c   : > { %610 = vst.msk [vmem:[%s267_s24] sm:$0xf] %vm609_vm3, %v765_v12  ;;  %v766_v14 = vpack.c.bf16 %v600_v13, %v600_v13 }
 0x18e   : > { %611 = vst.msk [vmem:[%s267_s24 + $0x4] sm:$0xf] %vm609_vm3, %v766_v14 }
 0x18f PF: > { %s14_s17 = sadd.s32 1, %s881_s17   ;;  %s1025_s15 = smov %s877_s16 }
 0x190   : > { %p11_p5 = scmp.ge.s32.totalorder %s14_s17, 4   ;;  %s1026_s16 = smov %s1028_s18 }
 0x192   :  { %13 = sbr.rel (!%p11_p5) target bundleno = 2 (0x2), region = 69 }

// kernel: unet_forward.22
= control target key start
LH: loop header
LB: loop body
LE: loop exit
PB: predicated region body
PF: predicated region fallthrough
CT: control target
= control target key end

     0   :  { %s519_s12 = smov 0   ;;  %s521_s13 = smov 0   ;;  %s572_s0 = inlined_call_operand.vmem [shape: bf16[2,16,64], index: 0, kind: input, shape index: {}]   ;;  %s573_s1 = inlined_call_operand.vmem [shape: bf16[32,16], index: 1, kind: input, shape index: {}]   ;;  %s574_s2 = inlined_call_operand.vmem [shape: f32[32,1], index: 2, kind: input, shape index: {}]   ;;  %s575_s3 = inlined_call_operand.vmem [shape: bf16[2,32,64], index: 3, kind: output, shape index: {}]  }
   0x1   :  { %s523_s14 = smov 0  }
   0x2 LB: > { %s25_s15 = sadd.s32 1, %s492_s13  ;;  %p413_p0 = scmp.ge.s32.totalorder %s496_s14, 1  ;;  %s496_s14 = sphi %s523_s14, %s13_s14   ;;  %s492_s13 = sphi %s521_s13, %s577_s13   ;;  %s488_s12 = sphi %s519_s12, %s576_s12  }
   0x3   : > { %p27_p1 = scmp.ge.s32.totalorder %s25_s15, 2  ;;  %p156_p2 = scmp.lt.s32.totalorder %s496_s14, 3 }
   0x5   : > { %s579_s15 = smov (%p27_p1, %s25_s15), 0  ;;  %p157_p3 = pnand %p413_p0, %p156_p2 }
   0x6   : > { %p186_p4 = scmp.lt.s32.totalorder (!%p157_p3), %s488_s12, 1  ;;  %v472_v0 = vld [vmem:[%s573_s1] sm:$0xff] (!%p157_p3)   ;;  %vm249_vm0 = vcmask (!%p157_p3), 130048   ;;  %v211_v1 = vld [vmem:[%s574_s2 + $0x10] sm:$0xff] (!%p157_p3)  ;;  %v498_v3 = vmov (!%p157_p3), 0   ;;  %v212_v4 = vld [vmem:[%s574_s2 + $0x18] sm:$0xff] (!%p157_p3) }
   0x7   : > { %160 = sbr.rel (%p157_p3) target bundleno = 242 (0xf2), region = 32  ;;  %440 = vmatprep.mubr.msk.bf16.mxu0 (!%p157_p3), %vm249_vm0, %v472_v0  ;;  %v209_v2 = vld [vmem:[%s574_s2] sm:$0xff] (!%p157_p3)  ;;  %470 = vset.pattern.permute.xlu1 (!%p157_p3), %v498_v3  ;;  %v210_v5 = vld [vmem:[%s574_s2 + $0x8] sm:$0xff] (!%p157_p3)  ;;  %vm321_vm1 = vcmask (!%p157_p3), 519168  }
   0x8   : > { %469 = vset.pattern.permute.xlu0 (!%p157_p3), %v498_v3  ;;  %225 = vperm.xlu1 (!%p157_p3), %470, %v211_v1   ;;  %v473_v7 = vld [vmem:[%s573_s1 + $0x8] sm:$0xff] (!%p157_p3)  }
   0x9   : > { %215 = vperm.xlu0 (!%p157_p3), %469, %v209_v2  }
   0xc   : > { %230 = vperm.xlu1 (!%p157_p3), %470, %v212_v4  }
   0xd   : > { %220 = vperm.xlu0 (!%p157_p3), %469, %v210_v5  }
   0xe   : > { %s581_s12 = smov (!%p186_p4, %s488_s12), 1 }
   0xf   : > { %s429_s22 = sshll.u32 %s581_s12, 3  ;;  %s430_s5 = sshll.u32 %s581_s12, 4 }
  0x10   : > { %s193_s25 = scalar_lea.vmem %s572_s0, %s429_s22  ;;  %s201_s8 = scalar_lea.vmem %s575_s3, %s430_s5 }
  0x11   : > { %v471_v6 = vld [vmem:[%s193_s25] sm:$0xff]  }
  0x12   : > { %438 = vmatprep.subr.bf16.mxu0 %v471_v6 }
  0x13   : > { %439 = vmatpush3.bf16.msra.mxu0 %v471_v6 }
  0x16   : > { %441 = vmatmul.mubr.msk.bf16.vlgmr.msra.gmra.mrb[0].mxu0 %vm249_vm0, %v473_v7 }
  0x87   : > { %v226_v8 = vpop.permute.xlu1 %225 }
  0x88   : > { %v216_v9 = vpop.permute.xlu0 %215 }
  0x8b   : > { %v231_v13 = vpop.permute.xlu1 %230 }
  0x8c   : > { %v221_v16 = vpop.permute.xlu0 %220 }
  0xe9   : > { %v442_v10 = vpop.f32.mrb[0].mxu0 }
  0xea   : > { %v299_v11 = vadd.f32 %v442_v10, %v226_v8  ;;  %v290_v12 = vpop.f32.mrb[1].mxu0 }
  0xeb   : > { %v291_v14 = vadd.f32 %v290_v12, %v216_v9  ;;  %v443_v15 = vpop.f32.mrb[2].mxu0 }
  0xec   : > { %v433_v17 = vpack.c.bf16 %v299_v11, %v299_v11  ;;  %v302_v18 = vadd.f32 %v443_v15, %v231_v13  ;;  %v293_v19 = vpop.f32.mrb[3].mxu0 }
  0xed   : > { %v431_v20 = vpack.c.bf16 %v291_v14, %v291_v14  ;;  %v294_v21 = vadd.f32 %v293_v19, %v221_v16 }
  0xee   : > { %324 = vst.msk [vmem:[%s201_s8 + $0x8] sm:$0xf] %vm321_vm1, %v433_v17  ;;  %v434_v22 = vpack.c.bf16 %v302_v18, %v302_v18 }
  0xef   : > { %322 = vst.msk [vmem:[%s201_s8] sm:$0xf] %vm321_vm1, %v431_v20  ;;  %v432_v23 = vpack.c.bf16 %v294_v21, %v294_v21 }
  0xf0   : > { %325 = vst.msk [vmem:[%s201_s8 + $0xc] sm:$0xf] %vm321_vm1, %v434_v22 }
  0xf1   : > { %323 = vst.msk [vmem:[%s201_s8 + $0x4] sm:$0xf] %vm321_vm1, %v432_v23 }
  0xf2 PF: > { %s13_s14 = sadd.s32 1, %s496_s14   ;;  %s576_s12 = smov %s492_s13 }
  0xf3   : > { %p10_p5 = scmp.ge.s32.totalorder %s13_s14, 4   ;;  %s577_s13 = smov %s579_s15 }
  0xf5   :  { %12 = sbr.rel (!%p10_p5) target bundleno = 2 (0x2), region = 62 }

// kernel: unet_forward.25
= control target key start
LH: loop header
LB: loop body
LE: loop exit
PB: predicated region body
PF: predicated region fallthrough
CT: control target
= control target key end

     0   :  { %s488_s12 = smov 0   ;;  %s490_s13 = smov 0   ;;  %s531_s0 = inlined_call_operand.vmem [shape: bf16[2,8,256], index: 0, kind: input, shape index: {}]   ;;  %s532_s1 = inlined_call_operand.vmem [shape: bf16[2,8], index: 1, kind: input, shape index: {}]   ;;  %s533_s2 = inlined_call_operand.vmem [shape: f32[2,1], index: 2, kind: input, shape index: {}]   ;;  %s534_s3 = inlined_call_operand.vmem [shape: f32[2,2,256], index: 3, kind: output, shape index: {}]  }
   0x1   :  { %s492_s14 = smov 0  }
   0x2 LB: > { %s25_s15 = sadd.s32 1, %s461_s13  ;;  %p391_p0 = scmp.ge.s32.totalorder %s465_s14, 1  ;;  %s465_s14 = sphi %s492_s14, %s13_s14   ;;  %s461_s13 = sphi %s490_s13, %s536_s13   ;;  %s457_s12 = sphi %s488_s12, %s535_s12  }
   0x3   : > { %p27_p1 = scmp.ge.s32.totalorder %s25_s15, 2  ;;  %p158_p2 = scmp.lt.s32.totalorder %s465_s14, 3 }
   0x5   : > { %s538_s15 = smov (%p27_p1, %s25_s15), 0  ;;  %p159_p3 = pnand %p391_p0, %p158_p2 }
   0x6   : > { %p191_p4 = scmp.lt.s32.totalorder (!%p159_p3), %s457_s12, 1  ;;  %v467_v0 = vmov (!%p159_p3), 0   ;;  %v213_v1 = vld [vmem:[%s533_s2] sm:$0x3] (!%p159_p3)  ;;  %vm228_vm0 = vcmask (!%p159_p3), 1043456   ;;  %vm224_vm1 = vcmask (!%p159_p3), 64512  }
   0x7   : > { %162 = sbr.rel (%p159_p3) target bundleno = 268 (0x10c), region = 32  ;;  %267 = vmatprep.mubr.bf16.mxu0 (!%p159_p3), %v467_v0  ;;  %432 = vset.pattern.permute.xlu0 (!%p159_p3), %v467_v0  ;;  %v211_v6 = vld [vmem:[%s532_s1] sm:$0x1] (!%p159_p3) }
   0x8   : > { %216 = vperm.xlu0 (!%p159_p3), %432, %v213_v1  }
   0xe   : > { %s540_s12 = smov (!%p191_p4, %s457_s12), 1 }
   0xf   : > { %s405_s18 = sshll.u32 %s540_s12, 3  ;;  %s406_s24 = sshll.u32 %s540_s12, 2 }
  0x10   : > { %s198_s21 = scalar_lea.vmem %s531_s0, %s405_s18  ;;  %s208_s27 = scalar_lea.vmem %s534_s3, %s406_s24 }
  0x11   : > { %v212_v2 = vld [vmem:[%s198_s21] sm:$0xff] }
  0x12   : > { %v397_v3 = vcombine.high %v212_v2, %v212_v2  ;;  %v396_v4 = vcombine.low %v212_v2, %v212_v2 }
  0x14   : > { %398 = vmatprep.subr.msk.bf16.mxu0 %vm228_vm0, %v397_v3  ;;  %v230_v5 = vsel %vm228_vm0, %v396_v4, 0 }
  0x15   : > { %236 = vmatpush1.bf16.msra.mxu0 %v230_v5 }
  0x18   : > { %399 = vmatmul.mubr.msk.bf16.vlgmr.msra.gmra.mrb[0].mxu0 %vm224_vm1, %v211_v6 }
  0x87   : > { %v217_v7 = vpop.permute.xlu0 %216 }
  0xeb   : > { %v269_v8 = vpop.f32.mrb[0].mxu0 }
  0xec   : > { %v270_v9 = vadd.f32 %v269_v8, %v217_v7  ;;  %v271_v10 = vpop.f32.mrb[1].mxu0 }
  0xed   : > { %v272_v11 = vadd.f32 %v271_v10, %v217_v7  ;;  %v273_v12 = vpop.f32.mrb[2].mxu0 }
  0xee   : > { %v400_v13 = vmul.f32 -1.442695, %v270_v9  ;;  %v274_v14 = vpop.f32.mrb[3].mxu0 }
  0xef   : > { %v401_v15 = vmul.f32 -1.442695, %v272_v11 }
  0xf0   : > { %435 = vpow2.f32 %v400_v13 }
  0xf1   : > { %437 = vpow2.f32 %v401_v15 }
  0xfa   : > { %v436_v16 = vpop.eup %435 }
  0xfb   : > { %v438_v17 = vpop.eup %437  ;;  %v282_v18 = vadd.f32 1.0, %v436_v16 }
  0xfc   : > { %v283_v19 = vadd.f32 1.0, %v438_v17 }
  0xfd   : > { %439 = vrcp.f32 %v282_v18 }
  0xfe   : > { %441 = vrcp.f32 %v283_v19 }
 0x107   : > { %v440_v20 = vpop.eup %439 }
 0x108   : > { %v442_v21 = vpop.eup %441 }
 0x109   : > { %v290_v22 = vcombine.low %v440_v20, %v442_v21 }
 0x10b   : > { %402 = vst.sshfl [vmem:[%s208_s27] sm:$0x33 pattern:$0x76325410] %v290_v22 }
 0x10c PF: > { %s13_s14 = sadd.s32 1, %s465_s14   ;;  %s535_s12 = smov %s461_s13 }
 0x10d   : > { %p10_p5 = scmp.ge.s32.totalorder %s13_s14, 4   ;;  %s536_s13 = smov %s538_s15 }
 0x10f   :  { %12 = sbr.rel (!%p10_p5) target bundleno = 2 (0x2), region = 62 }

// kernel: unet_forward.23
= control target key start
LH: loop header
LB: loop body
LE: loop exit
PB: predicated region body
PF: predicated region fallthrough
CT: control target
= control target key end

     0   :  { %s1140_s15 = smov 0   ;;  %s1142_s16 = smov 0   ;;  %s1348_s0 = inlined_call_operand.vmem [shape: bf16[2,1,8,342], index: 0, kind: input, shape index: {}]   ;;  %s1349_s1 = inlined_call_operand.vmem [shape: bf16[2,1,8,342], index: 1, kind: input, shape index: {}]   ;;  %s1350_s2 = inlined_call_operand.vmem [shape: bf16[8,144], index: 2, kind: input, shape index: {}]   ;;  %s1351_s3 = inlined_call_operand.vmem [shape: f32[8,1], index: 3, kind: input, shape index: {}]   ;;  %s1352_s4 = inlined_call_operand.vmem [shape: bf16[2,1,8,288], index: 4, kind: output, shape index: {}]  }
   0x1   :  { %s1144_s17 = smov 0  }
   0x2 LB: > { %s26_s18 = sadd.s32 1, %s1100_s16  ;;  %p955_p0 = scmp.ge.s32.totalorder %s1104_s17, 1  ;;  %s1104_s17 = sphi %s1144_s17, %s14_s17   ;;  %s1100_s16 = sphi %s1142_s16, %s1354_s16   ;;  %s1096_s15 = sphi %s1140_s15, %s1353_s15  }
   0x3   : > { %p28_p1 = scmp.ge.s32.totalorder %s26_s18, 2  ;;  %p198_p2 = scmp.lt.s32.totalorder %s1104_s17, 3 }
   0x5   : > { %s1356_s18 = smov (%p28_p1, %s26_s18), 0  ;;  %p199_p3 = pnand %p955_p0, %p198_p2 }
   0x6   : > { %p241_p4 = scmp.lt.s32.totalorder (!%p199_p3), %s1096_s15, 1  ;;  %v1106_v1 = vmov (!%p199_p3), 0   ;;  %s1107_s23 = smov (!%p199_p3), 127   ;;  %vm284_vm0 = vcmask (!%p199_p3), 257024   ;;  %vm310_vm1 = vcmask (!%p199_p3), 261124   ;;  %v1262_v25 = vld [vmem:[%s1350_s2] sm:$0xff] (!%p199_p3) }
   0x7   : > { %202 = sbr.rel (%p199_p3) target bundleno = 460 (0x1cc), region = 36  ;;  %780 = vmatprep.subr.bf16.mxu1 (!%p199_p3), %v1106_v1  ;;  %1057 = vset.pattern.permute.xlu0 (!%p199_p3), %v1106_v1  ;;  %s1108_s27 = smov (!%p199_p3), 126   ;;  %v1014_v26 = vcombine.high (!%p199_p3), %v1262_v25, %v1262_v25  ;;  %vm735_vm2 = vcmask (!%p199_p3), 130048   ;;  %v723_v27 = vld [vmem:[%s1351_s3] sm:$0xff] (!%p199_p3)  ;;  %vm302_vm3 = vcmask (!%p199_p3), 1039360   ;;  %vm328_vm4 = vcmask (!%p199_p3), 1031168  }
   0x8   : > { %s1109_s28 = smov (!%p199_p3), 110   ;;  %s1110_s29 = smov (!%p199_p3), 109   ;;  %vm353_vm5 = vcmask (!%p199_p3), 900096   ;;  %vm378_vm6 = vcmask (!%p199_p3), 891904   ;;  %vm403_vm7 = vcmask (!%p199_p3), 883712   ;;  %vm428_vm8 = vcmask (!%p199_p3), 752640  }
   0x9   : > { %s1111_s30 = smov (!%p199_p3), 108   ;;  %s1112_s5 = smov (!%p199_p3), 92   ;;  %1016 = vmatprep.mubr.msk.bf16.mxu1 (!%p199_p3), %vm735_vm2, %v1014_v26  ;;  %1015 = vmatprep.mubr.msk.bf16.mxu0 (!%p199_p3), %vm735_vm2, %v1014_v26  ;;  %vm453_vm9 = vcmask (!%p199_p3), 744448   ;;  %vm478_vm10 = vcmask (!%p199_p3), 736256  }
   0xa   : > { %s1113_s6 = smov (!%p199_p3), 91   ;;  %s1114_s7 = smov (!%p199_p3), 90  }
   0xe   : > { %s1358_s15 = smov (!%p241_p4, %s1096_s15), 1 }
   0xf   : > { %s1158_s19 = smul.u32 12, %s1358_s15 }
  0x11   : > { %s1164_s22 = scalar_lea.vmem %s1348_s0, %s1158_s19  ;;  %s1176_s26 = scalar_lea.vmem %s1349_s1, %s1158_s19 }
  0x12   : > { %v286_v0 = vld [vmem:[%s1164_s22] sm:$0xff]  ;;  %v1060_v4 = vld [vmem:[%s1164_s22 + $0x8] ss:$0 sps:$4 sm:$0xff]   ;;  %s267_s14 = scalar_lea.vmem %s1352_s4, %s1158_s19 }
  0x13   : > { %v963_v2 = vcombine.high %v286_v0, %v286_v0  ;;  %v962_v3 = vcombine.low %v286_v0, %v286_v0  ;;  %v503_v5 = vld [vmem:[%s1176_s26] sm:$0xff]  ;;  %v1061_v6 = vld [vmem:[%s1164_s22 + $0x8] ss:$0 sps:$4 sm:$0xff]  }
  0x14   : > { %v1182_v7 = vcombine.high %v503_v5, %v503_v5  ;;  %v1184_v8 = vcombine.low %v503_v5, %v503_v5  ;;  %v1062_v9 = vld [vmem:[%s1164_s22 + $0x8] ss:$0 sps:$4 sm:$0xff]  }
  0x15   : > { %298 = vrot.lane.b32.xlu0 %v963_v2, %s1107_s23  ;;  %296 = vrot.lane.b32.xlu1 %v962_v3, %s1107_s23  ;;  %283 = vst [vmem:[#allocation2 + $0x8] sm:$0xf] %v963_v2  ;;  %282 = vst [vmem:[#allocation2] sm:$0xf] %v962_v3  ;;  %v1078_v10 = vld [vmem:[%s1164_s22 + $0x8] ss:$0 sps:$4 sm:$0xff]  }
  0x16   : > { %501 = vst [vmem:[#allocation2 + $0x68] sm:$0xf0] %v1182_v7  ;;  %500 = vst [vmem:[#allocation2 + $0x60] sm:$0xf0] %v1184_v8  ;;  %v1063_v11 = vld [vmem:[%s1164_s22 + $0x8] ss:$0 sps:$4 sm:$0xff]  }
  0x17   : > { %285 = vst.msk [vmem:[#allocation2 + $0x10] sm:$0xf] %vm284_vm0, %v1078_v10  ;;  %v1064_v12 = vld [vmem:[%s1164_s22 + $0x8] ss:$0 sps:$4 sm:$0xff]  }
  0x18   : > { %v1065_v13 = vld [vmem:[%s1164_s22 + $0x8] ss:$0 sps:$4 sm:$0xff]  }
  0x19   : > { %300 = vrot.lane.b32.xlu0 %v1060_v4, %s1107_s23  ;;  %324 = vrot.lane.b32.xlu1 %v963_v2, %s1108_s27  ;;  %v1079_v14 = vld [vmem:[%s1176_s26 + $0x8] ss:$0 sps:$4 sm:$0xff]  }
  0x1a   : > { %502 = vst.msk [vmem:[#allocation2 + $0x70] sm:$0xf0] %vm310_vm1, %v1079_v14  ;;  %v1066_v15 = vld [vmem:[%s1164_s22 + $0x8] ss:$0 sps:$4 sm:$0xff]  }
  0x1b   : > { %v1067_v16 = vld [vmem:[%s1164_s22 + $0x8] ss:$0 sps:$4 sm:$0xff]  }
  0x1c   : > { %v1069_v17 = vld [vmem:[%s1176_s26 + $0x8] ss:$0 sps:$4 sm:$0xff]  }
  0x1d   : > { %326 = vrot.lane.b32.xlu0 %v1061_v6, %s1108_s27  ;;  %349 = vrot.lane.b32.xlu1 %v963_v2, %s1109_s28  ;;  %v1070_v18 = vld [vmem:[%s1176_s26 + $0x8] ss:$0 sps:$4 sm:$0xff]  }
  0x1e   : > { %v1072_v19 = vld [vmem:[%s1176_s26 + $0x8] ss:$0 sps:$4 sm:$0xff]  }
  0x1f   : > { %v1073_v20 = vld [vmem:[%s1176_s26 + $0x8] ss:$0 sps:$4 sm:$0xff]  }
  0x20   : > { %v1074_v21 = vld [vmem:[%s1176_s26 + $0x8] ss:$0 sps:$4 sm:$0xff]  }
  0x21   : > { %351 = vrot.lane.b32.xlu0 %v1062_v9, %s1109_s28  ;;  %322 = vrot.lane.b32.xlu1 %v962_v3, %s1108_s27  ;;  %v1075_v22 = vld [vmem:[%s1176_s26 + $0x8] ss:$0 sps:$4 sm:$0xff]  }
  0x22   : > { %v1076_v23 = vld [vmem:[%s1176_s26 + $0x8] ss:$0 sps:$4 sm:$0xff]  }
  0x23   : > { %v1077_v24 = vld [vmem:[%s1176_s26 + $0x8] ss:$0 sps:$4 sm:$0xff]  }
  0x25   : > { %347 = vrot.lane.b32.xlu0 %v962_v3, %s1109_s28  ;;  %374 = vrot.lane.b32.xlu1 %v963_v2, %s1110_s29 }
  0x29   : > { %376 = vrot.lane.b32.xlu0 %v1063_v11, %s1110_s29  ;;  %399 = vrot.lane.b32.xlu1 %v963_v2, %s1111_s30 }
  0x2d   : > { %401 = vrot.lane.b32.xlu0 %v1064_v12, %s1111_s30  ;;  %372 = vrot.lane.b32.xlu1 %v962_v3, %s1110_s29 }
  0x31   : > { %397 = vrot.lane.b32.xlu0 %v962_v3, %s1111_s30  ;;  %424 = vrot.lane.b32.xlu1 %v963_v2, %s1112_s5 }
  0x35   : > { %426 = vrot.lane.b32.xlu0 %v1065_v13, %s1112_s5  ;;  %449 = vrot.lane.b32.xlu1 %v963_v2, %s1113_s6 }
  0x39   : > { %451 = vrot.lane.b32.xlu0 %v1066_v15, %s1113_s6  ;;  %422 = vrot.lane.b32.xlu1 %v962_v3, %s1112_s5 }
  0x3d   : > { %447 = vrot.lane.b32.xlu0 %v962_v3, %s1113_s6  ;;  %474 = vrot.lane.b32.xlu1 %v963_v2, %s1114_s7 }
  0x41   : > { %476 = vrot.lane.b32.xlu0 %v1067_v16, %s1114_s7  ;;  %472 = vrot.lane.b32.xlu1 %v962_v3, %s1114_s7 }
  0x45   : > { %515 = vrot.lane.b32.xlu0 %v1182_v7, %s1107_s23  ;;  %517 = vrot.lane.b32.xlu1 %v1069_v17, %s1107_s23 }
  0x49   : > { %539 = vrot.lane.b32.xlu0 %v1182_v7, %s1108_s27  ;;  %541 = vrot.lane.b32.xlu1 %v1070_v18, %s1108_s27 }
  0x4d   : > { %513 = vrot.lane.b32.xlu0 %v1184_v8, %s1107_s23  ;;  %537 = vrot.lane.b32.xlu1 %v1184_v8, %s1108_s27 }
  0x51   : > { %563 = vrot.lane.b32.xlu0 %v1182_v7, %s1109_s28  ;;  %565 = vrot.lane.b32.xlu1 %v1072_v19, %s1109_s28 }
  0x55   : > { %587 = vrot.lane.b32.xlu0 %v1182_v7, %s1110_s29  ;;  %589 = vrot.lane.b32.xlu1 %v1073_v20, %s1110_s29 }
  0x59   : > { %561 = vrot.lane.b32.xlu0 %v1184_v8, %s1109_s28  ;;  %585 = vrot.lane.b32.xlu1 %v1184_v8, %s1110_s29 }
  0x5d   : > { %611 = vrot.lane.b32.xlu0 %v1182_v7, %s1111_s30  ;;  %613 = vrot.lane.b32.xlu1 %v1074_v21, %s1111_s30 }
  0x61   : > { %635 = vrot.lane.b32.xlu0 %v1182_v7, %s1112_s5  ;;  %637 = vrot.lane.b32.xlu1 %v1075_v22, %s1112_s5 }
  0x65   : > { %609 = vrot.lane.b32.xlu0 %v1184_v8, %s1111_s30  ;;  %633 = vrot.lane.b32.xlu1 %v1184_v8, %s1112_s5 }
  0x69   : > { %659 = vrot.lane.b32.xlu0 %v1182_v7, %s1113_s6  ;;  %661 = vrot.lane.b32.xlu1 %v1076_v23, %s1113_s6 }
  0x6d   : > { %683 = vrot.lane.b32.xlu0 %v1182_v7, %s1114_s7  ;;  %685 = vrot.lane.b32.xlu1 %v1077_v24, %s1114_s7 }
  0x71   : > { %657 = vrot.lane.b32.xlu0 %v1184_v8, %s1113_s6  ;;  %681 = vrot.lane.b32.xlu1 %v1184_v8, %s1114_s7 }
  0x75   : > { %726 = vperm.xlu0 %1057, %v723_v27  }
  0x87   : > { %v299_v28 = vpop.permute.xlu0 %298  ;;  %v297_v29 = vpop.permute.xlu1 %296 }
  0x88   : > { %v303_v30 = vsel %vm302_vm3, %v297_v29, %v299_v28 }
  0x89   : > { %308 = vst [vmem:[#allocation2] sm:$0xf0] %v303_v30 }
  0x8b   : > { %v301_v31 = vpop.permute.xlu0 %300  ;;  %v325_v32 = vpop.permute.xlu1 %324 }
  0x8c   : > { %v304_v33 = vsel %vm302_vm3, %v299_v28, %v301_v31  ;;  %311 = vst.msk [vmem:[#allocation2 + $0x10] sm:$0xf0] %vm310_vm1, %v301_v31 }
  0x8d   : > { %309 = vst [vmem:[#allocation2 + $0x8] sm:$0xf0] %v304_v33 }
  0x8f   : > { %v327_v34 = vpop.permute.xlu0 %326  ;;  %v350_v35 = vpop.permute.xlu1 %349 }
  0x90   : > { %v330_v36 = vsel %vm328_vm4, %v325_v32, %v327_v34  ;;  %336 = vst.msk [vmem:[#allocation2 + $0x28] sm:$0xf] %vm284_vm0, %v327_v34  ;;  %v696_v43 = vld [vmem:[#allocation2] sm:$0xff] }
  0x91   : > { %335 = vst [vmem:[#allocation2 + $0x20] sm:$0xf] %v330_v36 }
  0x93   : > { %v352_v37 = vpop.permute.xlu0 %351  ;;  %v323_v38 = vpop.permute.xlu1 %322  ;;  %v698_v39 = vld [vmem:[#allocation2 + $0x10] sm:$0xff] }
  0x94   : > { %v355_v40 = vsel %vm353_vm5, %v350_v35, %v352_v37  ;;  %361 = vst.msk [vmem:[#allocation2 + $0x28] sm:$0xf0] %vm310_vm1, %v352_v37  ;;  %v329_v41 = vsel %vm328_vm4, %v323_v38, %v325_v32  ;;  %781 = vmatpush1.bf16.msra.mxu1 %v698_v39  ;;  %v697_v42 = vld [vmem:[#allocation2 + $0x8] sm:$0xff] }
  0x95   : > { %360 = vst [vmem:[#allocation2 + $0x20] sm:$0xf0] %v355_v40  ;;  %334 = vst [vmem:[#allocation2 + $0x18] sm:$0xf] %v329_v41  ;;  %739 = vmatprep.subr.bf16.mxu0 %v697_v42  ;;  %782 = vmatprep.subr.bf16.mxu1 %v1106_v1 }
  0x96   : > { %740 = vmatpush1.bf16.msra.mxu0 %v696_v43 }
  0x97   : > { %v348_v44 = vpop.permute.xlu0 %347  ;;  %v375_v45 = vpop.permute.xlu1 %374 }
  0x98   : > { %v354_v46 = vsel %vm353_vm5, %v348_v44, %v350_v35 }
  0x99   : > { %359 = vst [vmem:[#allocation2 + $0x18] sm:$0xf0] %v354_v46 }
  0x9b   : > { %v377_v47 = vpop.permute.xlu0 %376  ;;  %v400_v48 = vpop.permute.xlu1 %399  ;;  %v701_v49 = vld [vmem:[#allocation2 + $0x28] sm:$0xff] }
  0x9c   : > { %v380_v50 = vsel %vm378_vm6, %v375_v45, %v377_v47  ;;  %386 = vst.msk [vmem:[#allocation2 + $0x40] sm:$0xf] %vm284_vm0, %v377_v47  ;;  %783 = vmatpush1.bf16.msra.mxu1 %v701_v49  ;;  %v700_v51 = vld [vmem:[#allocation2 + $0x20] sm:$0xff] }
  0x9d   : > { %385 = vst [vmem:[#allocation2 + $0x38] sm:$0xf] %v380_v50  ;;  %741 = vmatprep.subr.bf16.mxu0 %v700_v51  ;;  %784 = vmatprep.subr.bf16.mxu1 %v1106_v1 }
  0x9f   : > { %v402_v52 = vpop.permute.xlu0 %401  ;;  %v373_v53 = vpop.permute.xlu1 %372 }
  0xa0   : > { %v405_v54 = vsel %vm403_vm7, %v400_v48, %v402_v52  ;;  %411 = vst.msk [vmem:[#allocation2 + $0x40] sm:$0xf0] %vm310_vm1, %v402_v52  ;;  %v379_v55 = vsel %vm378_vm6, %v373_v53, %v375_v45  ;;  %v699_v56 = vld [vmem:[#allocation2 + $0x18] sm:$0xff] }
  0xa1   : > { %410 = vst [vmem:[#allocation2 + $0x38] sm:$0xf0] %v405_v54  ;;  %384 = vst [vmem:[#allocation2 + $0x30] sm:$0xf] %v379_v55  ;;  %742 = vmatpush1.bf16.msra.mxu0 %v699_v56 }
  0xa3   : > { %v398_v57 = vpop.permute.xlu0 %397  ;;  %v425_v58 = vpop.permute.xlu1 %424 }
  0xa4   : > { %v404_v59 = vsel %vm403_vm7, %v398_v57, %v400_v48 }
  0xa5   : > { %409 = vst [vmem:[#allocation2 + $0x30] sm:$0xf0] %v404_v59 }
  0xa7   : > { %v427_v60 = vpop.permute.xlu0 %426  ;;  %v450_v61 = vpop.permute.xlu1 %449  ;;  %v704_v62 = vld [vmem:[#allocation2 + $0x40] sm:$0xff] }
  0xa8   : > { %v430_v63 = vsel %vm428_vm8, %v425_v58, %v427_v60  ;;  %436 = vst.msk [vmem:[#allocation2 + $0x58] sm:$0xf] %vm284_vm0, %v427_v60  ;;  %785 = vmatpush1.bf16.msra.mxu1 %v704_v62  ;;  %v703_v0 = vld [vmem:[#allocation2 + $0x38] sm:$0xff] }
  0xa9   : > { %435 = vst [vmem:[#allocation2 + $0x50] sm:$0xf] %v430_v63  ;;  %743 = vmatprep.subr.bf16.mxu0 %v703_v0  ;;  %786 = vmatprep.subr.bf16.mxu1 %v1106_v1 }
  0xab   : > { %v452_v2 = vpop.permute.xlu0 %451  ;;  %v423_v3 = vpop.permute.xlu1 %422 }
  0xac   : > { %v455_v4 = vsel %vm453_vm9, %v450_v61, %v452_v2  ;;  %461 = vst.msk [vmem:[#allocation2 + $0x58] sm:$0xf0] %vm310_vm1, %v452_v2  ;;  %v429_v5 = vsel %vm428_vm8, %v423_v3, %v425_v58  ;;  %v702_v6 = vld [vmem:[#allocation2 + $0x30] sm:$0xff] }
  0xad   : > { %460 = vst [vmem:[#allocation2 + $0x50] sm:$0xf0] %v455_v4  ;;  %434 = vst [vmem:[#allocation2 + $0x48] sm:$0xf] %v429_v5  ;;  %744 = vmatpush1.bf16.msra.mxu0 %v702_v6 }
  0xaf   : > { %v448_v7 = vpop.permute.xlu0 %447  ;;  %v475_v8 = vpop.permute.xlu1 %474 }
  0xb0   : > { %v454_v9 = vsel %vm453_vm9, %v448_v7, %v450_v61 }
  0xb1   : > { %459 = vst [vmem:[#allocation2 + $0x48] sm:$0xf0] %v454_v9 }
  0xb3   : > { %v477_v10 = vpop.permute.xlu0 %476  ;;  %v473_v11 = vpop.permute.xlu1 %472  ;;  %v707_v12 = vld [vmem:[#allocation2 + $0x58] sm:$0xff] }
  0xb4   : > { %v480_v13 = vsel %vm478_vm10, %v475_v8, %v477_v10  ;;  %486 = vst.msk [vmem:[#allocation2 + $0x70] sm:$0xf] %vm284_vm0, %v477_v10  ;;  %v479_v14 = vsel %vm478_vm10, %v473_v11, %v475_v8  ;;  %787 = vmatpush1.bf16.msra.mxu1 %v707_v12  ;;  %v706_v15 = vld [vmem:[#allocation2 + $0x50] sm:$0xff] }
  0xb5   : > { %485 = vst [vmem:[#allocation2 + $0x68] sm:$0xf] %v480_v13  ;;  %484 = vst [vmem:[#allocation2 + $0x60] sm:$0xf] %v479_v14  ;;  %745 = vmatprep.subr.bf16.mxu0 %v706_v15  ;;  %788 = vmatprep.subr.bf16.mxu1 %v1106_v1 }
  0xb7   : > { %v516_v16 = vpop.permute.xlu0 %515  ;;  %v518_v17 = vpop.permute.xlu1 %517 }
  0xb8   : > { %v520_v18 = vsel %vm302_vm3, %v516_v16, %v518_v17  ;;  %526 = vst.msk [vmem:[#allocation2 + $0x88] sm:$0xf] %vm284_vm0, %v518_v17  ;;  %v705_v19 = vld [vmem:[#allocation2 + $0x48] sm:$0xff] }
  0xb9   : > { %525 = vst [vmem:[#allocation2 + $0x80] sm:$0xf] %v520_v18  ;;  %746 = vmatpush1.bf16.msra.mxu0 %v705_v19 }
  0xbb   : > { %v540_v20 = vpop.permute.xlu0 %539  ;;  %v542_v21 = vpop.permute.xlu1 %541  ;;  %v710_v22 = vld [vmem:[#allocation2 + $0x70] sm:$0xff] }
  0xbc   : > { %v544_v23 = vsel %vm328_vm4, %v540_v20, %v542_v21  ;;  %550 = vst.msk [vmem:[#allocation2 + $0x88] sm:$0xf0] %vm310_vm1, %v542_v21  ;;  %789 = vmatpush1.bf16.msra.mxu1 %v710_v22  ;;  %v709_v24 = vld [vmem:[#allocation2 + $0x68] sm:$0xff]  ;;  %v708_v26 = vld [vmem:[#allocation2 + $0x60] sm:$0xff] }
  0xbd   : > { %549 = vst [vmem:[#allocation2 + $0x80] sm:$0xf0] %v544_v23  ;;  %747 = vmatprep.subr.bf16.mxu0 %v709_v24  ;;  %790 = vmatprep.subr.bf16.mxu1 %v1106_v1 }
  0xbe   : > { %748 = vmatpush1.bf16.msra.mxu0 %v708_v26 }
  0xbf   : > { %v514_v27 = vpop.permute.xlu0 %513  ;;  %v538_v28 = vpop.permute.xlu1 %537 }
  0xc0   : > { %v519_v29 = vsel %vm302_vm3, %v514_v27, %v516_v16  ;;  %v543_v30 = vsel %vm328_vm4, %v538_v28, %v540_v20 }
  0xc1   : > { %524 = vst [vmem:[#allocation2 + $0x78] sm:$0xf] %v519_v29  ;;  %548 = vst [vmem:[#allocation2 + $0x78] sm:$0xf0] %v543_v30 }
  0xc3   : > { %v564_v31 = vpop.permute.xlu0 %563  ;;  %v566_v32 = vpop.permute.xlu1 %565  ;;  %v713_v33 = vld [vmem:[#allocation2 + $0x88] sm:$0xff] }
  0xc4   : > { %v568_v34 = vsel %vm353_vm5, %v564_v31, %v566_v32  ;;  %574 = vst.msk [vmem:[#allocation2 + $0xa0] sm:$0xf] %vm284_vm0, %v566_v32  ;;  %791 = vmatpush1.bf16.msra.mxu1 %v713_v33  ;;  %v712_v35 = vld [vmem:[#allocation2 + $0x80] sm:$0xff] }
  0xc5   : > { %573 = vst [vmem:[#allocation2 + $0x98] sm:$0xf] %v568_v34  ;;  %749 = vmatprep.subr.bf16.mxu0 %v712_v35  ;;  %792 = vmatprep.subr.bf16.mxu1 %v1106_v1 }
  0xc7   : > { %v588_v36 = vpop.permute.xlu0 %587  ;;  %v590_v37 = vpop.permute.xlu1 %589 }
  0xc8   : > { %v592_v38 = vsel %vm378_vm6, %v588_v36, %v590_v37  ;;  %598 = vst.msk [vmem:[#allocation2 + $0xa0] sm:$0xf0] %vm310_vm1, %v590_v37  ;;  %v711_v39 = vld [vmem:[#allocation2 + $0x78] sm:$0xff] }
  0xc9   : > { %597 = vst [vmem:[#allocation2 + $0x98] sm:$0xf0] %v592_v38  ;;  %750 = vmatpush1.bf16.msra.mxu0 %v711_v39 }
  0xcb   : > { %v562_v40 = vpop.permute.xlu0 %561  ;;  %v586_v41 = vpop.permute.xlu1 %585 }
  0xcc   : > { %v567_v42 = vsel %vm353_vm5, %v562_v40, %v564_v31  ;;  %v591_v43 = vsel %vm378_vm6, %v586_v41, %v588_v36 }
  0xcd   : > { %572 = vst [vmem:[#allocation2 + $0x90] sm:$0xf] %v567_v42  ;;  %596 = vst [vmem:[#allocation2 + $0x90] sm:$0xf0] %v591_v43 }
  0xcf   : > { %v612_v44 = vpop.permute.xlu0 %611  ;;  %v614_v45 = vpop.permute.xlu1 %613  ;;  %v716_v46 = vld [vmem:[#allocation2 + $0xa0] sm:$0xff] }
  0xd0   : > { %v616_v47 = vsel %vm403_vm7, %v612_v44, %v614_v45  ;;  %622 = vst.msk [vmem:[#allocation2 + $0xb8] sm:$0xf] %vm284_vm0, %v614_v45  ;;  %793 = vmatpush1.bf16.msra.mxu1 %v716_v46  ;;  %v715_v48 = vld [vmem:[#allocation2 + $0x98] sm:$0xff] }
  0xd1   : > { %621 = vst [vmem:[#allocation2 + $0xb0] sm:$0xf] %v616_v47  ;;  %751 = vmatprep.subr.bf16.mxu0 %v715_v48  ;;  %794 = vmatprep.subr.bf16.mxu1 %v1106_v1 }
  0xd3   : > { %v636_v49 = vpop.permute.xlu0 %635  ;;  %v638_v50 = vpop.permute.xlu1 %637 }
  0xd4   : > { %v640_v51 = vsel %vm428_vm8, %v636_v49, %v638_v50  ;;  %646 = vst.msk [vmem:[#allocation2 + $0xb8] sm:$0xf0] %vm310_vm1, %v638_v50  ;;  %v714_v52 = vld [vmem:[#allocation2 + $0x90] sm:$0xff] }
  0xd5   : > { %645 = vst [vmem:[#allocation2 + $0xb0] sm:$0xf0] %v640_v51  ;;  %752 = vmatpush1.bf16.msra.mxu0 %v714_v52 }
  0xd7   : > { %v610_v53 = vpop.permute.xlu0 %609  ;;  %v634_v54 = vpop.permute.xlu1 %633 }
  0xd8   : > { %v615_v55 = vsel %vm403_vm7, %v610_v53, %v612_v44  ;;  %v639_v56 = vsel %vm428_vm8, %v634_v54, %v636_v49 }
  0xd9   : > { %620 = vst [vmem:[#allocation2 + $0xa8] sm:$0xf] %v615_v55  ;;  %644 = vst [vmem:[#allocation2 + $0xa8] sm:$0xf0] %v639_v56 }
  0xdb   : > { %v660_v57 = vpop.permute.xlu0 %659  ;;  %v662_v58 = vpop.permute.xlu1 %661  ;;  %v719_v59 = vld [vmem:[#allocation2 + $0xb8] sm:$0xff] }
  0xdc   : > { %v664_v60 = vsel %vm453_vm9, %v660_v57, %v662_v58  ;;  %670 = vst.msk [vmem:[#allocation2 + $0xd0] sm:$0xf] %vm284_vm0, %v662_v58  ;;  %795 = vmatpush1.bf16.msra.mxu1 %v719_v59  ;;  %v718_v61 = vld [vmem:[#allocation2 + $0xb0] sm:$0xff] }
  0xdd   : > { %669 = vst [vmem:[#allocation2 + $0xc8] sm:$0xf] %v664_v60  ;;  %753 = vmatprep.subr.bf16.mxu0 %v718_v61  ;;  %796 = vmatprep.subr.bf16.mxu1 %v1106_v1  ;;  %v1013_v1 = vcombine.low %v1262_v25, %v1262_v25 }
  0xdf   : > { %v684_v62 = vpop.permute.xlu0 %683  ;;  %v686_v63 = vpop.permute.xlu1 %685 }
  0xe0   : > { %v688_v0 = vsel %vm478_vm10, %v684_v62, %v686_v63  ;;  %694 = vst.msk [vmem:[#allocation2 + $0xd0] sm:$0xf0] %vm310_vm1, %v686_v63  ;;  %v717_v2 = vld [vmem:[#allocation2 + $0xa8] sm:$0xff] }
  0xe1   : > { %693 = vst [vmem:[#allocation2 + $0xc8] sm:$0xf0] %v688_v0  ;;  %754 = vmatpush1.bf16.msra.mxu0 %v717_v2 }
  0xe3   : > { %v658_v3 = vpop.permute.xlu0 %657  ;;  %v682_v4 = vpop.permute.xlu1 %681 }
  0xe4   : > { %v663_v5 = vsel %vm453_vm9, %v658_v3, %v660_v57  ;;  %v687_v6 = vsel %vm478_vm10, %v682_v4, %v684_v62 }
  0xe5   : > { %668 = vst [vmem:[#allocation2 + $0xc0] sm:$0xf] %v663_v5  ;;  %692 = vst [vmem:[#allocation2 + $0xc0] sm:$0xf0] %v687_v6 }
  0xe7   : > { %v722_v7 = vld [vmem:[#allocation2 + $0xd0] sm:$0xff] }
  0xe8   : > { %797 = vmatpush1.bf16.msra.mxu1 %v722_v7  ;;  %v721_v8 = vld [vmem:[#allocation2 + $0xc8] sm:$0xff] }
  0xe9   : > { %755 = vmatprep.subr.bf16.mxu0 %v721_v8 }
  0xeb   : > { %813 = vmatmul.mubr.bf16.vlgmr.msra.gmra.mrb[0].mxu1 %v1013_v1 }
  0xec   : > { %v720_v9 = vld [vmem:[#allocation2 + $0xc0] sm:$0xff] }
  0xed   : > { %756 = vmatpush1.bf16.msra.mxu0 %v720_v9 }
  0xf0   : > { %772 = vmatmul.mubr.bf16.vlgmr.msra.gmra.mrb[0].mxu0 %v1013_v1 }
  0xf4   : > { %v727_v10 = vpop.permute.xlu0 %726 }
 0x1be   : > { %v814_v11 = vpop.f32.mrb[0].mxu1 }
 0x1bf   : > { %v816_v12 = vpop.f32.mrb[1].mxu1  ;;  %v815_v13 = vadd.f32 %v814_v11, %v727_v10 }
 0x1c0   : > { %v817_v14 = vpop.f32.mrb[2].mxu1 }
 0x1c1   : > { %v822_v15 = vmax.f32 %v815_v13, 0.0  ;;  %v818_v16 = vpop.f32.mrb[3].mxu1 }
 0x1c3   : > { %v1022_v17 = vpack.c.bf16 %v822_v15, %v822_v15  ;;  %v773_v25 = vpop.f32.mrb[0].mxu0 }
 0x1c4   : > { %v774_v18 = vadd.f32 %v773_v25, %v727_v10  ;;  %v775_v19 = vpop.f32.mrb[1].mxu0 }
 0x1c5   : > { %v776_v20 = vadd.f32 %v775_v19, %v727_v10  ;;  %837 = vst.msk [vmem:[%s267_s14 + $0x8] sm:$0xf] %vm284_vm0, %v1022_v17  ;;  %v777_v21 = vpop.f32.mrb[2].mxu0 }
 0x1c6   : > { %v820_v22 = vmax.f32 %v774_v18, 0.0  ;;  %v778_v23 = vpop.f32.mrb[3].mxu0 }
 0x1c7   : > { %v821_v24 = vmax.f32 %v776_v20, 0.0 }
 0x1c9   : > { %v1021_v26 = vpack.c.bf16 %v821_v24, %v820_v22 }
 0x1cb   : > { %836 = vst [vmem:[%s267_s14] sm:$0xff] %v1021_v26 }
 0x1cc PF: > { %s14_s17 = sadd.s32 1, %s1104_s17   ;;  %s1353_s15 = smov %s1100_s16 }
 0x1cd   : > { %p11_p5 = scmp.ge.s32.totalorder %s14_s17, 4   ;;  %s1354_s16 = smov %s1356_s18 }
 0x1cf   :  { %13 = sbr.rel (!%p11_p5) target bundleno = 2 (0x2), region = 69 }

</bundles_post_ra>
